<compile_context>
chip_gen: v7x
topology: tpu7x:2x2x1
jax: 0.10.0
libtpu: 0.0.40
codegen_flags: <defaults>
</compile_context>

<pallas_src>
import functools

import jax
import jax.numpy as jnp
from jax.experimental import pallas as pl
from jax.experimental.pallas import tpu as pltpu

EPS = 1e-5                      # nn.BatchNorm2d default eps
_M_TILE = 256                   # lane-axis tile; sweep upward (512-2048) at
                                # production shapes, 256 exercises tiling here
_VMEM_LIMIT = 48 * 1024 * 1024  # < 64 MiB physical on v7x, > 16/32 MiB default


def _round_up(x, m):
    return ((x + m - 1) // m) * m


# ----------------------------------------------------------------------------
# Kernels
# ----------------------------------------------------------------------------

def _mm_stats_kernel(a_ref, w_ref, b_ref, y_ref, s_ref, ss_ref):
    """Pass A of the tiled BN path: y = W @ A_tile + bias, plus partial BN
    sums accumulated into a resident (Cout, 1) output block ('arbitrary' M)."""
    @pl.when(pl.program_id(0) == 0)
    def _():
        s_ref[...] = jnp.zeros_like(s_ref)
        ss_ref[...] = jnp.zeros_like(ss_ref)

    a = a_ref[...].astype(jnp.float32)          # (K, tm)   bf16 -> f32
    w = w_ref[...].astype(jnp.float32)          # (Cout, K) bf16 -> f32
    y = jnp.dot(w, a, preferred_element_type=jnp.float32) + b_ref[...]
    y_ref[...] = y.astype(y_ref.dtype)          # bf16 raw conv output
    s_ref[...] += y.sum(axis=1, keepdims=True)          # lane (XLU) reduce
    ss_ref[...] += (y * y).sum(axis=1, keepdims=True)


def _scale_act_kernel(*refs, relu, has_res):
    """Pass B of the tiled BN path: y = y_raw*scale + shift [+ReLU] [+res]."""
    if has_res:
        y_ref, sc_ref, sh_ref, r_ref, o_ref = refs
    else:
        y_ref, sc_ref, sh_ref, o_ref = refs
        r_ref = None
    y = y_ref[...].astype(jnp.float32) * sc_ref[...] + sh_ref[...]
    if relu:
        y = jnp.maximum(y, 0.0)
    if has_res:
        y = y + r_ref[...].astype(jnp.float32)
    o_ref[...] = y.astype(o_ref.dtype)


def _mm_act_kernel(a_ref, w_ref, b_ref, o_ref, *, relu, tanh):
    """Tiled matmul + bias (+ReLU) (+tanh) for layers without BatchNorm."""
    a = a_ref[...].astype(jnp.float32)
    w = w_ref[...].astype(jnp.float32)
    y = jnp.dot(w, a, preferred_element_type=jnp.float32) + b_ref[...]
    if relu:
        y = jnp.maximum(y, 0.0)
    if tanh:
        y = jnp.tanh(y)                          # EUP
    o_ref[...] = y.astype(o_ref.dtype)


def _fused_mm_bn_act_kernel(*refs, groups, relu, has_res):
    """Whole-slab fused matmul + bias + train-mode BN + ReLU (+residual) for
    small-M layers (single grid step).  `groups` > 1 merges the conv-transpose
    phase groups (rows are phase-major) into per-channel BN statistics."""
    if has_res:
        a_ref, w_ref, b_ref, g_ref, be_ref, r_ref, o_ref = refs
    else:
        a_ref, w_ref, b_ref, g_ref, be_ref, o_ref = refs
        r_ref = None

    a = a_ref[...].astype(jnp.float32)
    w = w_ref[...].astype(jnp.float32)
    y = jnp.dot(w, a, preferred_element_type=jnp.float32) + b_ref[...]

    gc, m = y.shape
    c = gc // groups
    # single-pass BN stats (sum & sum-of-squares), merged over phase groups
    s = y.sum(axis=1, keepdims=True)                     # (G*C, 1)
    ss = (y * y).sum(axis=1, keepdims=True)
    if groups > 1:
        s = sum(s[k * c:(k + 1) * c] for k in range(groups))     # (C, 1)
        ss = sum(ss[k * c:(k + 1) * c] for k in range(groups))
    cnt = float(groups * m)
    mean = s / cnt
    var = jnp.maximum(ss / cnt - mean * mean, 0.0)
    scale = g_ref[...] * jax.lax.rsqrt(var + EPS)        # EUP rsqrt
    shift = be_ref[...] - mean * scale
    if groups > 1:
        scale = jnp.concatenate([scale] * groups, axis=0)
        shift = jnp.concatenate([shift] * groups, axis=0)
    y = y * scale + shift
    if relu:
        y = jnp.maximum(y, 0.0)
    if has_res:
        y = y + r_ref[...].astype(jnp.float32)
    o_ref[...] = y.astype(o_ref.dtype)


# ----------------------------------------------------------------------------
# pallas_call wrappers
# ----------------------------------------------------------------------------

def _fused_conv_bn_call(a, wt, b, g, be, *, groups, relu, residual=None):
    """Single whole-slab fused call (small M)."""
    cout_eff = wt.shape[0]
    M = a.shape[1]
    inputs = [a, wt, b, g, be]
    if residual is not None:
        inputs.append(residual)
    vmem = pl.BlockSpec(memory_space=pltpu.MemorySpace.VMEM)
    kern = functools.partial(_fused_mm_bn_act_kernel, groups=groups, relu=relu,
                             has_res=residual is not None)
    return pl.pallas_call(
        kern,
        out_shape=jax.ShapeDtypeStruct((cout_eff, M), jnp.bfloat16),
        in_specs=[vmem] * len(inputs),
        out_specs=vmem,
        compiler_params=pltpu.CompilerParams(vmem_limit_bytes=_VMEM_LIMIT),
    )(*inputs)


def _conv_matmul_bn_act(a, wt, b, g, be, *, groups, relu, residual=None):
    """Conv (as matmul) + bias + train-mode BN + ReLU (+residual).

    a  : (K, M)      bf16 transposed im2col slab (M = N*Ho*Wo on the lanes)
    wt : (Cout_eff, K) bf16 pre-transposed weights (Cout_eff = groups*Cout)
    b  : (Cout_eff, 1) f32 ; g/be : (Cout, 1) f32
    Returns (Cout_eff, M) bf16.
    """
    K, M = a.shape
    cout_eff = wt.shape[0]
    cout = cout_eff // groups

    if M <= _M_TILE:
        # Toy / deep stages: one fused call (launch-overhead bound regime).
        return _fused_conv_bn_call(a, wt, b, g, be, groups=groups, relu=relu,
                                   residual=residual)

    # ---------------- tiled two-pass BN path (production structure) --------
    m_pad = _round_up(M, _M_TILE)
    n_t = m_pad // _M_TILE
    a_p = a if m_pad == M else jnp.pad(a, ((0, 0), (0, m_pad - M)))

    # Pass A: matmul + bias + partial stats.  The M axis is the BN reduction
    # axis -> 'arbitrary' (sequential) so the stats block can accumulate.
    y_raw, s_sum, s_sq = pl.pallas_call(
        _mm_stats_kernel,
        grid=(n_t,),
        in_specs=[pl.BlockSpec((K, _M_TILE), lambda i: (0, i)),
                  pl.BlockSpec((cout_eff, K), lambda i: (0, 0)),
                  pl.BlockSpec((cout_eff, 1), lambda i: (0, 0))],
        out_specs=(pl.BlockSpec((cout_eff, _M_TILE), lambda i: (0, i)),
                   pl.BlockSpec((cout_eff, 1), lambda i: (0, 0)),
                   pl.BlockSpec((cout_eff, 1), lambda i: (0, 0))),
        out_shape=(jax.ShapeDtypeStruct((cout_eff, m_pad), jnp.bfloat16),
                   jax.ShapeDtypeStruct((cout_eff, 1), jnp.float32),
                   jax.ShapeDtypeStruct((cout_eff, 1), jnp.float32)),
        compiler_params=pltpu.CompilerParams(
            dimension_semantics=("arbitrary",),
            vmem_limit_bytes=_VMEM_LIMIT),
    )(a_p, wt, b)

    # Tiny XLA glue: stats -> per-channel scale/shift.  Zero-padded A columns
    # contribute exactly `bias` per row; subtract that closed-form correction.
    n_pad = m_pad - M
    s = s_sum - n_pad * b
    ss = s_sq - n_pad * (b * b)
    if groups > 1:                      # merge conv-transpose phase groups
        s = s.reshape(groups, cout, 1).sum(axis=0)
        ss = ss.reshape(groups, cout, 1).sum(axis=0)
    cnt = float(groups * M)
    mean = s / cnt
    var = jnp.maximum(ss / cnt - mean * mean, 0.0)
    scale = g * jax.lax.rsqrt(var + EPS)
    shift = be - mean * scale
    if groups > 1:
        scale = jnp.tile(scale, (groups, 1))
        shift = jnp.tile(shift, (groups, 1))

    # Pass B: normalize + ReLU (+residual), independent M tiles -> 'parallel'
    # (both v7x TensorCores).
    inputs = [y_raw, scale, shift]
    in_specs = [pl.BlockSpec((cout_eff, _M_TILE), lambda i: (0, i)),
                pl.BlockSpec((cout_eff, 1), lambda i: (0, 0)),
                pl.BlockSpec((cout_eff, 1), lambda i: (0, 0))]
    if residual is not None:
        res_p = (residual if m_pad == M
                 else jnp.pad(residual, ((0, 0), (0, m_pad - M))))
        inputs.append(res_p)
        in_specs.append(pl.BlockSpec((cout_eff, _M_TILE), lambda i: (0, i)))
    kern_b = functools.partial(_scale_act_kernel, relu=relu,
                               has_res=residual is not None)
    y = pl.pallas_call(
        kern_b,
        grid=(n_t,),
        in_specs=in_specs,
        out_specs=pl.BlockSpec((cout_eff, _M_TILE), lambda i: (0, i)),
        out_shape=jax.ShapeDtypeStruct((cout_eff, m_pad), jnp.bfloat16),
        compiler_params=pltpu.CompilerParams(
            dimension_semantics=("parallel",),
            vmem_limit_bytes=_VMEM_LIMIT),
    )(*inputs)
    return y[:, :M]


def _conv_matmul_act(a, wt, b, *, relu=False, tanh=False,
                     out_dtype=jnp.float32):
    """Conv (as matmul) + bias (+ReLU) (+tanh), no BN — single tiled call."""
    K, M = a.shape
    cout = wt.shape[0]
    m_pad = _round_up(M, _M_TILE)
    n_t = m_pad // _M_TILE
    a_p = a if m_pad == M else jnp.pad(a, ((0, 0), (0, m_pad - M)))
    kern = functools.partial(_mm_act_kernel, relu=relu, tanh=tanh)
    y = pl.pallas_call(
        kern,
        grid=(n_t,),
        in_specs=[pl.BlockSpec((K, _M_TILE), lambda i: (0, i)),
                  pl.BlockSpec((cout, K), lambda i: (0, 0)),
                  pl.BlockSpec((cout, 1), lambda i: (0, 0))],
        out_specs=pl.BlockSpec((cout, _M_TILE), lambda i: (0, i)),
        out_shape=jax.ShapeDtypeStruct((cout, m_pad), out_dtype),
        compiler_params=pltpu.CompilerParams(
            dimension_semantics=("parallel",),
            vmem_limit_bytes=_VMEM_LIMIT),
    )(a_p, wt, b)
    return y[:, :M]


# ----------------------------------------------------------------------------
# Conv plumbing (XLA glue: padding / transposed im2col); compute in Pallas
# ----------------------------------------------------------------------------

def _im2col_t(xp, kh, kw, stride):
    """xp: (C, N, Hp, Wp) padded bf16 input -> (kh*kw*C, M), M = N*Ho*Wo."""
    C, N, Hp, Wp = xp.shape
    Ho = (Hp - kh) // stride + 1
    Wo = (Wp - kw) // stride + 1
    rows = []
    for i in range(kh):
        for j in range(kw):
            tap = xp[:, :, i:i + stride * Ho:stride, j:j + stride * Wo:stride]
            rows.append(tap.reshape(C, N * Ho * Wo))
    return jnp.concatenate(rows, axis=0), (N, Ho, Wo)


def conv_bn(x, p, *, kh, kw, stride=1, pad=0, pad_mode="reflect", relu=False,
            bn=True, residual=None, tanh=False):
    """Fused Conv2d [+BN] [+ReLU] [+residual] [+tanh].  x: (Cin, N, H, W) bf16."""
    if pad > 0:
        mode = "reflect" if pad_mode == "reflect" else "constant"
        x = jnp.pad(x, ((0, 0), (0, 0), (pad, pad), (pad, pad)), mode=mode)
    at, (N, Ho, Wo) = _im2col_t(x, kh, kw, stride)        # bf16 (K, M)
    cout = p["wt"].shape[0]
    if bn:
        res2d = (residual.reshape(cout, N * Ho * Wo)
                 if residual is not None else None)
        y = _conv_matmul_bn_act(at, p["wt"], p["b"], p["g"], p["be"],
                                groups=1, relu=relu, residual=res2d)
    else:
        y = _conv_matmul_act(at, p["wt"], p["b"], relu=relu, tanh=tanh,
                             out_dtype=jnp.float32)
    return y.reshape(cout, N, Ho, Wo)


# Sub-pixel (phase) decomposition of ConvTranspose2d(k=3, s=2, p=1, op=1):
# phase (a, b) -> list of (di, dj, ki, kj): out[2t+a, 2u+b] += x[t+di, u+dj]*w[ki, kj]
_CT_TAPS = {
    (0, 0): ((0, 0, 1, 1),),
    (0, 1): ((0, 0, 1, 2), (0, 1, 1, 0)),
    (1, 0): ((0, 0, 2, 1), (1, 0, 0, 1)),
    (1, 1): ((0, 0, 2, 2), (0, 1, 2, 0), (1, 0, 0, 2), (1, 1, 0, 0)),
}
_CT_PHASES = ((0, 0), (0, 1), (1, 0), (1, 1))
_CT_OFFSETS = ((0, 0), (0, 1), (1, 0), (1, 1))


def conv_transpose_bn_relu(x, p):
    """ConvTranspose2d(3, s=2, p=1, op=1) + BN + ReLU.
    The 4 output phases are merged into one matmul: shared (4*Cin, M) slab,
    (4*Cout, 4*Cin) zero-padded weight, group-aware BN stats in-kernel."""
    cin = p["wt"].shape[1] // 4
    cout = p["wt"].shape[0] // 4
    _, N, H, W = x.shape
    M = N * H * W
    xp = jnp.pad(x, ((0, 0), (0, 0), (0, 1), (0, 1)))      # zero bottom/right
    a = jnp.concatenate(
        [xp[:, :, di:di + H, dj:dj + W].reshape(cin, M)
         for (di, dj) in _CT_OFFSETS], axis=0)             # (4*Cin, M) bf16
    y = _conv_matmul_bn_act(a, p["wt"], p["b"], p["g"], p["be"],
                            groups=4, relu=True)           # (4*Cout, M) bf16
    # Interleave the 4 phases via one contiguous stack/transpose/reshape.
    y = y.reshape(2, 2, cout, N, H, W)                     # (a, b, c, n, t, u)
    y = jnp.transpose(y, (2, 3, 4, 0, 5, 1)).reshape(cout, N, 2 * H, 2 * W)
    return y


# ----------------------------------------------------------------------------
# Parameters (pre-transposed / pre-cast once at init)
# ----------------------------------------------------------------------------

def init_params(key, input_nc=3, output_nc=3, ngf=8, n_blocks=2):
    keys = iter(jax.random.split(key, 64))

    def conv_raw(kh, kw, cin, cout):
        w = 0.05 * jax.random.normal(next(keys), (kh, kw, cin, cout), jnp.float32)
        b = 0.05 * jax.random.normal(next(keys), (cout,), jnp.float32)
        return w, b

    def bn_raw(c):
        g = 1.0 + 0.05 * jax.random.normal(next(keys), (c,), jnp.float32)
        be = 0.05 * jax.random.normal(next(keys), (c,), jnp.float32)
        return g, be

    def prep_conv(w, b, g=None, be=None):
        kh, kw, cin, cout = w.shape
        d = {"wt": w.reshape(kh * kw * cin, cout).T.astype(jnp.bfloat16),
             "b": b.reshape(cout, 1).astype(jnp.float32)}
        if g is not None:
            d["g"] = g.reshape(cout, 1).astype(jnp.float32)
            d["be"] = be.reshape(cout, 1).astype(jnp.float32)
        return d

    def prep_ct(w, b, g, be):
        # Merged-phase transposed weight: rows phase-major (p*Cout + co),
        # cols input-offset-major (o*Cin + ci), zero where a tap is absent.
        _, _, cin, cout = w.shape
        wt = jnp.zeros((4 * cout, 4 * cin), jnp.float32)
        for pidx, ph in enumerate(_CT_PHASES):
            for (di, dj, ki, kj) in _CT_TAPS[ph]:
                o = 2 * di + dj
                wt = wt.at[pidx * cout:(pidx + 1) * cout,
                           o * cin:(o + 1) * cin].set(w[ki, kj].T)
        return {"wt": wt.astype(jnp.bfloat16),
                "b": jnp.tile(b, 4).reshape(4 * cout, 1).astype(jnp.float32),
                "g": g.reshape(cout, 1).astype(jnp.float32),
                "be": be.reshape(cout, 1).astype(jnp.float32)}

    params = {"stem": prep_conv(*conv_raw(7, 7, input_nc, ngf), *bn_raw(ngf)),
              "down": [], "blocks": [], "up": []}
    for i in range(2):
        mult = 2 ** i
        params["down"].append(prep_conv(*conv_raw(3, 3, ngf * mult, ngf * mult * 2),
                                        *bn_raw(ngf * mult * 2)))
    dim = ngf * 4
    for _ in range(n_blocks):
        params["blocks"].append({
            "c1": prep_conv(*conv_raw(3, 3, dim, dim), *bn_raw(dim)),
            "c2": prep_conv(*conv_raw(3, 3, dim, dim), *bn_raw(dim))})
    for i in range(2):
        mult = 2 ** (2 - i)
        params["up"].append(prep_ct(*conv_raw(3, 3, ngf * mult, ngf * mult // 2),
                                    *bn_raw(ngf * mult // 2)))
    params["out"] = prep_conv(*conv_raw(7, 7, ngf, output_nc))
    return params


# ----------------------------------------------------------------------------
# ResnetGenerator forward
# ----------------------------------------------------------------------------

def resnet_block(x, p):
    # ReflectionPad(1)+Conv3x3+BN+ReLU ; ReflectionPad(1)+Conv3x3+BN ; +x
    h = conv_bn(x, p["c1"], kh=3, kw=3, pad=1, pad_mode="reflect", relu=True)
    h = conv_bn(h, p["c2"], kh=3, kw=3, pad=1, pad_mode="reflect",
                relu=False, residual=x)
    return h


@jax.jit
def resnet_generator_forward(x_nchw, params):
    # Internal activation layout (C, N, H, W), bf16 between layers.
    h = jnp.transpose(x_nchw, (1, 0, 2, 3)).astype(jnp.bfloat16)

    # ReflectionPad2d(3) + Conv 7x7 + BN + ReLU   (tiled two-pass BN path)
    h = conv_bn(h, params["stem"], kh=7, kw=7, pad=3, pad_mode="reflect",
                relu=True)

    # 2x downsampling: Conv 3x3 s2 p1 + BN + ReLU
    for p in params["down"]:
        h = conv_bn(h, p, kh=3, kw=3, stride=2, pad=1, pad_mode="zero",
                    relu=True)

    # n_blocks residual blocks
    for p in params["blocks"]:
        h = resnet_block(h, p)

    # 2x upsampling: ConvTranspose 3x3 s2 p1 op1 + BN + ReLU (merged phases)
    for p in params["up"]:
        h = conv_transpose_bn_relu(h, p)

    # ReflectionPad2d(3) + Conv 7x7 + Tanh   (tiled, 'parallel', f32 out)
    h = conv_bn(h, params["out"], kh=7, kw=7, pad=3, pad_mode="reflect",
                relu=False, bn=False, tanh=True)

    return jnp.transpose(h, (1, 0, 2, 3)).astype(jnp.float32)   # back to NCHW


if __name__ == "__main__":
    key = jax.random.PRNGKey(0)
    k_x, k_p = jax.random.split(key)

    # Small, forward-consistent shapes: batch=2, input_nc=3, 16x16 images,
    # ngf=8, n_blocks=2 residual blocks.
    x = jax.random.normal(k_x, (2, 3, 16, 16), jnp.float32)
    params = init_params(k_p, input_nc=3, output_nc=3, ngf=8, n_blocks=2)

    y = resnet_generator_forward(x, params)
    jax.block_until_ready(y)

    assert y.shape == (2, 3, 16, 16), y.shape
    assert bool(jnp.all(jnp.isfinite(y)))
    assert bool(jnp.all(jnp.abs(y) <= 1.0))  # tanh output range
    print("KERNEL_OK")
</pallas_src>

<mosaic_0001>
module attributes {stable_mosaic.version = 11 : i64} {
  func.func @_mm_stats_kernel(%arg0: i32, %arg1: memref<147x256xbf16, #tpu.memory_space<vmem>>, %arg2: memref<8x147xbf16, #tpu.memory_space<vmem>>, %arg3: memref<8x1xf32, #tpu.memory_space<vmem>>, %arg4: memref<8x256xbf16, #tpu.memory_space<vmem>>, %arg5: memref<8x1xf32, #tpu.memory_space<vmem>>, %arg6: memref<8x1xf32, #tpu.memory_space<vmem>>) attributes {dimension_semantics = [#tpu.dimension_semantics<arbitrary>], iteration_bounds = array<i64: 2>, scalar_prefetch = 0 : i64, scratch_operands = 0 : i64, tpu.core_type = #tpu.core_type<tc>, window_params = [{transform_indices = @transform_0, window_bounds = array<i64: 147, 256>}, {pipeline_mode = #tpu.pipeline_mode<synchronous>, transform_indices = @transform_1, window_bounds = array<i64: 8, 147>}, {pipeline_mode = #tpu.pipeline_mode<synchronous>, transform_indices = @transform_2, window_bounds = array<i64: 8, 1>}, {transform_indices = @transform_3, window_bounds = array<i64: 8, 256>}, {pipeline_mode = #tpu.pipeline_mode<synchronous>, transform_indices = @transform_4, window_bounds = array<i64: 8, 1>}, {pipeline_mode = #tpu.pipeline_mode<synchronous>, transform_indices = @transform_5, window_bounds = array<i64: 8, 1>}]} {
    %c0_i32 = arith.constant 0 : i32
    %0 = arith.cmpi eq, %arg0, %c0_i32 : i32
    %1 = arith.extui %0 : i1 to i32
    %c0_i32_0 = arith.constant 0 : i32
    %2 = arith.cmpi ne, %1, %c0_i32_0 : i32
    scf.if %2 {
      %cst_18 = arith.constant 0.000000e+00 : f32
      %24 = vector.broadcast %cst_18 : f32 to vector<8x1xf32>
      %c0_19 = arith.constant 0 : index
      %c0_20 = arith.constant 0 : index
      %25 = vector.load %arg5[%c0_19, %c0_20] : memref<8x1xf32, #tpu.memory_space<vmem>>, vector<8x1xf32>
      tpu.vector_store %arg5[%c0_19, %c0_20], %24 {strides = array<i32>} : memref<8x1xf32, #tpu.memory_space<vmem>>, vector<8x1xf32>,
      %cst_21 = arith.constant 0.000000e+00 : f32
      %26 = vector.broadcast %cst_21 : f32 to vector<8x1xf32>
      %c0_22 = arith.constant 0 : index
      %c0_23 = arith.constant 0 : index
      %27 = vector.load %arg6[%c0_22, %c0_23] : memref<8x1xf32, #tpu.memory_space<vmem>>, vector<8x1xf32>
      tpu.vector_store %arg6[%c0_22, %c0_23], %26 {strides = array<i32>} : memref<8x1xf32, #tpu.memory_space<vmem>>, vector<8x1xf32>,
    } else {
    }
    %c0 = arith.constant 0 : index
    %c0_1 = arith.constant 0 : index
    %3 = vector.load %arg1[%c0, %c0_1] : memref<147x256xbf16, #tpu.memory_space<vmem>>, vector<147x256xbf16>
    %4 = arith.extf %3 : vector<147x256xbf16> to vector<147x256xf32>
    %c0_2 = arith.constant 0 : index
    %c0_3 = arith.constant 0 : index
    %5 = vector.load %arg2[%c0_2, %c0_3] : memref<8x147xbf16, #tpu.memory_space<vmem>>, vector<8x147xbf16>
    %6 = arith.extf %5 : vector<8x147xbf16> to vector<8x147xf32>
    %cst = arith.constant dense<0.000000e+00> : vector<8x256xf32>
    %7 = tpu.matmul %6, %4, %cst {dimension_numbers = #tpu.dot_dimension_numbers<[1], [0], [0], [1], [0, 0, 1, 1], [], []>} : vector<8x147xf32>, vector<147x256xf32>, vector<8x256xf32> -> vector<8x256xf32>
    %c0_4 = arith.constant 0 : index
    %c0_5 = arith.constant 0 : index
    %8 = vector.load %arg3[%c0_4, %c0_5] : memref<8x1xf32, #tpu.memory_space<vmem>>, vector<8x1xf32>
    %9 = vector.broadcast %8 : vector<8x1xf32> to vector<8x256xf32>
    %10 = arith.addf %7, %9 : vector<8x256xf32>
    %11 = arith.truncf %10 : vector<8x256xf32> to vector<8x256xbf16>
    %c0_6 = arith.constant 0 : index
    %c0_7 = arith.constant 0 : index
    %12 = vector.load %arg4[%c0_6, %c0_7] : memref<8x256xbf16, #tpu.memory_space<vmem>>, vector<8x256xbf16>
    tpu.vector_store %arg4[%c0_6, %c0_7], %11 {strides = array<i32>} : memref<8x256xbf16, #tpu.memory_space<vmem>>, vector<8x256xbf16>,
    %c0_8 = arith.constant 0 : index
    %c0_9 = arith.constant 0 : index
    %13 = vector.load %arg5[%c0_8, %c0_9] : memref<8x1xf32, #tpu.memory_space<vmem>>, vector<8x1xf32>
    %cst_10 = arith.constant dense<0.000000e+00> : vector<8xf32>
    %14 = vector.multi_reduction <add>, %10, %cst_10 [1] : vector<8x256xf32> to vector<8xf32>
    %15 = vector.shape_cast %14 : vector<8xf32> to vector<8x1xf32>
    %16 = arith.addf %13, %15 : vector<8x1xf32>
    %c0_11 = arith.constant 0 : index
    %c0_12 = arith.constant 0 : index
    %17 = vector.load %arg5[%c0_11, %c0_12] : memref<8x1xf32, #tpu.memory_space<vmem>>, vector<8x1xf32>
    tpu.vector_store %arg5[%c0_11, %c0_12], %16 {strides = array<i32>} : memref<8x1xf32, #tpu.memory_space<vmem>>, vector<8x1xf32>,
    %c0_13 = arith.constant 0 : index
    %c0_14 = arith.constant 0 : index
    %18 = vector.load %arg6[%c0_13, %c0_14] : memref<8x1xf32, #tpu.memory_space<vmem>>, vector<8x1xf32>
    %19 = arith.mulf %10, %10 : vector<8x256xf32>
    %cst_15 = arith.constant dense<0.000000e+00> : vector<8xf32>
    %20 = vector.multi_reduction <add>, %19, %cst_15 [1] : vector<8x256xf32> to vector<8xf32>
    %21 = vector.shape_cast %20 : vector<8xf32> to vector<8x1xf32>
    %22 = arith.addf %18, %21 : vector<8x1xf32>
    %c0_16 = arith.constant 0 : index
    %c0_17 = arith.constant 0 : index
    %23 = vector.load %arg6[%c0_16, %c0_17] : memref<8x1xf32, #tpu.memory_space<vmem>>, vector<8x1xf32>
    tpu.vector_store %arg6[%c0_16, %c0_17], %22 {strides = array<i32>} : memref<8x1xf32, #tpu.memory_space<vmem>>, vector<8x1xf32>,
    return
  }
  func.func @transform_0(%arg0: i32) -> (i32, i32) {
    %c0_i32 = arith.constant 0 : i32
    %c0_i32_0 = arith.constant 0 : i32
    return %c0_i32, %arg0 : i32, i32
  }
  func.func @transform_1(%arg0: i32) -> (i32, i32) {
    %c0_i32 = arith.constant 0 : i32
    %c0_i32_0 = arith.constant 0 : i32
    %c0_i32_1 = arith.constant 0 : i32
    return %c0_i32, %c0_i32_0 : i32, i32
  }
  func.func @transform_2(%arg0: i32) -> (i32, i32) {
    %c0_i32 = arith.constant 0 : i32
    %c0_i32_0 = arith.constant 0 : i32
    %c0_i32_1 = arith.constant 0 : i32
    return %c0_i32, %c0_i32_0 : i32, i32
  }
  func.func @transform_3(%arg0: i32) -> (i32, i32) {
    %c0_i32 = arith.constant 0 : i32
    %c0_i32_0 = arith.constant 0 : i32
    return %c0_i32, %arg0 : i32, i32
  }
  func.func @transform_4(%arg0: i32) -> (i32, i32) {
    %c0_i32 = arith.constant 0 : i32
    %c0_i32_0 = arith.constant 0 : i32
    %c0_i32_1 = arith.constant 0 : i32
    return %c0_i32, %c0_i32_0 : i32, i32
  }
  func.func @transform_5(%arg0: i32) -> (i32, i32) {
    %c0_i32 = arith.constant 0 : i32
    %c0_i32_0 = arith.constant 0 : i32
    %c0_i32_1 = arith.constant 0 : i32
    return %c0_i32, %c0_i32_0 : i32, i32
  }
}

module attributes {stable_mosaic.version = 11 : i64} {
  func.func @_scale_act_kernel(%arg0: i32, %arg1: memref<8x256xbf16, #tpu.memory_space<vmem>>, %arg2: memref<8x1xf32, #tpu.memory_space<vmem>>, %arg3: memref<8x1xf32, #tpu.memory_space<vmem>>, %arg4: memref<8x256xbf16, #tpu.memory_space<vmem>>) attributes {dimension_semantics = [#tpu.dimension_semantics<parallel>], iteration_bounds = array<i64: 2>, scalar_prefetch = 0 : i64, scratch_operands = 0 : i64, tpu.core_type = #tpu.core_type<tc>, window_params = [{transform_indices = @transform_0, window_bounds = array<i64: 8, 256>}, {pipeline_mode = #tpu.pipeline_mode<synchronous>, transform_indices = @transform_1, window_bounds = array<i64: 8, 1>}, {pipeline_mode = #tpu.pipeline_mode<synchronous>, transform_indices = @transform_2, window_bounds = array<i64: 8, 1>}, {transform_indices = @transform_3, window_bounds = array<i64: 8, 256>}]} {
    %c0 = arith.constant 0 : index
    %c0_0 = arith.constant 0 : index
    %0 = vector.load %arg1[%c0, %c0_0] : memref<8x256xbf16, #tpu.memory_space<vmem>>, vector<8x256xbf16>
    %1 = arith.extf %0 : vector<8x256xbf16> to vector<8x256xf32>
    %c0_1 = arith.constant 0 : index
    %c0_2 = arith.constant 0 : index
    %2 = vector.load %arg2[%c0_1, %c0_2] : memref<8x1xf32, #tpu.memory_space<vmem>>, vector<8x1xf32>
    %3 = vector.broadcast %2 : vector<8x1xf32> to vector<8x256xf32>
    %4 = arith.mulf %1, %3 : vector<8x256xf32>
    %c0_3 = arith.constant 0 : index
    %c0_4 = arith.constant 0 : index
    %5 = vector.load %arg3[%c0_3, %c0_4] : memref<8x1xf32, #tpu.memory_space<vmem>>, vector<8x1xf32>
    %6 = vector.broadcast %5 : vector<8x1xf32> to vector<8x256xf32>
    %7 = arith.addf %4, %6 : vector<8x256xf32>
    %cst = arith.constant 0.000000e+00 : f32
    %8 = vector.broadcast %cst : f32 to vector<8x256xf32>
    %9 = arith.maximumf %7, %8 : vector<8x256xf32>
    %10 = arith.truncf %9 : vector<8x256xf32> to vector<8x256xbf16>
    %c0_5 = arith.constant 0 : index
    %c0_6 = arith.constant 0 : index
    %11 = vector.load %arg4[%c0_5, %c0_6] : memref<8x256xbf16, #tpu.memory_space<vmem>>, vector<8x256xbf16>
    tpu.vector_store %arg4[%c0_5, %c0_6], %10 {strides = array<i32>} : memref<8x256xbf16, #tpu.memory_space<vmem>>, vector<8x256xbf16>,
    return
  }
  func.func @transform_0(%arg0: i32) -> (i32, i32) {
    %c0_i32 = arith.constant 0 : i32
    %c0_i32_0 = arith.constant 0 : i32
    return %c0_i32, %arg0 : i32, i32
  }
  func.func @transform_1(%arg0: i32) -> (i32, i32) {
    %c0_i32 = arith.constant 0 : i32
    %c0_i32_0 = arith.constant 0 : i32
    %c0_i32_1 = arith.constant 0 : i32
    return %c0_i32, %c0_i32_0 : i32, i32
  }
  func.func @transform_2(%arg0: i32) -> (i32, i32) {
    %c0_i32 = arith.constant 0 : i32
    %c0_i32_0 = arith.constant 0 : i32
    %c0_i32_1 = arith.constant 0 : i32
    return %c0_i32, %c0_i32_0 : i32, i32
  }
  func.func @transform_3(%arg0: i32) -> (i32, i32) {
    %c0_i32 = arith.constant 0 : i32
    %c0_i32_0 = arith.constant 0 : i32
    return %c0_i32, %arg0 : i32, i32
  }
}

module attributes {stable_mosaic.version = 11 : i64} {
  func.func @_fused_mm_bn_act_kernel(%arg0: memref<72x128xbf16, #tpu.memory_space<vmem>>, %arg1: memref<16x72xbf16, #tpu.memory_space<vmem>>, %arg2: memref<16x1xf32, #tpu.memory_space<vmem>>, %arg3: memref<16x1xf32, #tpu.memory_space<vmem>>, %arg4: memref<16x1xf32, #tpu.memory_space<vmem>>, %arg5: memref<16x128xbf16, #tpu.memory_space<vmem>>) attributes {dimension_semantics = [], scalar_prefetch = 0 : i64, scratch_operands = 0 : i64, tpu.core_type = #tpu.core_type<tc>} {
    %c0 = arith.constant 0 : index
    %c0_0 = arith.constant 0 : index
    %0 = vector.load %arg0[%c0, %c0_0] : memref<72x128xbf16, #tpu.memory_space<vmem>>, vector<72x128xbf16>
    %1 = arith.extf %0 : vector<72x128xbf16> to vector<72x128xf32>
    %c0_1 = arith.constant 0 : index
    %c0_2 = arith.constant 0 : index
    %2 = vector.load %arg1[%c0_1, %c0_2] : memref<16x72xbf16, #tpu.memory_space<vmem>>, vector<16x72xbf16>
    %3 = arith.extf %2 : vector<16x72xbf16> to vector<16x72xf32>
    %cst = arith.constant dense<0.000000e+00> : vector<16x128xf32>
    %4 = tpu.matmul %3, %1, %cst {dimension_numbers = #tpu.dot_dimension_numbers<[1], [0], [0], [1], [0, 0, 1, 1], [], []>} : vector<16x72xf32>, vector<72x128xf32>, vector<16x128xf32> -> vector<16x128xf32>
    %c0_3 = arith.constant 0 : index
    %c0_4 = arith.constant 0 : index
    %5 = vector.load %arg2[%c0_3, %c0_4] : memref<16x1xf32, #tpu.memory_space<vmem>>, vector<16x1xf32>
    %6 = vector.broadcast %5 : vector<16x1xf32> to vector<16x128xf32>
    %7 = arith.addf %4, %6 : vector<16x128xf32>
    %cst_5 = arith.constant dense<0.000000e+00> : vector<16xf32>
    %8 = vector.multi_reduction <add>, %7, %cst_5 [1] : vector<16x128xf32> to vector<16xf32>
    %9 = vector.shape_cast %8 : vector<16xf32> to vector<16x1xf32>
    %10 = arith.mulf %7, %7 : vector<16x128xf32>
    %cst_6 = arith.constant dense<0.000000e+00> : vector<16xf32>
    %11 = vector.multi_reduction <add>, %10, %cst_6 [1] : vector<16x128xf32> to vector<16xf32>
    %12 = vector.shape_cast %11 : vector<16xf32> to vector<16x1xf32>
    %cst_7 = arith.constant 1.280000e+02 : f32
    %13 = vector.broadcast %cst_7 : f32 to vector<16x1xf32>
    %14 = arith.divf %9, %13 : vector<16x1xf32>
    %cst_8 = arith.constant 1.280000e+02 : f32
    %15 = vector.broadcast %cst_8 : f32 to vector<16x1xf32>
    %16 = arith.divf %12, %15 : vector<16x1xf32>
    %17 = arith.mulf %14, %14 : vector<16x1xf32>
    %18 = arith.subf %16, %17 : vector<16x1xf32>
    %cst_9 = arith.constant 0.000000e+00 : f32
    %19 = vector.broadcast %cst_9 : f32 to vector<16x1xf32>
    %20 = arith.maximumf %18, %19 : vector<16x1xf32>
    %c0_10 = arith.constant 0 : index
    %c0_11 = arith.constant 0 : index
    %21 = vector.load %arg3[%c0_10, %c0_11] : memref<16x1xf32, #tpu.memory_space<vmem>>, vector<16x1xf32>
    %cst_12 = arith.constant 9.99999974E-6 : f32
    %22 = vector.broadcast %cst_12 : f32 to vector<16x1xf32>
    %23 = arith.addf %20, %22 : vector<16x1xf32>
    %24 = math.rsqrt %23 : vector<16x1xf32>
    %25 = arith.mulf %21, %24 : vector<16x1xf32>
    %c0_13 = arith.constant 0 : index
    %c0_14 = arith.constant 0 : index
    %26 = vector.load %arg4[%c0_13, %c0_14] : memref<16x1xf32, #tpu.memory_space<vmem>>, vector<16x1xf32>
    %27 = arith.mulf %14, %25 : vector<16x1xf32>
    %28 = arith.subf %26, %27 : vector<16x1xf32>
    %29 = vector.broadcast %25 : vector<16x1xf32> to vector<16x128xf32>
    %30 = arith.mulf %7, %29 : vector<16x128xf32>
    %31 = vector.broadcast %28 : vector<16x1xf32> to vector<16x128xf32>
    %32 = arith.addf %30, %31 : vector<16x128xf32>
    %cst_15 = arith.constant 0.000000e+00 : f32
    %33 = vector.broadcast %cst_15 : f32 to vector<16x128xf32>
    %34 = arith.maximumf %32, %33 : vector<16x128xf32>
    %35 = arith.truncf %34 : vector<16x128xf32> to vector<16x128xbf16>
    %c0_16 = arith.constant 0 : index
    %c0_17 = arith.constant 0 : index
    %36 = vector.load %arg5[%c0_16, %c0_17] : memref<16x128xbf16, #tpu.memory_space<vmem>>, vector<16x128xbf16>
    tpu.vector_store %arg5[%c0_16, %c0_17], %35 {strides = array<i32>} : memref<16x128xbf16, #tpu.memory_space<vmem>>, vector<16x128xbf16>,
    return
  }
}

module attributes {stable_mosaic.version = 11 : i64} {
  func.func @_fused_mm_bn_act_kernel(%arg0: memref<144x32xbf16, #tpu.memory_space<vmem>>, %arg1: memref<32x144xbf16, #tpu.memory_space<vmem>>, %arg2: memref<32x1xf32, #tpu.memory_space<vmem>>, %arg3: memref<32x1xf32, #tpu.memory_space<vmem>>, %arg4: memref<32x1xf32, #tpu.memory_space<vmem>>, %arg5: memref<32x32xbf16, #tpu.memory_space<vmem>>) attributes {dimension_semantics = [], scalar_prefetch = 0 : i64, scratch_operands = 0 : i64, tpu.core_type = #tpu.core_type<tc>} {
    %c0 = arith.constant 0 : index
    %c0_0 = arith.constant 0 : index
    %0 = vector.load %arg0[%c0, %c0_0] : memref<144x32xbf16, #tpu.memory_space<vmem>>, vector<144x32xbf16>
    %1 = arith.extf %0 : vector<144x32xbf16> to vector<144x32xf32>
    %c0_1 = arith.constant 0 : index
    %c0_2 = arith.constant 0 : index
    %2 = vector.load %arg1[%c0_1, %c0_2] : memref<32x144xbf16, #tpu.memory_space<vmem>>, vector<32x144xbf16>
    %3 = arith.extf %2 : vector<32x144xbf16> to vector<32x144xf32>
    %cst = arith.constant dense<0.000000e+00> : vector<32x32xf32>
    %4 = tpu.matmul %3, %1, %cst {dimension_numbers = #tpu.dot_dimension_numbers<[1], [0], [0], [1], [0, 0, 1, 1], [], []>} : vector<32x144xf32>, vector<144x32xf32>, vector<32x32xf32> -> vector<32x32xf32>
    %c0_3 = arith.constant 0 : index
    %c0_4 = arith.constant 0 : index
    %5 = vector.load %arg2[%c0_3, %c0_4] : memref<32x1xf32, #tpu.memory_space<vmem>>, vector<32x1xf32>
    %6 = vector.broadcast %5 : vector<32x1xf32> to vector<32x32xf32>
    %7 = arith.addf %4, %6 : vector<32x32xf32>
    %cst_5 = arith.constant dense<0.000000e+00> : vector<32xf32>
    %8 = vector.multi_reduction <add>, %7, %cst_5 [1] : vector<32x32xf32> to vector<32xf32>
    %9 = vector.shape_cast %8 : vector<32xf32> to vector<32x1xf32>
    %10 = arith.mulf %7, %7 : vector<32x32xf32>
    %cst_6 = arith.constant dense<0.000000e+00> : vector<32xf32>
    %11 = vector.multi_reduction <add>, %10, %cst_6 [1] : vector<32x32xf32> to vector<32xf32>
    %12 = vector.shape_cast %11 : vector<32xf32> to vector<32x1xf32>
    %cst_7 = arith.constant 3.200000e+01 : f32
    %13 = vector.broadcast %cst_7 : f32 to vector<32x1xf32>
    %14 = arith.divf %9, %13 : vector<32x1xf32>
    %cst_8 = arith.constant 3.200000e+01 : f32
    %15 = vector.broadcast %cst_8 : f32 to vector<32x1xf32>
    %16 = arith.divf %12, %15 : vector<32x1xf32>
    %17 = arith.mulf %14, %14 : vector<32x1xf32>
    %18 = arith.subf %16, %17 : vector<32x1xf32>
    %cst_9 = arith.constant 0.000000e+00 : f32
    %19 = vector.broadcast %cst_9 : f32 to vector<32x1xf32>
    %20 = arith.maximumf %18, %19 : vector<32x1xf32>
    %c0_10 = arith.constant 0 : index
    %c0_11 = arith.constant 0 : index
    %21 = vector.load %arg3[%c0_10, %c0_11] : memref<32x1xf32, #tpu.memory_space<vmem>>, vector<32x1xf32>
    %cst_12 = arith.constant 9.99999974E-6 : f32
    %22 = vector.broadcast %cst_12 : f32 to vector<32x1xf32>
    %23 = arith.addf %20, %22 : vector<32x1xf32>
    %24 = math.rsqrt %23 : vector<32x1xf32>
    %25 = arith.mulf %21, %24 : vector<32x1xf32>
    %c0_13 = arith.constant 0 : index
    %c0_14 = arith.constant 0 : index
    %26 = vector.load %arg4[%c0_13, %c0_14] : memref<32x1xf32, #tpu.memory_space<vmem>>, vector<32x1xf32>
    %27 = arith.mulf %14, %25 : vector<32x1xf32>
    %28 = arith.subf %26, %27 : vector<32x1xf32>
    %29 = vector.broadcast %25 : vector<32x1xf32> to vector<32x32xf32>
    %30 = arith.mulf %7, %29 : vector<32x32xf32>
    %31 = vector.broadcast %28 : vector<32x1xf32> to vector<32x32xf32>
    %32 = arith.addf %30, %31 : vector<32x32xf32>
    %cst_15 = arith.constant 0.000000e+00 : f32
    %33 = vector.broadcast %cst_15 : f32 to vector<32x32xf32>
    %34 = arith.maximumf %32, %33 : vector<32x32xf32>
    %35 = arith.truncf %34 : vector<32x32xf32> to vector<32x32xbf16>
    %c0_16 = arith.constant 0 : index
    %c0_17 = arith.constant 0 : index
    %36 = vector.load %arg5[%c0_16, %c0_17] : memref<32x32xbf16, #tpu.memory_space<vmem>>, vector<32x32xbf16>
    tpu.vector_store %arg5[%c0_16, %c0_17], %35 {strides = array<i32>} : memref<32x32xbf16, #tpu.memory_space<vmem>>, vector<32x32xbf16>,
    return
  }
}

module attributes {stable_mosaic.version = 11 : i64} {
  func.func @_fused_mm_bn_act_kernel(%arg0: memref<288x32xbf16, #tpu.memory_space<vmem>>, %arg1: memref<32x288xbf16, #tpu.memory_space<vmem>>, %arg2: memref<32x1xf32, #tpu.memory_space<vmem>>, %arg3: memref<32x1xf32, #tpu.memory_space<vmem>>, %arg4: memref<32x1xf32, #tpu.memory_space<vmem>>, %arg5: memref<32x32xbf16, #tpu.memory_space<vmem>>, %arg6: memref<32x32xbf16, #tpu.memory_space<vmem>>) attributes {dimension_semantics = [], scalar_prefetch = 0 : i64, scratch_operands = 0 : i64, tpu.core_type = #tpu.core_type<tc>} {
    %c0 = arith.constant 0 : index
    %c0_0 = arith.constant 0 : index
    %0 = vector.load %arg0[%c0, %c0_0] : memref<288x32xbf16, #tpu.memory_space<vmem>>, vector<288x32xbf16>
    %1 = arith.extf %0 : vector<288x32xbf16> to vector<288x32xf32>
    %c0_1 = arith.constant 0 : index
    %c0_2 = arith.constant 0 : index
    %2 = vector.load %arg1[%c0_1, %c0_2] : memref<32x288xbf16, #tpu.memory_space<vmem>>, vector<32x288xbf16>
    %3 = arith.extf %2 : vector<32x288xbf16> to vector<32x288xf32>
    %cst = arith.constant dense<0.000000e+00> : vector<32x32xf32>
    %4 = tpu.matmul %3, %1, %cst {dimension_numbers = #tpu.dot_dimension_numbers<[1], [0], [0], [1], [0, 0, 1, 1], [], []>} : vector<32x288xf32>, vector<288x32xf32>, vector<32x32xf32> -> vector<32x32xf32>
    %c0_3 = arith.constant 0 : index
    %c0_4 = arith.constant 0 : index
    %5 = vector.load %arg2[%c0_3, %c0_4] : memref<32x1xf32, #tpu.memory_space<vmem>>, vector<32x1xf32>
    %6 = vector.broadcast %5 : vector<32x1xf32> to vector<32x32xf32>
    %7 = arith.addf %4, %6 : vector<32x32xf32>
    %cst_5 = arith.constant dense<0.000000e+00> : vector<32xf32>
    %8 = vector.multi_reduction <add>, %7, %cst_5 [1] : vector<32x32xf32> to vector<32xf32>
    %9 = vector.shape_cast %8 : vector<32xf32> to vector<32x1xf32>
    %10 = arith.mulf %7, %7 : vector<32x32xf32>
    %cst_6 = arith.constant dense<0.000000e+00> : vector<32xf32>
    %11 = vector.multi_reduction <add>, %10, %cst_6 [1] : vector<32x32xf32> to vector<32xf32>
    %12 = vector.shape_cast %11 : vector<32xf32> to vector<32x1xf32>
    %cst_7 = arith.constant 3.200000e+01 : f32
    %13 = vector.broadcast %cst_7 : f32 to vector<32x1xf32>
    %14 = arith.divf %9, %13 : vector<32x1xf32>
    %cst_8 = arith.constant 3.200000e+01 : f32
    %15 = vector.broadcast %cst_8 : f32 to vector<32x1xf32>
    %16 = arith.divf %12, %15 : vector<32x1xf32>
    %17 = arith.mulf %14, %14 : vector<32x1xf32>
    %18 = arith.subf %16, %17 : vector<32x1xf32>
    %cst_9 = arith.constant 0.000000e+00 : f32
    %19 = vector.broadcast %cst_9 : f32 to vector<32x1xf32>
    %20 = arith.maximumf %18, %19 : vector<32x1xf32>
    %c0_10 = arith.constant 0 : index
    %c0_11 = arith.constant 0 : index
    %21 = vector.load %arg3[%c0_10, %c0_11] : memref<32x1xf32, #tpu.memory_space<vmem>>, vector<32x1xf32>
    %cst_12 = arith.constant 9.99999974E-6 : f32
    %22 = vector.broadcast %cst_12 : f32 to vector<32x1xf32>
    %23 = arith.addf %20, %22 : vector<32x1xf32>
    %24 = math.rsqrt %23 : vector<32x1xf32>
    %25 = arith.mulf %21, %24 : vector<32x1xf32>
    %c0_13 = arith.constant 0 : index
    %c0_14 = arith.constant 0 : index
    %26 = vector.load %arg4[%c0_13, %c0_14] : memref<32x1xf32, #tpu.memory_space<vmem>>, vector<32x1xf32>
    %27 = arith.mulf %14, %25 : vector<32x1xf32>
    %28 = arith.subf %26, %27 : vector<32x1xf32>
    %29 = vector.broadcast %25 : vector<32x1xf32> to vector<32x32xf32>
    %30 = arith.mulf %7, %29 : vector<32x32xf32>
    %31 = vector.broadcast %28 : vector<32x1xf32> to vector<32x32xf32>
    %32 = arith.addf %30, %31 : vector<32x32xf32>
    %c0_15 = arith.constant 0 : index
    %c0_16 = arith.constant 0 : index
    %33 = vector.load %arg5[%c0_15, %c0_16] : memref<32x32xbf16, #tpu.memory_space<vmem>>, vector<32x32xbf16>
    %34 = arith.extf %33 : vector<32x32xbf16> to vector<32x32xf32>
    %35 = arith.addf %32, %34 : vector<32x32xf32>
    %36 = arith.truncf %35 : vector<32x32xf32> to vector<32x32xbf16>
    %c0_17 = arith.constant 0 : index
    %c0_18 = arith.constant 0 : index
    %37 = vector.load %arg6[%c0_17, %c0_18] : memref<32x32xbf16, #tpu.memory_space<vmem>>, vector<32x32xbf16>
    tpu.vector_store %arg6[%c0_17, %c0_18], %36 {strides = array<i32>} : memref<32x32xbf16, #tpu.memory_space<vmem>>, vector<32x32xbf16>,
    return
  }
}

module attributes {stable_mosaic.version = 11 : i64} {
  func.func @_fused_mm_bn_act_kernel(%arg0: memref<288x32xbf16, #tpu.memory_space<vmem>>, %arg1: memref<32x288xbf16, #tpu.memory_space<vmem>>, %arg2: memref<32x1xf32, #tpu.memory_space<vmem>>, %arg3: memref<32x1xf32, #tpu.memory_space<vmem>>, %arg4: memref<32x1xf32, #tpu.memory_space<vmem>>, %arg5: memref<32x32xbf16, #tpu.memory_space<vmem>>) attributes {dimension_semantics = [], scalar_prefetch = 0 : i64, scratch_operands = 0 : i64, tpu.core_type = #tpu.core_type<tc>} {
    %c0 = arith.constant 0 : index
    %c0_0 = arith.constant 0 : index
    %0 = vector.load %arg0[%c0, %c0_0] : memref<288x32xbf16, #tpu.memory_space<vmem>>, vector<288x32xbf16>
    %1 = arith.extf %0 : vector<288x32xbf16> to vector<288x32xf32>
    %c0_1 = arith.constant 0 : index
    %c0_2 = arith.constant 0 : index
    %2 = vector.load %arg1[%c0_1, %c0_2] : memref<32x288xbf16, #tpu.memory_space<vmem>>, vector<32x288xbf16>
    %3 = arith.extf %2 : vector<32x288xbf16> to vector<32x288xf32>
    %cst = arith.constant dense<0.000000e+00> : vector<32x32xf32>
    %4 = tpu.matmul %3, %1, %cst {dimension_numbers = #tpu.dot_dimension_numbers<[1], [0], [0], [1], [0, 0, 1, 1], [], []>} : vector<32x288xf32>, vector<288x32xf32>, vector<32x32xf32> -> vector<32x32xf32>
    %c0_3 = arith.constant 0 : index
    %c0_4 = arith.constant 0 : index
    %5 = vector.load %arg2[%c0_3, %c0_4] : memref<32x1xf32, #tpu.memory_space<vmem>>, vector<32x1xf32>
    %6 = vector.broadcast %5 : vector<32x1xf32> to vector<32x32xf32>
    %7 = arith.addf %4, %6 : vector<32x32xf32>
    %cst_5 = arith.constant dense<0.000000e+00> : vector<32xf32>
    %8 = vector.multi_reduction <add>, %7, %cst_5 [1] : vector<32x32xf32> to vector<32xf32>
    %9 = vector.shape_cast %8 : vector<32xf32> to vector<32x1xf32>
    %10 = arith.mulf %7, %7 : vector<32x32xf32>
    %cst_6 = arith.constant dense<0.000000e+00> : vector<32xf32>
    %11 = vector.multi_reduction <add>, %10, %cst_6 [1] : vector<32x32xf32> to vector<32xf32>
    %12 = vector.shape_cast %11 : vector<32xf32> to vector<32x1xf32>
    %cst_7 = arith.constant 3.200000e+01 : f32
    %13 = vector.broadcast %cst_7 : f32 to vector<32x1xf32>
    %14 = arith.divf %9, %13 : vector<32x1xf32>
    %cst_8 = arith.constant 3.200000e+01 : f32
    %15 = vector.broadcast %cst_8 : f32 to vector<32x1xf32>
    %16 = arith.divf %12, %15 : vector<32x1xf32>
    %17 = arith.mulf %14, %14 : vector<32x1xf32>
    %18 = arith.subf %16, %17 : vector<32x1xf32>
    %cst_9 = arith.constant 0.000000e+00 : f32
    %19 = vector.broadcast %cst_9 : f32 to vector<32x1xf32>
    %20 = arith.maximumf %18, %19 : vector<32x1xf32>
    %c0_10 = arith.constant 0 : index
    %c0_11 = arith.constant 0 : index
    %21 = vector.load %arg3[%c0_10, %c0_11] : memref<32x1xf32, #tpu.memory_space<vmem>>, vector<32x1xf32>
    %cst_12 = arith.constant 9.99999974E-6 : f32
    %22 = vector.broadcast %cst_12 : f32 to vector<32x1xf32>
    %23 = arith.addf %20, %22 : vector<32x1xf32>
    %24 = math.rsqrt %23 : vector<32x1xf32>
    %25 = arith.mulf %21, %24 : vector<32x1xf32>
    %c0_13 = arith.constant 0 : index
    %c0_14 = arith.constant 0 : index
    %26 = vector.load %arg4[%c0_13, %c0_14] : memref<32x1xf32, #tpu.memory_space<vmem>>, vector<32x1xf32>
    %27 = arith.mulf %14, %25 : vector<32x1xf32>
    %28 = arith.subf %26, %27 : vector<32x1xf32>
    %29 = vector.broadcast %25 : vector<32x1xf32> to vector<32x32xf32>
    %30 = arith.mulf %7, %29 : vector<32x32xf32>
    %31 = vector.broadcast %28 : vector<32x1xf32> to vector<32x32xf32>
    %32 = arith.addf %30, %31 : vector<32x32xf32>
    %cst_15 = arith.constant 0.000000e+00 : f32
    %33 = vector.broadcast %cst_15 : f32 to vector<32x32xf32>
    %34 = arith.maximumf %32, %33 : vector<32x32xf32>
    %35 = arith.truncf %34 : vector<32x32xf32> to vector<32x32xbf16>
    %c0_16 = arith.constant 0 : index
    %c0_17 = arith.constant 0 : index
    %36 = vector.load %arg5[%c0_16, %c0_17] : memref<32x32xbf16, #tpu.memory_space<vmem>>, vector<32x32xbf16>
    tpu.vector_store %arg5[%c0_16, %c0_17], %35 {strides = array<i32>} : memref<32x32xbf16, #tpu.memory_space<vmem>>, vector<32x32xbf16>,
    return
  }
}

module attributes {stable_mosaic.version = 11 : i64} {
  func.func @_fused_mm_bn_act_kernel(%arg0: memref<128x32xbf16, #tpu.memory_space<vmem>>, %arg1: memref<64x128xbf16, #tpu.memory_space<vmem>>, %arg2: memref<64x1xf32, #tpu.memory_space<vmem>>, %arg3: memref<16x1xf32, #tpu.memory_space<vmem>>, %arg4: memref<16x1xf32, #tpu.memory_space<vmem>>, %arg5: memref<64x32xbf16, #tpu.memory_space<vmem>>) attributes {dimension_semantics = [], scalar_prefetch = 0 : i64, scratch_operands = 0 : i64, tpu.core_type = #tpu.core_type<tc>} {
    %c0 = arith.constant 0 : index
    %c0_0 = arith.constant 0 : index
    %0 = vector.load %arg0[%c0, %c0_0] : memref<128x32xbf16, #tpu.memory_space<vmem>>, vector<128x32xbf16>
    %1 = arith.extf %0 : vector<128x32xbf16> to vector<128x32xf32>
    %c0_1 = arith.constant 0 : index
    %c0_2 = arith.constant 0 : index
    %2 = vector.load %arg1[%c0_1, %c0_2] : memref<64x128xbf16, #tpu.memory_space<vmem>>, vector<64x128xbf16>
    %3 = arith.extf %2 : vector<64x128xbf16> to vector<64x128xf32>
    %cst = arith.constant dense<0.000000e+00> : vector<64x32xf32>
    %4 = tpu.matmul %3, %1, %cst {dimension_numbers = #tpu.dot_dimension_numbers<[1], [0], [0], [1], [0, 0, 1, 1], [], []>} : vector<64x128xf32>, vector<128x32xf32>, vector<64x32xf32> -> vector<64x32xf32>
    %c0_3 = arith.constant 0 : index
    %c0_4 = arith.constant 0 : index
    %5 = vector.load %arg2[%c0_3, %c0_4] : memref<64x1xf32, #tpu.memory_space<vmem>>, vector<64x1xf32>
    %6 = vector.broadcast %5 : vector<64x1xf32> to vector<64x32xf32>
    %7 = arith.addf %4, %6 : vector<64x32xf32>
    %cst_5 = arith.constant dense<0.000000e+00> : vector<64xf32>
    %8 = vector.multi_reduction <add>, %7, %cst_5 [1] : vector<64x32xf32> to vector<64xf32>
    %9 = vector.shape_cast %8 : vector<64xf32> to vector<64x1xf32>
    %10 = arith.mulf %7, %7 : vector<64x32xf32>
    %cst_6 = arith.constant dense<0.000000e+00> : vector<64xf32>
    %11 = vector.multi_reduction <add>, %10, %cst_6 [1] : vector<64x32xf32> to vector<64xf32>
    %12 = vector.shape_cast %11 : vector<64xf32> to vector<64x1xf32>
    %13 = vector.extract_strided_slice %9 {offsets = [0, 0], sizes = [16, 1], strides = [1, 1]} : vector<64x1xf32> to vector<16x1xf32>
    %cst_7 = arith.constant 0.000000e+00 : f32
    %14 = vector.broadcast %cst_7 : f32 to vector<16x1xf32>
    %15 = arith.addf %14, %13 : vector<16x1xf32>
    %16 = vector.extract_strided_slice %9 {offsets = [16, 0], sizes = [16, 1], strides = [1, 1]} : vector<64x1xf32> to vector<16x1xf32>
    %17 = arith.addf %15, %16 : vector<16x1xf32>
    %18 = vector.extract_strided_slice %9 {offsets = [32, 0], sizes = [16, 1], strides = [1, 1]} : vector<64x1xf32> to vector<16x1xf32>
    %19 = arith.addf %17, %18 : vector<16x1xf32>
    %20 = vector.extract_strided_slice %9 {offsets = [48, 0], sizes = [16, 1], strides = [1, 1]} : vector<64x1xf32> to vector<16x1xf32>
    %21 = arith.addf %19, %20 : vector<16x1xf32>
    %22 = vector.extract_strided_slice %12 {offsets = [0, 0], sizes = [16, 1], strides = [1, 1]} : vector<64x1xf32> to vector<16x1xf32>
    %cst_8 = arith.constant 0.000000e+00 : f32
    %23 = vector.broadcast %cst_8 : f32 to vector<16x1xf32>
    %24 = arith.addf %23, %22 : vector<16x1xf32>
    %25 = vector.extract_strided_slice %12 {offsets = [16, 0], sizes = [16, 1], strides = [1, 1]} : vector<64x1xf32> to vector<16x1xf32>
    %26 = arith.addf %24, %25 : vector<16x1xf32>
    %27 = vector.extract_strided_slice %12 {offsets = [32, 0], sizes = [16, 1], strides = [1, 1]} : vector<64x1xf32> to vector<16x1xf32>
    %28 = arith.addf %26, %27 : vector<16x1xf32>
    %29 = vector.extract_strided_slice %12 {offsets = [48, 0], sizes = [16, 1], strides = [1, 1]} : vector<64x1xf32> to vector<16x1xf32>
    %30 = arith.addf %28, %29 : vector<16x1xf32>
    %cst_9 = arith.constant 1.280000e+02 : f32
    %31 = vector.broadcast %cst_9 : f32 to vector<16x1xf32>
    %32 = arith.divf %21, %31 : vector<16x1xf32>
    %cst_10 = arith.constant 1.280000e+02 : f32
    %33 = vector.broadcast %cst_10 : f32 to vector<16x1xf32>
    %34 = arith.divf %30, %33 : vector<16x1xf32>
    %35 = arith.mulf %32, %32 : vector<16x1xf32>
    %36 = arith.subf %34, %35 : vector<16x1xf32>
    %cst_11 = arith.constant 0.000000e+00 : f32
    %37 = vector.broadcast %cst_11 : f32 to vector<16x1xf32>
    %38 = arith.maximumf %36, %37 : vector<16x1xf32>
    %c0_12 = arith.constant 0 : index
    %c0_13 = arith.constant 0 : index
    %39 = vector.load %arg3[%c0_12, %c0_13] : memref<16x1xf32, #tpu.memory_space<vmem>>, vector<16x1xf32>
    %cst_14 = arith.constant 9.99999974E-6 : f32
    %40 = vector.broadcast %cst_14 : f32 to vector<16x1xf32>
    %41 = arith.addf %38, %40 : vector<16x1xf32>
    %42 = math.rsqrt %41 : vector<16x1xf32>
    %43 = arith.mulf %39, %42 : vector<16x1xf32>
    %c0_15 = arith.constant 0 : index
    %c0_16 = arith.constant 0 : index
    %44 = vector.load %arg4[%c0_15, %c0_16] : memref<16x1xf32, #tpu.memory_space<vmem>>, vector<16x1xf32>
    %45 = arith.mulf %32, %43 : vector<16x1xf32>
    %46 = arith.subf %44, %45 : vector<16x1xf32>
    %47 = tpu.concatenate %43, %43, %43, %43 in 0 : vector<16x1xf32>, vector<16x1xf32>, vector<16x1xf32>, vector<16x1xf32> -> vector<64x1xf32>
    %48 = tpu.concatenate %46, %46, %46, %46 in 0 : vector<16x1xf32>, vector<16x1xf32>, vector<16x1xf32>, vector<16x1xf32> -> vector<64x1xf32>
    %49 = vector.broadcast %47 : vector<64x1xf32> to vector<64x32xf32>
    %50 = arith.mulf %7, %49 : vector<64x32xf32>
    %51 = vector.broadcast %48 : vector<64x1xf32> to vector<64x32xf32>
    %52 = arith.addf %50, %51 : vector<64x32xf32>
    %cst_17 = arith.constant 0.000000e+00 : f32
    %53 = vector.broadcast %cst_17 : f32 to vector<64x32xf32>
    %54 = arith.maximumf %52, %53 : vector<64x32xf32>
    %55 = arith.truncf %54 : vector<64x32xf32> to vector<64x32xbf16>
    %c0_18 = arith.constant 0 : index
    %c0_19 = arith.constant 0 : index
    %56 = vector.load %arg5[%c0_18, %c0_19] : memref<64x32xbf16, #tpu.memory_space<vmem>>, vector<64x32xbf16>
    tpu.vector_store %arg5[%c0_18, %c0_19], %55 {strides = array<i32>} : memref<64x32xbf16, #tpu.memory_space<vmem>>, vector<64x32xbf16>,
    return
  }
}

module attributes {stable_mosaic.version = 11 : i64} {
  func.func @_fused_mm_bn_act_kernel(%arg0: memref<64x128xbf16, #tpu.memory_space<vmem>>, %arg1: memref<32x64xbf16, #tpu.memory_space<vmem>>, %arg2: memref<32x1xf32, #tpu.memory_space<vmem>>, %arg3: memref<8x1xf32, #tpu.memory_space<vmem>>, %arg4: memref<8x1xf32, #tpu.memory_space<vmem>>, %arg5: memref<32x128xbf16, #tpu.memory_space<vmem>>) attributes {dimension_semantics = [], scalar_prefetch = 0 : i64, scratch_operands = 0 : i64, tpu.core_type = #tpu.core_type<tc>} {
    %c0 = arith.constant 0 : index
    %c0_0 = arith.constant 0 : index
    %0 = vector.load %arg0[%c0, %c0_0] : memref<64x128xbf16, #tpu.memory_space<vmem>>, vector<64x128xbf16>
    %1 = arith.extf %0 : vector<64x128xbf16> to vector<64x128xf32>
    %c0_1 = arith.constant 0 : index
    %c0_2 = arith.constant 0 : index
    %2 = vector.load %arg1[%c0_1, %c0_2] : memref<32x64xbf16, #tpu.memory_space<vmem>>, vector<32x64xbf16>
    %3 = arith.extf %2 : vector<32x64xbf16> to vector<32x64xf32>
    %cst = arith.constant dense<0.000000e+00> : vector<32x128xf32>
    %4 = tpu.matmul %3, %1, %cst {dimension_numbers = #tpu.dot_dimension_numbers<[1], [0], [0], [1], [0, 0, 1, 1], [], []>} : vector<32x64xf32>, vector<64x128xf32>, vector<32x128xf32> -> vector<32x128xf32>
    %c0_3 = arith.constant 0 : index
    %c0_4 = arith.constant 0 : index
    %5 = vector.load %arg2[%c0_3, %c0_4] : memref<32x1xf32, #tpu.memory_space<vmem>>, vector<32x1xf32>
    %6 = vector.broadcast %5 : vector<32x1xf32> to vector<32x128xf32>
    %7 = arith.addf %4, %6 : vector<32x128xf32>
    %cst_5 = arith.constant dense<0.000000e+00> : vector<32xf32>
    %8 = vector.multi_reduction <add>, %7, %cst_5 [1] : vector<32x128xf32> to vector<32xf32>
    %9 = vector.shape_cast %8 : vector<32xf32> to vector<32x1xf32>
    %10 = arith.mulf %7, %7 : vector<32x128xf32>
    %cst_6 = arith.constant dense<0.000000e+00> : vector<32xf32>
    %11 = vector.multi_reduction <add>, %10, %cst_6 [1] : vector<32x128xf32> to vector<32xf32>
    %12 = vector.shape_cast %11 : vector<32xf32> to vector<32x1xf32>
    %13 = vector.extract_strided_slice %9 {offsets = [0, 0], sizes = [8, 1], strides = [1, 1]} : vector<32x1xf32> to vector<8x1xf32>
    %cst_7 = arith.constant 0.000000e+00 : f32
    %14 = vector.broadcast %cst_7 : f32 to vector<8x1xf32>
    %15 = arith.addf %14, %13 : vector<8x1xf32>
    %16 = vector.extract_strided_slice %9 {offsets = [8, 0], sizes = [8, 1], strides = [1, 1]} : vector<32x1xf32> to vector<8x1xf32>
    %17 = arith.addf %15, %16 : vector<8x1xf32>
    %18 = vector.extract_strided_slice %9 {offsets = [16, 0], sizes = [8, 1], strides = [1, 1]} : vector<32x1xf32> to vector<8x1xf32>
    %19 = arith.addf %17, %18 : vector<8x1xf32>
    %20 = vector.extract_strided_slice %9 {offsets = [24, 0], sizes = [8, 1], strides = [1, 1]} : vector<32x1xf32> to vector<8x1xf32>
    %21 = arith.addf %19, %20 : vector<8x1xf32>
    %22 = vector.extract_strided_slice %12 {offsets = [0, 0], sizes = [8, 1], strides = [1, 1]} : vector<32x1xf32> to vector<8x1xf32>
    %cst_8 = arith.constant 0.000000e+00 : f32
    %23 = vector.broadcast %cst_8 : f32 to vector<8x1xf32>
    %24 = arith.addf %23, %22 : vector<8x1xf32>
    %25 = vector.extract_strided_slice %12 {offsets = [8, 0], sizes = [8, 1], strides = [1, 1]} : vector<32x1xf32> to vector<8x1xf32>
    %26 = arith.addf %24, %25 : vector<8x1xf32>
    %27 = vector.extract_strided_slice %12 {offsets = [16, 0], sizes = [8, 1], strides = [1, 1]} : vector<32x1xf32> to vector<8x1xf32>
    %28 = arith.addf %26, %27 : vector<8x1xf32>
    %29 = vector.extract_strided_slice %12 {offsets = [24, 0], sizes = [8, 1], strides = [1, 1]} : vector<32x1xf32> to vector<8x1xf32>
    %30 = arith.addf %28, %29 : vector<8x1xf32>
    %cst_9 = arith.constant 5.120000e+02 : f32
    %31 = vector.broadcast %cst_9 : f32 to vector<8x1xf32>
    %32 = arith.divf %21, %31 : vector<8x1xf32>
    %cst_10 = arith.constant 5.120000e+02 : f32
    %33 = vector.broadcast %cst_10 : f32 to vector<8x1xf32>
    %34 = arith.divf %30, %33 : vector<8x1xf32>
    %35 = arith.mulf %32, %32 : vector<8x1xf32>
    %36 = arith.subf %34, %35 : vector<8x1xf32>
    %cst_11 = arith.constant 0.000000e+00 : f32
    %37 = vector.broadcast %cst_11 : f32 to vector<8x1xf32>
    %38 = arith.maximumf %36, %37 : vector<8x1xf32>
    %c0_12 = arith.constant 0 : index
    %c0_13 = arith.constant 0 : index
    %39 = vector.load %arg3[%c0_12, %c0_13] : memref<8x1xf32, #tpu.memory_space<vmem>>, vector<8x1xf32>
    %cst_14 = arith.constant 9.99999974E-6 : f32
    %40 = vector.broadcast %cst_14 : f32 to vector<8x1xf32>
    %41 = arith.addf %38, %40 : vector<8x1xf32>
    %42 = math.rsqrt %41 : vector<8x1xf32>
    %43 = arith.mulf %39, %42 : vector<8x1xf32>
    %c0_15 = arith.constant 0 : index
    %c0_16 = arith.constant 0 : index
    %44 = vector.load %arg4[%c0_15, %c0_16] : memref<8x1xf32, #tpu.memory_space<vmem>>, vector<8x1xf32>
    %45 = arith.mulf %32, %43 : vector<8x1xf32>
    %46 = arith.subf %44, %45 : vector<8x1xf32>
    %47 = tpu.concatenate %43, %43, %43, %43 in 0 : vector<8x1xf32>, vector<8x1xf32>, vector<8x1xf32>, vector<8x1xf32> -> vector<32x1xf32>
    %48 = tpu.concatenate %46, %46, %46, %46 in 0 : vector<8x1xf32>, vector<8x1xf32>, vector<8x1xf32>, vector<8x1xf32> -> vector<32x1xf32>
    %49 = vector.broadcast %47 : vector<32x1xf32> to vector<32x128xf32>
    %50 = arith.mulf %7, %49 : vector<32x128xf32>
    %51 = vector.broadcast %48 : vector<32x1xf32> to vector<32x128xf32>
    %52 = arith.addf %50, %51 : vector<32x128xf32>
    %cst_17 = arith.constant 0.000000e+00 : f32
    %53 = vector.broadcast %cst_17 : f32 to vector<32x128xf32>
    %54 = arith.maximumf %52, %53 : vector<32x128xf32>
    %55 = arith.truncf %54 : vector<32x128xf32> to vector<32x128xbf16>
    %c0_18 = arith.constant 0 : index
    %c0_19 = arith.constant 0 : index
    %56 = vector.load %arg5[%c0_18, %c0_19] : memref<32x128xbf16, #tpu.memory_space<vmem>>, vector<32x128xbf16>
    tpu.vector_store %arg5[%c0_18, %c0_19], %55 {strides = array<i32>} : memref<32x128xbf16, #tpu.memory_space<vmem>>, vector<32x128xbf16>,
    return
  }
}

module attributes {stable_mosaic.version = 11 : i64} {
  func.func @_mm_act_kernel(%arg0: i32, %arg1: memref<392x256xbf16, #tpu.memory_space<vmem>>, %arg2: memref<3x392xbf16, #tpu.memory_space<vmem>>, %arg3: memref<3x1xf32, #tpu.memory_space<vmem>>, %arg4: memref<3x256xf32, #tpu.memory_space<vmem>>) attributes {dimension_semantics = [#tpu.dimension_semantics<parallel>], iteration_bounds = array<i64: 2>, scalar_prefetch = 0 : i64, scratch_operands = 0 : i64, tpu.core_type = #tpu.core_type<tc>, window_params = [{transform_indices = @transform_0, window_bounds = array<i64: 392, 256>}, {pipeline_mode = #tpu.pipeline_mode<synchronous>, transform_indices = @transform_1, window_bounds = array<i64: 3, 392>}, {pipeline_mode = #tpu.pipeline_mode<synchronous>, transform_indices = @transform_2, window_bounds = array<i64: 3, 1>}, {transform_indices = @transform_3, window_bounds = array<i64: 3, 256>}]} {
    %c0 = arith.constant 0 : index
    %c0_0 = arith.constant 0 : index
    %0 = vector.load %arg1[%c0, %c0_0] : memref<392x256xbf16, #tpu.memory_space<vmem>>, vector<392x256xbf16>
    %1 = arith.extf %0 : vector<392x256xbf16> to vector<392x256xf32>
    %c0_1 = arith.constant 0 : index
    %c0_2 = arith.constant 0 : index
    %2 = vector.load %arg2[%c0_1, %c0_2] : memref<3x392xbf16, #tpu.memory_space<vmem>>, vector<3x392xbf16>
    %3 = arith.extf %2 : vector<3x392xbf16> to vector<3x392xf32>
    %cst = arith.constant dense<0.000000e+00> : vector<3x256xf32>
    %4 = tpu.matmul %3, %1, %cst {dimension_numbers = #tpu.dot_dimension_numbers<[1], [0], [0], [1], [0, 0, 1, 1], [], []>} : vector<3x392xf32>, vector<392x256xf32>, vector<3x256xf32> -> vector<3x256xf32>
    %c0_3 = arith.constant 0 : index
    %c0_4 = arith.constant 0 : index
    %5 = vector.load %arg3[%c0_3, %c0_4] : memref<3x1xf32, #tpu.memory_space<vmem>>, vector<3x1xf32>
    %6 = vector.broadcast %5 : vector<3x1xf32> to vector<3x256xf32>
    %7 = arith.addf %4, %6 : vector<3x256xf32>
    %8 = math.tanh %7 : vector<3x256xf32>
    %c0_5 = arith.constant 0 : index
    %c0_6 = arith.constant 0 : index
    %9 = vector.load %arg4[%c0_5, %c0_6] : memref<3x256xf32, #tpu.memory_space<vmem>>, vector<3x256xf32>
    tpu.vector_store %arg4[%c0_5, %c0_6], %8 {strides = array<i32>} : memref<3x256xf32, #tpu.memory_space<vmem>>, vector<3x256xf32>,
    return
  }
  func.func @transform_0(%arg0: i32) -> (i32, i32) {
    %c0_i32 = arith.constant 0 : i32
    %c0_i32_0 = arith.constant 0 : i32
    return %c0_i32, %arg0 : i32, i32
  }
  func.func @transform_1(%arg0: i32) -> (i32, i32) {
    %c0_i32 = arith.constant 0 : i32
    %c0_i32_0 = arith.constant 0 : i32
    %c0_i32_1 = arith.constant 0 : i32
    return %c0_i32, %c0_i32_0 : i32, i32
  }
  func.func @transform_2(%arg0: i32) -> (i32, i32) {
    %c0_i32 = arith.constant 0 : i32
    %c0_i32_0 = arith.constant 0 : i32
    %c0_i32_1 = arith.constant 0 : i32
    return %c0_i32, %c0_i32_0 : i32, i32
  }
  func.func @transform_3(%arg0: i32) -> (i32, i32) {
    %c0_i32 = arith.constant 0 : i32
    %c0_i32_0 = arith.constant 0 : i32
    return %c0_i32, %arg0 : i32, i32
  }
}

</mosaic_0001>

<bundles_post_ra>
// kernel: resnet_generator_forward.12
= control target key start
LH: loop header
LB: loop body
LE: loop exit
PB: predicated region body
PF: predicated region fallthrough
CT: control target
= control target key end

     0   :  { %s312_s12 = smov 0   ;;  %s335_s0 = inlined_call_operand.vmem [shape: bf16[8,512], index: 0, kind: input, shape index: {}]   ;;  %s336_s1 = inlined_call_operand.vmem [shape: f32[8,1], index: 1, kind: input, shape index: {}]   ;;  %s337_s2 = inlined_call_operand.vmem [shape: f32[8,1], index: 2, kind: input, shape index: {}]   ;;  %s338_s3 = inlined_call_operand.vmem [shape: bf16[8,512], index: 3, kind: output, shape index: {}]  }
   0x1 LB: > { %s260_s13 = sadd.s32 4294967295, %s289_s12   ;;  %p264_p0 = scmp.ge.s32.totalorder %s289_s12, 1  ;;  %s289_s12 = sphi %s312_s12, %s13_s12  }
   0x2   : > { %p138_p1 = scmp.lt.s32.totalorder %s289_s12, 3 }
   0x4   : > { %p139_p2 = pnand %p264_p0, %p138_p1 }
   0x5   : > { %v177_v0 = vld [vmem:[%s336_s1] sm:$0xff] (!%p139_p2)  ;;  %v291_v1 = vmov (!%p139_p2), 0   ;;  %s265_s18 = sshll.u32 (!%p139_p2), %s260_s13, 1 }
   0x6   : > { %142 = sbr.rel (%p139_p2) target bundleno = 146 (0x92), region = 32  ;;  %282 = vset.pattern.permute.xlu0 (!%p139_p2), %v291_v1  ;;  %v185_v2 = vld [vmem:[%s337_s2] sm:$0xff] (!%p139_p2)  ;;  %p163_p3 = scmp.lt.s32.totalorder (!%p139_p2), %s265_s18, 3 }
   0x7   : > { %180 = vperm.xlu0 (!%p139_p2), %282, %v177_v0  }
   0xb   : > { %188 = vperm.xlu0 (!%p139_p2), %282, %v185_v2  }
   0xd   : > { %s340_s18 = smov (!%p163_p3, %s265_s18), 3 }
   0xe   : > { %s266_s19 = sshll.u32 %s340_s18, 2 }
   0xf   : > { %s166_s22 = scalar_lea.vmem %s335_s0, %s266_s19  ;;  %s172_s25 = scalar_lea.vmem %s338_s3, %s266_s19 }
  0x10   : > { %v174_v3 = vld [vmem:[%s166_s22] sm:$0xff] }
  0x11   : > { %v175_v4 = vunpack.c.l.bf16 %v174_v3  ;;  %v176_v5 = vunpack.c.h.bf16 %v174_v3 }
  0x86   : > { %v181_v6 = vpop.permute.xlu0 %180 }
  0x87   : > { %v183_v7 = vmul.f32 %v181_v6, %v175_v4  ;;  %v184_v8 = vmul.f32 %v181_v6, %v176_v5 }
  0x8a   : > { %v189_v9 = vpop.permute.xlu0 %188 }
  0x8b   : > { %v191_v10 = vadd.f32 %v189_v9, %v183_v7  ;;  %v192_v11 = vadd.f32 %v189_v9, %v184_v8 }
  0x8d   : > { %v193_v12 = vmax.f32 %v191_v10, 0.0  ;;  %v194_v13 = vmax.f32 %v192_v11, 0.0 }
  0x8f   : > { %v272_v14 = vpack.c.bf16 %v194_v13, %v193_v12 }
  0x91   : > { %203 = vst [vmem:[%s172_s25] sm:$0xff] %v272_v14 }
  0x92 PF: > { %s13_s12 = sadd.s32 1, %s289_s12  }
  0x93   : > { %p10_p4 = scmp.ge.s32.totalorder %s13_s12, 4  }
  0x95   :  { %12 = sbr.rel (!%p10_p4) target bundleno = 1 (0x1), region = 62 }

// kernel: resnet_generator_forward.11
= control target key start
LH: loop header
LB: loop body
LE: loop exit
PB: predicated region body
PF: predicated region fallthrough
CT: control target
= control target key end

     0   :  { %s766_s18 = smov 0   ;;  %s768_s19 = smov 0   ;;  %s910_s0 = inlined_call_operand.vmem [shape: bf16[147,512], index: 0, kind: input, shape index: {}]   ;;  %s911_s1 = inlined_call_operand.vmem [shape: bf16[8,147], index: 1, kind: input, shape index: {}]   ;;  %s912_s2 = inlined_call_operand.vmem [shape: f32[8,1], index: 2, kind: input, shape index: {}]   ;;  %s913_s3 = inlined_call_operand.vmem [shape: bf16[8,512], index: 3, kind: output, shape index: {0}]   ;;  %s914_s4 = inlined_call_operand.vmem [shape: f32[8,1], index: 4, kind: output, shape index: {1}]   ;;  %s915_s5 = inlined_call_operand.vmem [shape: f32[8,1], index: 5, kind: output, shape index: {2}]  }
   0x1   :  { %s770_s20 = smov 0  }
   0x2 LB: > { %s582_s21 = sadd.s32 4294967295, %s732_s20   ;;  %s783_s22 = sadd.s32 1, %s732_s20   ;;  %s732_s20 = sphi %s770_s20, %s918_s20   ;;  %s728_s19 = sphi %s768_s19, %s917_s19   ;;  %s724_s18 = sphi %s766_s18, %s916_s18  }
   0x3   : > { %s20_s23 = ssub.s32 %s732_s20, %s783_s22  ;;  %s23_s24 = sadd.s32 1, %s728_s19 }
   0x4   : > { %p21_p0 = scmp.eq.s32.totalorder %s20_s23, 0  ;;  %p30_p1 = scmp.ne.s32.totalorder %s728_s19, %s724_s18 }
   0x5   : > { %p31_p2 = scmp.eq.s32.totalorder %s732_s20, 0  ;;  %p585_p4 = scmp.ge.s32.totalorder %s732_s20, 2 }
   0x6   : > { %s792_s25 = scalar_select %p21_p0, %s728_s19, %s23_s24  }
   0x7   : > { %p32_p3 = por %p31_p2, %p30_p1  ;;  %172 = sbr.rel (%p585_p4) target bundleno = 28 (0x1c), region = 24 }
   0xe   : > { %175 = sbr.rel (!%p32_p3) target bundleno = 28 (0x1c), region = 28  ;;  %s177_s26 = sand.u32 (%p32_p3), 1, %s728_s19  }
   0xf   : > { %s598_s27 = sshll.u32 (%p32_p3), %s732_s20, 3  ;;  %s654_s28 = smul.u32 (%p32_p3), 152, %s177_s26 }
  0x10   : > { %s800_s6 = scalar_lea.vmem (%p32_p3), %s910_s0, %s598_s27 }
  0x11   : > { %v246_v0 = vld [vmem:[%s800_s6] sm:$0xff] (%p32_p3)  ;;  %v248_v1 = vld [vmem:[%s800_s6 + $0x10] sm:$0xff] (%p32_p3)  ;;  %s808_s7 = scalar_lea.vmem (%p32_p3), [#allocation2], %s654_s28 }
  0x12   : > { %v250_v2 = vld [vmem:[%s800_s6 + $0x20] sm:$0xff] (%p32_p3)  ;;  %v252_v3 = vld [vmem:[%s800_s6 + $0x30] sm:$0xff] (%p32_p3)  ;;  %247 = vst [vmem:[%s808_s7] sm:$0xff] (%p32_p3), %v246_v0  ;;  %249 = vst [vmem:[%s808_s7 + $0x8] sm:$0xff] (%p32_p3), %v248_v1 }
  0x13   : > { %v254_v4 = vld [vmem:[%s800_s6 + $0x40] sm:$0xff] (%p32_p3)  ;;  %v256_v5 = vld [vmem:[%s800_s6 + $0x50] sm:$0xff] (%p32_p3)  ;;  %251 = vst [vmem:[%s808_s7 + $0x10] sm:$0xff] (%p32_p3), %v250_v2  ;;  %253 = vst [vmem:[%s808_s7 + $0x18] sm:$0xff] (%p32_p3), %v252_v3 }
  0x14   : > { %255 = vst [vmem:[%s808_s7 + $0x20] sm:$0xff] (%p32_p3), %v254_v4  ;;  %257 = vst [vmem:[%s808_s7 + $0x28] sm:$0xff] (%p32_p3), %v256_v5  ;;  %v258_v6 = vld [vmem:[%s800_s6 + $0x60] sm:$0xff] (%p32_p3)  ;;  %v260_v7 = vld [vmem:[%s800_s6 + $0x70] sm:$0xff] (%p32_p3) }
  0x15   : > { %v262_v8 = vld [vmem:[%s800_s6 + $0x80] sm:$0xff]  ;;  %259 = vst [vmem:[%s808_s7 + $0x30] sm:$0xff] %v258_v6  ;;  %261 = vst [vmem:[%s808_s7 + $0x38] sm:$0xff] %v260_v7  ;;  %v264_v9 = vld [vmem:[%s800_s6 + $0x90] sm:$0xff] }
  0x16   : > { %263 = vst [vmem:[%s808_s7 + $0x40] sm:$0xff] %v262_v8  ;;  %v266_v10 = vld [vmem:[%s800_s6 + $0xa0] sm:$0xff]  ;;  %v268_v11 = vld [vmem:[%s800_s6 + $0xb0] sm:$0xff]  ;;  %265 = vst [vmem:[%s808_s7 + $0x48] sm:$0xff] %v264_v9 }
  0x17   : > { %267 = vst [vmem:[%s808_s7 + $0x50] sm:$0xff] %v266_v10  ;;  %269 = vst [vmem:[%s808_s7 + $0x58] sm:$0xff] %v268_v11  ;;  %v270_v12 = vld [vmem:[%s800_s6 + $0xc0] sm:$0xff]  ;;  %v272_v13 = vld [vmem:[%s800_s6 + $0xd0] sm:$0xff] }
  0x18   : > { %v274_v14 = vld [vmem:[%s800_s6 + $0xe0] sm:$0xff]  ;;  %271 = vst [vmem:[%s808_s7 + $0x60] sm:$0xff] %v270_v12  ;;  %273 = vst [vmem:[%s808_s7 + $0x68] sm:$0xff] %v272_v13  ;;  %v276_v15 = vld [vmem:[%s800_s6 + $0xf0] sm:$0xff] }
  0x19   : > { %275 = vst [vmem:[%s808_s7 + $0x70] sm:$0xff] %v274_v14  ;;  %v278_v16 = vld [vmem:[%s800_s6 + $0x100] sm:$0xff]  ;;  %v280_v17 = vld [vmem:[%s800_s6 + $0x110] sm:$0xff]  ;;  %277 = vst [vmem:[%s808_s7 + $0x78] sm:$0xff] %v276_v15 }
  0x1a   : > { %279 = vst [vmem:[%s808_s7 + $0x80] sm:$0xff] %v278_v16  ;;  %281 = vst [vmem:[%s808_s7 + $0x88] sm:$0xff] %v280_v17  ;;  %v282_v18 = vld [vmem:[%s800_s6 + $0x120] sm:$0xff] }
  0x1b   : > { %283 = vst [vmem:[%s808_s7 + $0x90] sm:$0xff] %v282_v18 }
  0x1c PF: > { %p588_p5 = scmp.ge.s32.totalorder %s732_s20, 1  ;;  %p288_p6 = scmp.lt.s32.totalorder %s732_s20, 3 }
  0x1e   : > { %p289_p7 = pnand %p588_p5, %p288_p6 }
  0x1f   : > { %s295_s8 = sand.u32 (!%p289_p7), 1, %s724_s18   ;;  %s589_s9 = sshll.u32 (!%p289_p7), %s582_s21, 1 }
  0x20   : > { %292 = sbr.rel (%p289_p7) target bundleno = 449 (0x1c1), region = 66  ;;  %p324_p8 = scmp.lt.s32.totalorder (!%p289_p7), %s589_s9, 3 }
  0x21   : > { %s655_s10 = smul.u32 (!%p289_p7), 152, %s295_s8  ;;  %p591_p9 = scmp.ne.s32.totalorder (!%p289_p7), %s582_s21, 0 }
  0x23   : > { %s852_s15 = scalar_lea.vmem (!%p289_p7), [#allocation2], %s655_s10 }
  0x27   : > { %s920_s9 = smov (!%p324_p8, %s589_s9), 3  ;;  %332 = sbr.rel (%p591_p9) target bundleno = 46 (0x2e), region = 74 }
  0x28   : > { %s590_s11 = sshll.u32 %s920_s9, 2  ;;  %vm333_vm0 = vcmask (!%p591_p9), 7168   ;;  %v734_v19 = vmov (!%p591_p9), 0.0  }
  0x29   : > { %s850_s14 = scalar_lea.vmem %s913_s3, %s590_s11  ;;  %334 = vst.msk [vmem:[%s914_s4] sm:$0xff] (!%p591_p9), %vm333_vm0, %v734_v19  ;;  %335 = vst.msk [vmem:[%s915_s5] sm:$0xff] (!%p591_p9), %vm333_vm0, %v734_v19 }
  0x2e PF: > { %v683_v20 = vld [vmem:[%s852_s15 + $0x4] ss:$8 sps:$4 sm:$0xff]   ;;  %v685_v21 = vld [vmem:[%s852_s15] ss:$8 sps:$4 sm:$0xff]   ;;  %v686_v22 = vld [vmem:[%s852_s15 + $0x14] ss:$8 sps:$4 sm:$0xff]  }
  0x2f   : > { %601 = vmatprep.subr.bf16.mxu0 %v683_v20  ;;  %v735_v23 = vmov 0   ;;  %v688_v24 = vld [vmem:[%s852_s15 + $0x10] ss:$8 sps:$4 sm:$0xff]   ;;  %v689_v25 = vld [vmem:[%s852_s15 + $0x24] ss:$8 sps:$4 sm:$0xff]   ;;  %vm402_vm1 = vcmask 154624  }
  0x30   : > { %682 = vset.pattern.permute.xlu0 %v735_v23  ;;  %603 = vmatpush1.bf16.msra.mxu0 %v685_v21  ;;  %v691_v26 = vld [vmem:[%s852_s15 + $0x20] ss:$8 sps:$4 sm:$0xff]   ;;  %v692_v27 = vld [vmem:[%s852_s15 + $0x34] ss:$8 sps:$4 sm:$0xff]   ;;  %v694_v28 = vld [vmem:[%s852_s15 + $0x30] ss:$8 sps:$4 sm:$0xff]  }
  0x31   : > { %605 = vmatprep.subr.bf16.mxu0 %v686_v22  ;;  %v695_v29 = vld [vmem:[%s852_s15 + $0x44] ss:$8 sps:$4 sm:$0xff]   ;;  %v697_v33 = vld [vmem:[%s852_s15 + $0x40] ss:$8 sps:$4 sm:$0xff]   ;;  %v698_v34 = vld [vmem:[%s852_s15 + $0x54] ss:$8 sps:$4 sm:$0xff]  }
  0x32   : > { %v393_v30 = vld [vmem:[%s911_s1] sm:$0xff]  ;;  %v700_v35 = vld [vmem:[%s852_s15 + $0x50] ss:$8 sps:$4 sm:$0xff]   ;;  %v704_v38 = vld [vmem:[%s852_s15 + $0x74] ss:$8 sps:$4 sm:$0xff]   ;;  %vm406_vm2 = vcmask 1042432  }
  0x33   : > { %v396_v31 = vld [vmem:[%s912_s2] sm:$0xff]  ;;  %v395_v32 = vunpack.c.h.bf16 %v393_v30  ;;  %v706_v39 = vld [vmem:[%s852_s15 + $0x70] ss:$8 sps:$4 sm:$0xff]   ;;  %v394_v45 = vunpack.c.l.bf16 %v393_v30  ;;  %vm498_vm3 = vcmask 7168  }
  0x34   : > { %607 = vmatpush1.bf16.msra.mxu0 %v688_v24  ;;  %399 = vperm.xlu0 %682, %v396_v31   ;;  %v701_v36 = vld [vmem:[%s852_s15 + $0x64] ss:$8 sps:$4 sm:$0xff]   ;;  %v703_v37 = vld [vmem:[%s852_s15 + $0x60] ss:$8 sps:$4 sm:$0xff]   ;;  %v354_v41 = vld [vmem:[%s852_s15 + $0x90] sm:$0x33] }
  0x35   : > { %609 = vmatprep.subr.bf16.mxu0 %v689_v25  ;;  %594 = vmatprep.mubr.msk.f32.mxu0 %vm402_vm1, %v395_v32  ;;  %v707_v40 = vld [vmem:[%s852_s15 + $0x84] ss:$8 sps:$4 sm:$0xff]   ;;  %v709_v42 = vld [vmem:[%s852_s15 + $0x80] ss:$8 sps:$4 sm:$0xff]   ;;  %v392_v43 = vunpack.c.h.bf16 %v354_v41  ;;  %v391_v44 = vunpack.c.l.bf16 %v354_v41 }
  0x36   : > { %v493_v56 = vld [vmem:[%s914_s4] sm:$0xff] }
  0x37   : > { %v500_v58 = vld [vmem:[%s915_s5] sm:$0xff] }
  0x38   : > { %611 = vmatpush1.bf16.msra.mxu0 %v691_v26 }
  0x39   : > { %613 = vmatprep.subr.bf16.mxu0 %v692_v27 }
  0x3c   : > { %615 = vmatpush1.bf16.msra.mxu0 %v694_v28 }
  0x3d   : > { %617 = vmatprep.subr.bf16.mxu0 %v695_v29 }
  0x40   : > { %619 = vmatpush1.bf16.msra.mxu0 %v697_v33 }
  0x41   : > { %621 = vmatprep.subr.bf16.mxu0 %v698_v34 }
  0x44   : > { %623 = vmatpush1.bf16.msra.mxu0 %v700_v35 }
  0x45   : > { %625 = vmatprep.subr.bf16.mxu0 %v701_v36 }
  0x48   : > { %627 = vmatpush1.bf16.msra.mxu0 %v703_v37 }
  0x49   : > { %629 = vmatprep.subr.bf16.mxu0 %v704_v38 }
  0x4c   : > { %631 = vmatpush1.bf16.msra.mxu0 %v706_v39 }
  0x4d   : > { %633 = vmatprep.subr.bf16.mxu0 %v707_v40 }
  0x50   : > { %635 = vmatpush1.bf16.msra.mxu0 %v709_v42 }
  0x51   : > { %592 = vmatprep.subr.msk.mxu0 %vm406_vm2, %v392_v43 }
  0x54   : > { %593 = vmatpush1.msk.msra.mxu0 %vm406_vm2, %v391_v44 }
  0x55   : > { %478 = vmatmul.mubr.f32.vlgmr.msra.gmra.mrb[0].mxu0 %v394_v45 }
  0xb3   : > { %v400_v46 = vpop.permute.xlu0 %399 }
 0x128   : > { %v479_v47 = vpop.f32.mrb[0].mxu0 }
 0x129   : > { %v480_v48 = vadd.f32 %v479_v47, %v400_v46  ;;  %v481_v49 = vpop.f32.mrb[1].mxu0 }
 0x12a   : > { %v482_v50 = vadd.f32 %v481_v49, %v400_v46 }
 0x12b   : > { %v501_v51 = vmul.f32 %v480_v48, %v480_v48 }
 0x12c   : > { %v599_v52 = vpack.c.bf16 %v482_v50, %v480_v48  ;;  %v494_v53 = vadd.f32 %v482_v50, %v480_v48  ;;  %v502_v54 = vmul.f32 %v482_v50, %v482_v50 }
 0x12e   : > { %492 = vst [vmem:[%s850_s14] sm:$0xff] %v599_v52  ;;  %495 = vadd.xlane.f32.xlu0 %v494_v53  ;;  %v503_v55 = vadd.f32 %v502_v54, %v501_v51 }
 0x130   : > { %504 = vadd.xlane.f32.xlu1 %v503_v55 }
 0x1bb   : > { %v496_v57 = vpop.xlane.xlu0 %495 }
 0x1bc   : > { %v497_v59 = vadd.f32 %v496_v57, %v493_v56 }
 0x1bd   : > { %v505_v60 = vpop.xlane.xlu1 %504 }
 0x1be   : > { %499 = vst.msk [vmem:[%s914_s4] sm:$0xff] %vm498_vm3, %v497_v59  ;;  %v506_v61 = vadd.f32 %v505_v60, %v500_v58 }
 0x1c0   : > { %507 = vst.msk [vmem:[%s915_s5] sm:$0xff] %vm498_vm3, %v506_v61 }
 0x1c1 PF: > { %p13_p10 = scmp.ge.s32.totalorder %s783_s22, 4   ;;  %s916_s18 = smov %s728_s19 }
 0x1c2   : > { %s917_s19 = smov %s792_s25  ;;  %s918_s20 = smov %s783_s22 }
 0x1c3   :  { %15 = sbr.rel (!%p13_p10) target bundleno = 2 (0x2), region = 125 }

// kernel: resnet_generator_forward.13
= control target key start
LH: loop header
LB: loop body
LE: loop exit
PB: predicated region body
PF: predicated region fallthrough
CT: control target
= control target key end

     0   :  { %v300_v2 = vmov 0   ;;  %vm54_vm0 = vcmask 588800   ;;  %s372_s0 = inlined_call_operand.vmem [shape: bf16[72,128], index: 0, kind: input, shape index: {}]   ;;  %s373_s1 = inlined_call_operand.vmem [shape: bf16[16,72], index: 1, kind: input, shape index: {}]   ;;  %s374_s2 = inlined_call_operand.vmem [shape: f32[16,1], index: 2, kind: input, shape index: {}]   ;;  %s375_s3 = inlined_call_operand.vmem [shape: f32[16,1], index: 3, kind: input, shape index: {}]   ;;  %s376_s4 = inlined_call_operand.vmem [shape: f32[16,1], index: 4, kind: input, shape index: {}]   ;;  %s377_s5 = inlined_call_operand.vmem [shape: bf16[16,128], index: 5, kind: output, shape index: {}]  }
   0x1   :  { %v218_v0 = vld [vmem:[%s372_s0] sm:$0xff]   ;;  %v242_v1 = vld [vmem:[%s372_s0 + $0x8] sm:$0xff]   ;;  %294 = vset.pattern.permute.xlu0 %v300_v2  ;;  %295 = vset.pattern.permute.xlu1 %v300_v2  ;;  %v243_v6 = vld [vmem:[%s372_s0 + $0x10] sm:$0xff]  }
   0x2   :  { %278 = vmatprep.subr.bf16.mxu0 %v218_v0  ;;  %v234_v3 = vld [vmem:[%s373_s1] sm:$0xff]   ;;  %v43_v7 = vld [vmem:[%s374_s2 + $0x8] sm:$0xff]  ;;  %v244_v8 = vld [vmem:[%s372_s0 + $0x18] sm:$0xff]  }
   0x3   :  { %280 = vmatpush3.bf16.msra.mxu0 %v218_v0  ;;  %v235_v4 = vunpack.c.l.bf16 %v234_v3  ;;  %v42_v5 = vld [vmem:[%s374_s2] sm:$0xff]  ;;  %v236_v11 = vunpack.c.h.bf16 %v234_v3  ;;  %v158_v38 = vld [vmem:[%s375_s3 + $0x8] sm:$0xff] }
   0x4   :  { %282 = vmatprep.subr.bf16.mxu0 %v242_v1  ;;  %46 = vperm.xlu0 %294, %v42_v5   ;;  %v28_v9 = vld [vmem:[%s372_s0 + $0x20] sm:$0xf]  ;;  %v166_v46 = vld [vmem:[%s376_s4 + $0x8] sm:$0xff] }
   0x5   :  { %274 = vmatprep.mubr.msk.f32.mxu0 %vm54_vm0, %v235_v4  ;;  %v37_v10 = vunpack.c.l.bf16 %v28_v9  ;;  %v157_v37 = vld [vmem:[%s375_s3] sm:$0xff] }
   0x6   :  { %v165_v43 = vld [vmem:[%s376_s4] sm:$0xff] }
   0x7   :  { %284 = vmatpush3.bf16.msra.mxu0 %v242_v1 }
   0x8   :  { %286 = vmatprep.subr.bf16.mxu0 %v243_v6  ;;  %51 = vperm.xlu0 %294, %v43_v7  }
   0xb   :  { %288 = vmatpush3.bf16.msra.mxu0 %v243_v6 }
   0xc   :  { %290 = vmatprep.subr.bf16.mxu0 %v244_v8 }
   0xf   :  { %292 = vmatpush3.bf16.msra.mxu0 %v244_v8 }
  0x10   :  { %272 = vmatprep.subr.mxu0 %v37_v10 }
  0x13   :  { %273 = vmatpush3.msra.mxu0 %v37_v10 }
  0x14   :  { %275 = vmatmul.mubr.msk.f32.vlgmr.msra.gmra.mrb[0].mxu0 %vm54_vm0, %v236_v11 }
  0x83   :  { %v47_v12 = vpop.permute.xlu0 %46 }
  0x87   :  { %v52_v13 = vpop.permute.xlu0 %51 }
  0xe7   :  { %v276_v14 = vpop.f32.mrb[0].mxu0 }
  0xe8   :  { %v133_v15 = vadd.f32 %v276_v14, %v52_v13  ;;  %v127_v16 = vpop.f32.mrb[1].mxu0 }
  0xe9   :  { %v128_v17 = vadd.f32 %v127_v16, %v47_v12 }
  0xea   :  { %138 = vadd.xlane.f32.xlu1 %v133_v15  ;;  %v141_v19 = vmul.f32 %v133_v15, %v133_v15 }
  0xeb   :  { %v140_v18 = vmul.f32 %v128_v17, %v128_v17 }
  0xed   :  { %142 = vadd.xlane.f32.xlu0 %v140_v18 }
  0xee   :  { %136 = vadd.xlane.f32.xlu1 %v128_v17 }
  0xf2   :  { %144 = vadd.xlane.f32.xlu1 %v141_v19 }
 0x177   :  { %v139_v20 = vpop.xlane.xlu1 %138 }
 0x178   :  { %v148_v23 = vmul.f32 0.0078125, %v139_v20 }
 0x17a   :  { %v143_v21 = vpop.xlane.xlu0 %142  ;;  %v152_v28 = vmul.f32 %v148_v23, %v148_v23 }
 0x17b   :  { %v137_v22 = vpop.xlane.xlu1 %136  ;;  %v149_v25 = vmul.f32 0.0078125, %v143_v21 }
 0x17c   :  { %v147_v24 = vmul.f32 0.0078125, %v137_v22 }
 0x17e   :  { %v151_v26 = vmul.f32 %v147_v24, %v147_v24 }
 0x17f   :  { %v145_v27 = vpop.xlane.xlu1 %144 }
 0x180   :  { %v153_v29 = vsub.f32 %v149_v25, %v151_v26  ;;  %v150_v30 = vmul.f32 0.0078125, %v145_v27 }
 0x182   :  { %v155_v31 = vmax.f32 %v153_v29, 0.0  ;;  %v154_v32 = vsub.f32 %v150_v30, %v152_v28 }
 0x184   :  { %v159_v33 = vadd.f32 1e-05, %v155_v31  ;;  %v156_v34 = vmax.f32 %v154_v32, 0.0 }
 0x186   :  { %296 = vrsqrt.f32 %v159_v33  ;;  %v160_v35 = vadd.f32 1e-05, %v156_v34 }
 0x188   :  { %298 = vrsqrt.f32 %v160_v35 }
 0x190   :  { %v297_v36 = vpop.eup %296 }
 0x191   :  { %v163_v40 = vmul.f32 %v297_v36, %v157_v37 }
 0x192   :  { %v299_v39 = vpop.eup %298 }
 0x193   :  { %v164_v41 = vmul.f32 %v299_v39, %v158_v38  ;;  %v167_v42 = vmul.f32 %v163_v40, %v147_v24 }
 0x195   :  { %178 = vperm.xlu1 %295, %v164_v41   ;;  %v169_v44 = vsub.f32 %v165_v43, %v167_v42  ;;  %v168_v45 = vmul.f32 %v164_v41, %v148_v23 }
 0x197   :  { %v170_v47 = vsub.f32 %v166_v46, %v168_v45 }
 0x199   :  { %173 = vperm.xlu1 %295, %v163_v40  }
 0x19d   :  { %185 = vperm.xlu1 %295, %v169_v44  }
 0x1a1   :  { %190 = vperm.xlu1 %295, %v170_v47  }
 0x214   :  { %v179_v48 = vpop.permute.xlu1 %178 }
 0x215   :  { %v182_v52 = vmul.f32 %v179_v48, %v133_v15 }
 0x218   :  { %v174_v49 = vpop.permute.xlu1 %173 }
 0x219   :  { %v181_v51 = vmul.f32 %v174_v49, %v128_v17 }
 0x21c   :  { %v186_v50 = vpop.permute.xlu1 %185 }
 0x21d   :  { %v193_v53 = vadd.f32 %v186_v50, %v181_v51 }
 0x21f   :  { %v195_v56 = vmax.f32 %v193_v53, 0.0 }
 0x220   :  { %v191_v54 = vpop.permute.xlu1 %190 }
 0x221   :  { %v194_v55 = vadd.f32 %v191_v54, %v182_v52 }
 0x223   :  { %v196_v57 = vmax.f32 %v194_v55, 0.0 }
 0x225   :  { %v240_v58 = vpack.c.bf16 %v196_v57, %v195_v56 }
 0x227   :  { %241 = vst [vmem:[%s377_s5] sm:$0xff] %v240_v58  }

// kernel: resnet_generator_forward.14
= control target key start
LH: loop header
LB: loop body
LE: loop exit
PB: predicated region body
PF: predicated region fallthrough
CT: control target
= control target key end

     0   :  { %v458_v0 = vmov 0.0|0.0   ;;  %v459_v5 = vmov 0   ;;  %vm92_vm0 = vcmask 130048   ;;  %vm190_vm1 = vcmask 261120   ;;  %s617_s0 = inlined_call_operand.vmem [shape: bf16[144,32], index: 0, kind: input, shape index: {}]   ;;  %s618_s1 = inlined_call_operand.vmem [shape: bf16[32,144], index: 1, kind: input, shape index: {}]   ;;  %s619_s2 = inlined_call_operand.vmem [shape: f32[32,1], index: 2, kind: input, shape index: {}]   ;;  %s620_s3 = inlined_call_operand.vmem [shape: f32[32,1], index: 3, kind: input, shape index: {}]   ;;  %s621_s4 = inlined_call_operand.vmem [shape: f32[32,1], index: 4, kind: input, shape index: {}]   ;;  %s622_s5 = inlined_call_operand.vmem [shape: bf16[32,32], index: 5, kind: output, shape index: {}]  }
   0x1   :  { %401 = vmatprep.subr.bf16.mxu0 %v458_v0  ;;  %428 = vmatprep.subr.bf16.mxu1 %v458_v0  ;;  %v358_v1 = vld [vmem:[%s617_s0] sm:$0xff]   ;;  %v393_v2 = vld [vmem:[%s617_s0 + $0x8] sm:$0xff]   ;;  %v58_v4 = vld [vmem:[%s618_s1 + $0x10] sm:$0xff]  ;;  %vm336_vm2 = vcmask 257024  }
   0x2   :  { %403 = vmatpush1.bf16.msra.mxu0 %v358_v1  ;;  %437 = vmatpush1.bf16.msra.mxu1 %v358_v1  ;;  %v56_v3 = vld [vmem:[%s618_s1] sm:$0xff]  ;;  %v65_v7 = vunpack.c.h.bf16 %v58_v4  ;;  %v70_v9 = vld [vmem:[%s619_s2 + $0x10] sm:$0xff]  ;;  %v69_v11 = vld [vmem:[%s619_s2 + $0x8] sm:$0xff]  ;;  %v64_v22 = vunpack.c.l.bf16 %v58_v4 }
   0x3   :  { %404 = vmatprep.subr.bf16.mxu0 %v458_v0  ;;  %429 = vmatprep.subr.bf16.mxu1 %v458_v0  ;;  %v61_v6 = vunpack.c.h.bf16 %v56_v3  ;;  %v68_v8 = vld [vmem:[%s619_s2] sm:$0xff]  ;;  %v394_v10 = vld [vmem:[%s617_s0 + $0x10] sm:$0xff]   ;;  %v71_v12 = vld [vmem:[%s619_s2 + $0x18] sm:$0xff]  ;;  %v60_v21 = vunpack.c.l.bf16 %v56_v3 }
   0x4   :  { %448 = vset.pattern.permute.xlu0 %v459_v5  ;;  %449 = vset.pattern.permute.xlu1 %v459_v5  ;;  %v395_v13 = vld [vmem:[%s617_s0 + $0x18] sm:$0xff]   ;;  %v396_v14 = vld [vmem:[%s617_s0 + $0x20] sm:$0xff]   ;;  %v397_v15 = vld [vmem:[%s617_s0 + $0x28] sm:$0xff]  }
   0x5   :  { %345 = vmatprep.mubr.msk.f32.mxu0 %vm92_vm0, %v61_v6  ;;  %347 = vmatprep.mubr.msk.f32.mxu1 %vm92_vm0, %v65_v7  ;;  %v398_v16 = vld [vmem:[%s617_s0 + $0x30] sm:$0xff]   ;;  %v399_v17 = vld [vmem:[%s617_s0 + $0x38] sm:$0xff]   ;;  %v400_v18 = vld [vmem:[%s617_s0 + $0x40] sm:$0xff]  }
   0x6   :  { %406 = vmatpush1.bf16.msra.mxu0 %v393_v2  ;;  %438 = vmatpush1.bf16.msra.mxu1 %v393_v2  ;;  %v57_v19 = vld [vmem:[%s618_s1 + $0x8] sm:$0xff]  ;;  %v59_v20 = vld [vmem:[%s618_s1 + $0x18] sm:$0xff] }
   0x7   :  { %407 = vmatprep.subr.bf16.mxu0 %v458_v0  ;;  %430 = vmatprep.subr.bf16.mxu1 %v458_v0  ;;  %v63_v23 = vunpack.c.h.bf16 %v57_v19  ;;  %v67_v24 = vunpack.c.h.bf16 %v59_v20  ;;  %v62_v25 = vunpack.c.l.bf16 %v57_v19  ;;  %v66_v26 = vunpack.c.l.bf16 %v59_v20 }
   0x8   :  { %74 = vperm.xlu0 %448, %v68_v8   ;;  %84 = vperm.xlu1 %449, %v70_v9  }
   0xa   :  { %409 = vmatpush1.bf16.msra.mxu0 %v394_v10  ;;  %439 = vmatpush1.bf16.msra.mxu1 %v394_v10 }
   0xb   :  { %410 = vmatprep.subr.bf16.mxu0 %v458_v0  ;;  %431 = vmatprep.subr.bf16.mxu1 %v458_v0 }
   0xc   :  { %79 = vperm.xlu0 %448, %v69_v11   ;;  %89 = vperm.xlu1 %449, %v71_v12  }
   0xe   :  { %412 = vmatpush1.bf16.msra.mxu0 %v395_v13  ;;  %440 = vmatpush1.bf16.msra.mxu1 %v395_v13 }
   0xf   :  { %413 = vmatprep.subr.bf16.mxu0 %v458_v0  ;;  %432 = vmatprep.subr.bf16.mxu1 %v458_v0 }
  0x12   :  { %415 = vmatpush1.bf16.msra.mxu0 %v396_v14  ;;  %441 = vmatpush1.bf16.msra.mxu1 %v396_v14 }
  0x13   :  { %416 = vmatprep.subr.bf16.mxu0 %v458_v0  ;;  %433 = vmatprep.subr.bf16.mxu1 %v458_v0 }
  0x16   :  { %418 = vmatpush1.bf16.msra.mxu0 %v397_v15  ;;  %442 = vmatpush1.bf16.msra.mxu1 %v397_v15 }
  0x17   :  { %419 = vmatprep.subr.bf16.mxu0 %v458_v0  ;;  %434 = vmatprep.subr.bf16.mxu1 %v458_v0 }
  0x1a   :  { %421 = vmatpush1.bf16.msra.mxu0 %v398_v16  ;;  %443 = vmatpush1.bf16.msra.mxu1 %v398_v16 }
  0x1b   :  { %422 = vmatprep.subr.bf16.mxu0 %v458_v0  ;;  %435 = vmatprep.subr.bf16.mxu1 %v458_v0 }
  0x1e   :  { %424 = vmatpush1.bf16.msra.mxu0 %v399_v17  ;;  %444 = vmatpush1.bf16.msra.mxu1 %v399_v17 }
  0x1f   :  { %425 = vmatprep.subr.bf16.mxu0 %v458_v0  ;;  %436 = vmatprep.subr.bf16.mxu1 %v458_v0 }
  0x22   :  { %427 = vmatpush1.bf16.msra.mxu0 %v400_v18  ;;  %445 = vmatpush1.bf16.msra.mxu1 %v400_v18 }
  0x25   :  { %170 = vmatmul.mubr.f32.vlgmr.msra.gmra.mrb[0].mxu0 %v60_v21  ;;  %180 = vmatmul.mubr.f32.vlgmr.msra.gmra.mrb[0].mxu1 %v64_v22  ;;  %v240_v21 = vld [vmem:[%s620_s3] sm:$0xff] }
  0x26   :  { %346 = vmatprep.mubr.msk.f32.mxu0 %vm92_vm0, %v63_v23  ;;  %348 = vmatprep.mubr.msk.f32.mxu1 %vm92_vm0, %v67_v24 }
  0x29   :  { %175 = vmatmul.mubr.f32.gmra.mrb[2].mxu0 %v62_v25  ;;  %185 = vmatmul.mubr.f32.gmra.mrb[2].mxu1 %v66_v26  ;;  %v242_v26 = vld [vmem:[%s620_s3 + $0x10] sm:$0xff] }
  0x87   :  { %v75_v27 = vpop.permute.xlu0 %74  ;;  %v85_v28 = vpop.permute.xlu1 %84 }
  0x8b   :  { %v80_v35 = vpop.permute.xlu0 %79  ;;  %v90_v36 = vpop.permute.xlu1 %89 }
  0xf8   :  { %v171_v29 = vpop.f32.mrb[0].mxu0  ;;  %v181_v30 = vpop.f32.mrb[0].mxu1 }
  0xf9   :  { %v545_v31 = vadd.f32 %v171_v29, %v75_v27  ;;  %v173_v32 = vpop.f32.mrb[1].mxu0  ;;  %v547_v33 = vadd.f32 %v181_v30, %v85_v28  ;;  %v183_v34 = vpop.f32.mrb[1].mxu1  ;;  %v241_v28 = vld [vmem:[%s620_s3 + $0x8] sm:$0xff] }
  0xfb   :  { %v191_v37 = vsel %vm190_vm1, %v545_v31, 0.0  ;;  %v203_v38 = vmul.f32 %v545_v31, %v545_v31  ;;  %v197_v45 = vsel %vm190_vm1, %v547_v33, 0.0  ;;  %v205_v48 = vmul.f32 %v547_v33, %v547_v33 }
  0xfc   :  { %v176_v39 = vpop.f32.mrb[2].mxu0  ;;  %v186_v40 = vpop.f32.mrb[2].mxu1  ;;  %192 = vadd.xlane.f32.xlu0 %v191_v37 }
  0xfd   :  { %v553_v41 = vadd.f32 %v176_v39, %v80_v35  ;;  %v207_v42 = vsel %vm190_vm1, %v203_v38, 0.0  ;;  %v178_v43 = vpop.f32.mrb[3].mxu0  ;;  %v188_v44 = vpop.f32.mrb[3].mxu1  ;;  %v558_v46 = vadd.f32 %v186_v40, %v90_v36  ;;  %v213_v51 = vsel %vm190_vm1, %v205_v48, 0.0  ;;  %v256_v35 = vld [vmem:[%s621_s4] sm:$0xff]  ;;  %v243_v36 = vld [vmem:[%s620_s3 + $0x18] sm:$0xff] }
  0xfe   :  { %208 = vadd.xlane.f32.xlu1 %v207_v42  ;;  %v258_v43 = vld [vmem:[%s621_s4 + $0x10] sm:$0xff]  ;;  %v257_v44 = vld [vmem:[%s621_s4 + $0x8] sm:$0xff] }
  0xff   :  { %v194_v47 = vsel %vm190_vm1, %v553_v41, 0.0  ;;  %v200_v49 = vsel %vm190_vm1, %v558_v46, 0.0  ;;  %v204_v50 = vmul.f32 %v553_v41, %v553_v41  ;;  %v206_v53 = vmul.f32 %v558_v46, %v558_v46 }
 0x100   :  { %198 = vadd.xlane.f32.xlu0 %v197_v45 }
 0x101   :  { %v210_v52 = vsel %vm190_vm1, %v204_v50, 0.0  ;;  %v216_v54 = vsel %vm190_vm1, %v206_v53, 0.0 }
 0x102   :  { %195 = vadd.xlane.f32.xlu1 %v194_v47 }
 0x104   :  { %201 = vadd.xlane.f32.xlu0 %v200_v49  ;;  %v259_v49 = vld [vmem:[%s621_s4 + $0x18] sm:$0xff] }
 0x106   :  { %214 = vadd.xlane.f32.xlu1 %v213_v51 }
 0x108   :  { %211 = vadd.xlane.f32.xlu0 %v210_v52 }
 0x10c   :  { %217 = vadd.xlane.f32.xlu0 %v216_v54 }
 0x189   :  { %v193_v55 = vpop.xlane.xlu0 %192 }
 0x18a   :  { %v220_v56 = vmul.f32 0.03125, %v193_v55 }
 0x18b   :  { %v209_v57 = vpop.xlane.xlu1 %208 }
 0x18c   :  { %v228_v58 = vmul.f32 %v220_v56, %v220_v56  ;;  %v224_v59 = vmul.f32 0.03125, %v209_v57 }
 0x18d   :  { %v199_v60 = vpop.xlane.xlu0 %198 }
 0x18e   :  { %v232_v61 = vsub.f32 %v224_v59, %v228_v58  ;;  %v222_v0 = vmul.f32 0.03125, %v199_v60 }
 0x18f   :  { %v196_v62 = vpop.xlane.xlu1 %195 }
 0x190   :  { %v236_v63 = vmax.f32 %v232_v61, 0.0  ;;  %v221_v3 = vmul.f32 0.03125, %v196_v62  ;;  %v230_v5 = vmul.f32 %v222_v0, %v222_v0 }
 0x191   :  { %v202_v1 = vpop.xlane.xlu0 %201 }
 0x192   :  { %v244_v2 = vadd.f32 1e-05, %v236_v63  ;;  %v229_v8 = vmul.f32 %v221_v3, %v221_v3  ;;  %v223_v9 = vmul.f32 0.03125, %v202_v1 }
 0x193   :  { %v215_v4 = vpop.xlane.xlu1 %214 }
 0x194   :  { %450 = vrsqrt.f32 %v244_v2  ;;  %v226_v6 = vmul.f32 0.03125, %v215_v4  ;;  %v231_v15 = vmul.f32 %v223_v9, %v223_v9 }
 0x195   :  { %v212_v7 = vpop.xlane.xlu0 %211 }
 0x196   :  { %v234_v10 = vsub.f32 %v226_v6, %v230_v5  ;;  %v225_v11 = vmul.f32 0.03125, %v212_v7 }
 0x198   :  { %v238_v12 = vmax.f32 %v234_v10, 0.0  ;;  %v233_v13 = vsub.f32 %v225_v11, %v229_v8 }
 0x199   :  { %v218_v14 = vpop.xlane.xlu0 %217 }
 0x19a   :  { %v246_v16 = vadd.f32 1e-05, %v238_v12  ;;  %v237_v17 = vmax.f32 %v233_v13, 0.0  ;;  %v227_v18 = vmul.f32 0.03125, %v218_v14 }
 0x19c   :  { %452 = vrsqrt.f32 %v246_v16  ;;  %v245_v19 = vadd.f32 1e-05, %v237_v17  ;;  %v235_v20 = vsub.f32 %v227_v18, %v231_v15 }
 0x19e   :  { %v451_v22 = vpop.eup %450  ;;  %454 = vrsqrt.f32 %v245_v19  ;;  %v239_v23 = vmax.f32 %v235_v20, 0.0 }
 0x19f   :  { %v252_v24 = vmul.f32 %v451_v22, %v240_v21 }
 0x1a0   :  { %v247_v25 = vadd.f32 1e-05, %v239_v23 }
 0x1a1   :  { %270 = vperm.xlu1 %449, %v252_v24   ;;  %v260_v34 = vmul.f32 %v252_v24, %v220_v56 }
 0x1a2   :  { %456 = vrsqrt.f32 %v247_v25 }
 0x1a3   :  { %v264_v38 = vsub.f32 %v256_v35, %v260_v34 }
 0x1a6   :  { %v453_v27 = vpop.eup %452 }
 0x1a7   :  { %v254_v29 = vmul.f32 %v453_v27, %v242_v26 }
 0x1a8   :  { %v455_v30 = vpop.eup %454 }
 0x1a9   :  { %280 = vperm.xlu1 %449, %v254_v29   ;;  %v253_v32 = vmul.f32 %v455_v30, %v241_v28  ;;  %v262_v40 = vmul.f32 %v254_v29, %v222_v0 }
 0x1ab   :  { %275 = vperm.xlu0 %448, %v253_v32   ;;  %v261_v42 = vmul.f32 %v253_v32, %v221_v3  ;;  %v266_v45 = vsub.f32 %v258_v43, %v262_v40 }
 0x1ac   :  { %v457_v37 = vpop.eup %456 }
 0x1ad   :  { %v255_v39 = vmul.f32 %v457_v37, %v243_v36  ;;  %v265_v47 = vsub.f32 %v257_v44, %v261_v42 }
 0x1af   :  { %294 = vperm.xlu0 %448, %v264_v38   ;;  %285 = vperm.xlu1 %449, %v255_v39   ;;  %v263_v48 = vmul.f32 %v255_v39, %v223_v9 }
 0x1b1   :  { %v267_v50 = vsub.f32 %v259_v49, %v263_v48 }
 0x1b3   :  { %304 = vperm.xlu0 %448, %v266_v45   ;;  %299 = vperm.xlu1 %449, %v265_v47  }
 0x1b7   :  { %309 = vperm.xlu1 %449, %v267_v50  }
 0x220   :  { %v271_v51 = vpop.permute.xlu1 %270 }
 0x221   :  { %v288_v54 = vmul.f32 %v271_v51, %v545_v31 }
 0x228   :  { %v281_v52 = vpop.permute.xlu1 %280 }
 0x229   :  { %v290_v58 = vmul.f32 %v281_v52, %v547_v33 }
 0x22a   :  { %v276_v53 = vpop.permute.xlu0 %275 }
 0x22b   :  { %v289_v59 = vmul.f32 %v276_v53, %v553_v41 }
 0x22e   :  { %v286_v55 = vpop.permute.xlu1 %285  ;;  %v295_v56 = vpop.permute.xlu0 %294 }
 0x22f   :  { %v312_v57 = vadd.f32 %v295_v56, %v288_v54  ;;  %v291_v2 = vmul.f32 %v286_v55, %v558_v46 }
 0x231   :  { %v316_v60 = vmax.f32 %v312_v57, 0.0 }
 0x232   :  { %v300_v61 = vpop.permute.xlu1 %299  ;;  %v305_v62 = vpop.permute.xlu0 %304 }
 0x233   :  { %v353_v63 = vpack.c.bf16 %v316_v60, %v316_v60  ;;  %v313_v0 = vadd.f32 %v300_v61, %v289_v59  ;;  %v314_v1 = vadd.f32 %v305_v62, %v290_v58 }
 0x235   :  { %337 = vst.msk [vmem:[%s622_s5] sm:$0xf] %vm336_vm2, %v353_v63  ;;  %v317_v31 = vmax.f32 %v313_v0, 0.0  ;;  %v318_v3 = vmax.f32 %v314_v1, 0.0 }
 0x236   :  { %v310_v4 = vpop.permute.xlu1 %309 }
 0x237   :  { %v354_v33 = vpack.c.bf16 %v317_v31, %v317_v31  ;;  %v355_v5 = vpack.c.bf16 %v318_v3, %v318_v3  ;;  %v315_v41 = vadd.f32 %v310_v4, %v291_v2 }
 0x239   :  { %338 = vst.msk [vmem:[%s622_s5 + $0x4] sm:$0xf] %vm336_vm2, %v354_v33  ;;  %339 = vst.msk [vmem:[%s622_s5 + $0x8] sm:$0xf] %vm336_vm2, %v355_v5  ;;  %v319_v46 = vmax.f32 %v315_v41, 0.0 }
 0x23b   :  { %v356_v6 = vpack.c.bf16 %v319_v46, %v319_v46 }
 0x23d   :  { %340 = vst.msk [vmem:[%s622_s5 + $0xc] sm:$0xf] %vm336_vm2, %v356_v6 }

// kernel: resnet_generator_forward.16
= control target key start
LH: loop header
LB: loop body
LE: loop exit
PB: predicated region body
PF: predicated region fallthrough
CT: control target
= control target key end

     0   :  { %v711_v3 = vmov 0   ;;  %vm139_vm0 = vcmask 261120   ;;  %vm475_vm1 = vcmask 257024   ;;  %s913_s0 = inlined_call_operand.vmem [shape: bf16[288,32], index: 0, kind: input, shape index: {}]   ;;  %s914_s1 = inlined_call_operand.vmem [shape: bf16[32,288], index: 1, kind: input, shape index: {}]   ;;  %s915_s2 = inlined_call_operand.vmem [shape: f32[32,1], index: 2, kind: input, shape index: {}]   ;;  %s916_s3 = inlined_call_operand.vmem [shape: f32[32,1], index: 3, kind: input, shape index: {}]   ;;  %s917_s4 = inlined_call_operand.vmem [shape: f32[32,1], index: 4, kind: input, shape index: {}]   ;;  %s918_s5 = inlined_call_operand.vmem [shape: bf16[32,32], index: 5, kind: input, shape index: {}]   ;;  %s919_s6 = inlined_call_operand.vmem [shape: bf16[32,32], index: 6, kind: output, shape index: {}]  }
   0x1   :  { %v583_v0 = vld [vmem:[%s913_s0 + $0x40] sm:$0xff]   ;;  %v584_v2 = vld [vmem:[%s913_s0 + $0x48] sm:$0xff]   ;;  %701 = vset.pattern.permute.xlu0 %v711_v3  ;;  %702 = vset.pattern.permute.xlu1 %v711_v3  ;;  %v585_v5 = vld [vmem:[%s913_s0 + $0x50] sm:$0xff]  }
   0x2   :  { %v497_v1 = vld [vmem:[%s913_s0] sm:$0xff]   ;;  %661 = vmatprep.subr.bf16.mxu0 %v583_v0  ;;  %v576_v4 = vld [vmem:[%s913_s0 + $0x8] sm:$0xff]   ;;  %v577_v11 = vld [vmem:[%s913_s0 + $0x10] sm:$0xff]  }
   0x3   :  { %663 = vmatpush3.bf16.msra.mxu0 %v497_v1  ;;  %v591_v6 = vld [vmem:[%s913_s0 + $0x80] sm:$0xff]   ;;  %v592_v9 = vld [vmem:[%s913_s0 + $0x88] sm:$0xff]   ;;  %v586_v12 = vld [vmem:[%s913_s0 + $0x58] sm:$0xff]  }
   0x4   :  { %665 = vmatprep.subr.bf16.mxu0 %v584_v2  ;;  %v95_v7 = vld [vmem:[%s914_s1] sm:$0xff]  ;;  %693 = vmatprep.subr.bf16.mxu1 %v591_v6  ;;  %v96_v10 = vld [vmem:[%s914_s1 + $0x8] ss:$12 sps:$4 sm:$0xff]   ;;  %v578_v19 = vld [vmem:[%s913_s0 + $0x18] sm:$0xff]  }
   0x5   :  { %v104_v8 = vunpack.c.h.bf16 %v95_v7  ;;  %695 = vmatpush3.bf16.msra.mxu1 %v591_v6  ;;  %v105_v13 = vunpack.c.l.bf16 %v96_v10  ;;  %v100_v14 = vld [vmem:[%s914_s1 + $0x20] ss:$12 sps:$4 sm:$0xff]   ;;  %v117_v16 = vld [vmem:[%s915_s2 + $0x10] sm:$0xff]  ;;  %v108_v17 = vunpack.c.h.bf16 %v96_v10  ;;  %v118_v22 = vld [vmem:[%s915_s2 + $0x18] sm:$0xff]  ;;  %v103_v32 = vunpack.c.l.bf16 %v95_v7 }
   0x6   :  { %697 = vmatprep.subr.bf16.mxu1 %v592_v9  ;;  %v115_v15 = vld [vmem:[%s915_s2] sm:$0xff]  ;;  %v116_v18 = vld [vmem:[%s915_s2 + $0x8] sm:$0xff]  ;;  %131 = vperm.xlu1 %702, %v117_v16   ;;  %v111_v20 = vunpack.c.l.bf16 %v100_v14  ;;  %v114_v23 = vunpack.c.h.bf16 %v100_v14  ;;  %v589_v27 = vld [vmem:[%s913_s0 + $0x70] sm:$0xff]  }
   0x7   :  { %667 = vmatpush3.bf16.msra.mxu0 %v576_v4  ;;  %216 = vmatprep.mubr.f32.mxu0 %v104_v8  ;;  %v587_v21 = vld [vmem:[%s913_s0 + $0x60] sm:$0xff]   ;;  %v588_v25 = vld [vmem:[%s913_s0 + $0x68] sm:$0xff]   ;;  %v581_v28 = vld [vmem:[%s913_s0 + $0x30] sm:$0xff]  }
   0x8   :  { %669 = vmatprep.subr.bf16.mxu0 %v585_v5  ;;  %654 = vmatprep.mubr.msk.f32.mxu1 %vm139_vm0, %v105_v13  ;;  %v579_v24 = vld [vmem:[%s913_s0 + $0x20] sm:$0xff]   ;;  %v580_v26 = vld [vmem:[%s913_s0 + $0x28] sm:$0xff]   ;;  %v590_v29 = vld [vmem:[%s913_s0 + $0x78] sm:$0xff]  }
   0x9   :  { %121 = vperm.xlu0 %701, %v115_v15   ;;  %699 = vmatpush3.bf16.msra.mxu1 %v592_v9  ;;  %v582_v30 = vld [vmem:[%s913_s0 + $0x38] sm:$0xff]   ;;  %v97_v31 = vld [vmem:[%s914_s1 + $0xc] sm:$0xff]  ;;  %v101_v37 = vld [vmem:[%s914_s1 + $0x24] sm:$0xff] }
   0xa   :  { %136 = vperm.xlu1 %702, %v118_v22   ;;  %v107_v33 = vunpack.c.h.bf16 %v97_v31  ;;  %v99_v34 = vld [vmem:[%s914_s1 + $0x18] sm:$0xff]  ;;  %v106_v35 = vunpack.c.l.bf16 %v97_v31  ;;  %v113_v39 = vunpack.c.h.bf16 %v101_v37  ;;  %v112_v40 = vunpack.c.l.bf16 %v101_v37 }
   0xb   :  { %671 = vmatpush3.bf16.msra.mxu0 %v577_v11  ;;  %v110_v36 = vunpack.c.h.bf16 %v99_v34  ;;  %v109_v38 = vunpack.c.l.bf16 %v99_v34 }
   0xc   :  { %673 = vmatprep.subr.bf16.mxu0 %v586_v12  ;;  %655 = vmatmul.mubr.msk.f32.vlgmr.msra.gmra.mrb[0].mxu1 %vm139_vm0, %v108_v17 }
   0xd   :  { %126 = vperm.xlu0 %701, %v116_v18   ;;  %657 = vmatprep.mubr.msk.f32.mxu1 %vm139_vm0, %v111_v20 }
   0xf   :  { %675 = vmatpush3.bf16.msra.mxu0 %v578_v19 }
  0x10   :  { %677 = vmatprep.subr.bf16.mxu0 %v587_v21  ;;  %658 = vmatmul.mubr.msk.f32.gmra.mrb[2].mxu1 %vm139_vm0, %v114_v23 }
  0x13   :  { %679 = vmatpush3.bf16.msra.mxu0 %v579_v24 }
  0x14   :  { %681 = vmatprep.subr.bf16.mxu0 %v588_v25 }
  0x17   :  { %683 = vmatpush3.bf16.msra.mxu0 %v580_v26 }
  0x18   :  { %685 = vmatprep.subr.bf16.mxu0 %v589_v27 }
  0x1b   :  { %687 = vmatpush3.bf16.msra.mxu0 %v581_v28 }
  0x1c   :  { %689 = vmatprep.subr.bf16.mxu0 %v590_v29 }
  0x1f   :  { %691 = vmatpush3.bf16.msra.mxu0 %v582_v30 }
  0x22   :  { %217 = vmatmul.mubr.f32.vlgmr.msra.gmra.mrb[0].mxu0 %v103_v32 }
  0x23   :  { %221 = vmatprep.mubr.f32.mxu0 %v107_v33 }
  0x26   :  { %222 = vmatmul.mubr.f32.gmra.mrb[2].mxu0 %v106_v35 }
  0x27   :  { %226 = vmatprep.mubr.f32.mxu0 %v110_v36 }
  0x2a   :  { %227 = vmatmul.mubr.f32.gmra.mrb[4].mxu0 %v109_v38 }
  0x2b   :  { %231 = vmatprep.mubr.f32.mxu0 %v113_v39 }
  0x2e   :  { %232 = vmatmul.mubr.f32.gmra.mrb[6].mxu0 %v112_v40 }
  0x85   :  { %v132_v59 = vpop.permute.xlu1 %131 }
  0x88   :  { %v122_v46 = vpop.permute.xlu0 %121 }
  0x89   :  { %v137_v8 = vpop.permute.xlu1 %136 }
  0x8c   :  { %v127_v54 = vpop.permute.xlu0 %126 }
  0xdf   :  { %v656_v41 = vpop.f32.mrb[0].mxu1 }
  0xe0   :  { %v303_v42 = vpop.f32.mrb[1].mxu1 }
  0xe3   :  { %v659_v43 = vpop.f32.mrb[2].mxu1 }
  0xe4   :  { %v313_v44 = vpop.f32.mrb[3].mxu1 }
  0xf5   :  { %v626_v45 = vpop.f32.mrb[0].mxu0 }
  0xf6   :  { %v627_v47 = vpop.f32.mrb[1].mxu0 }
  0xf7   :  { %v628_v48 = vadd.f32 %v627_v47, %v626_v45 }
  0xf9   :  { %v629_v49 = vpop.f32.mrb[2].mxu0  ;;  %v219_v50 = vadd.f32 %v628_v48, %v122_v46  ;;  %v371_v46 = vld [vmem:[%s916_s3] sm:$0xff] }
  0xfa   :  { %v630_v51 = vpop.f32.mrb[3].mxu0 }
  0xfb   :  { %v631_v52 = vadd.f32 %v630_v51, %v629_v49  ;;  %v835_v53 = vadd.f32 %v303_v42, %v219_v50 }
  0xfd   :  { %v224_v55 = vadd.f32 %v631_v52, %v127_v54  ;;  %v632_v56 = vpop.f32.mrb[4].mxu0  ;;  %v322_v57 = vsel %vm139_vm0, %v835_v53, 0.0  ;;  %v334_v58 = vmul.f32 %v835_v53, %v835_v53  ;;  %v372_v52 = vld [vmem:[%s916_s3 + $0x8] sm:$0xff] }
  0xfe   :  { %323 = vadd.xlane.f32.xlu0 %v322_v57  ;;  %v633_v60 = vpop.f32.mrb[5].mxu0  ;;  %v387_v57 = vld [vmem:[%s917_s4] sm:$0xff] }
  0xff   :  { %v841_v61 = vadd.f32 %v656_v41, %v224_v55  ;;  %v634_v62 = vadd.f32 %v633_v60, %v632_v56  ;;  %v338_v63 = vsel %vm139_vm0, %v334_v58, 0.0  ;;  %v373_v58 = vld [vmem:[%s916_s3 + $0x10] sm:$0xff] }
 0x100   :  { %339 = vadd.xlane.f32.xlu1 %v338_v63 }
 0x101   :  { %v635_v0 = vpop.f32.mrb[6].mxu0  ;;  %v229_v1 = vadd.f32 %v634_v62, %v132_v59  ;;  %v335_v2 = vmul.f32 %v841_v61, %v841_v61  ;;  %v325_v6 = vsel %vm139_vm0, %v841_v61, 0.0 }
 0x102   :  { %v636_v3 = vpop.f32.mrb[7].mxu0 }
 0x103   :  { %v637_v4 = vadd.f32 %v636_v3, %v635_v0  ;;  %v846_v5 = vadd.f32 %v313_v44, %v229_v1  ;;  %v341_v7 = vsel %vm139_vm0, %v335_v2, 0.0  ;;  %v388_v0 = vld [vmem:[%s917_s4 + $0x8] sm:$0xff]  ;;  %v389_v1 = vld [vmem:[%s917_s4 + $0x10] sm:$0xff]  ;;  %v374_v3 = vld [vmem:[%s916_s3 + $0x18] sm:$0xff] }
 0x104   :  { %326 = vadd.xlane.f32.xlu1 %v325_v6  ;;  %342 = vadd.xlane.f32.xlu0 %v341_v7 }
 0x105   :  { %v234_v9 = vadd.f32 %v637_v4, %v137_v8  ;;  %v328_v10 = vsel %vm139_vm0, %v846_v5, 0.0  ;;  %v336_v11 = vmul.f32 %v846_v5, %v846_v5 }
 0x107   :  { %v855_v12 = vadd.f32 %v659_v43, %v234_v9  ;;  %v344_v13 = vsel %vm139_vm0, %v336_v11, 0.0 }
 0x108   :  { %329 = vadd.xlane.f32.xlu0 %v328_v10  ;;  %345 = vadd.xlane.f32.xlu1 %v344_v13  ;;  %v390_v10 = vld [vmem:[%s917_s4 + $0x18] sm:$0xff] }
 0x109   :  { %v331_v14 = vsel %vm139_vm0, %v855_v12, 0.0  ;;  %v337_v15 = vmul.f32 %v855_v12, %v855_v12 }
 0x10b   :  { %v347_v16 = vsel %vm139_vm0, %v337_v15, 0.0  ;;  %v569_v15 = vld [vmem:[%s918_s5] sm:$0xff]  }
 0x10c   :  { %332 = vadd.xlane.f32.xlu0 %v331_v14 }
 0x110   :  { %348 = vadd.xlane.f32.xlu0 %v347_v16 }
 0x18b   :  { %v324_v17 = vpop.xlane.xlu0 %323 }
 0x18c   :  { %v351_v18 = vmul.f32 0.03125, %v324_v17  ;;  %v570_v17 = vunpack.c.l.bf16 %v569_v15 }
 0x18d   :  { %v340_v19 = vpop.xlane.xlu1 %339 }
 0x18e   :  { %v359_v20 = vmul.f32 %v351_v18, %v351_v18  ;;  %v355_v21 = vmul.f32 0.03125, %v340_v19 }
 0x190   :  { %v363_v22 = vsub.f32 %v355_v21, %v359_v20  ;;  %v593_v20 = vld [vmem:[%s918_s5 + $0x8] sm:$0xff]  }
 0x191   :  { %v327_v23 = vpop.xlane.xlu1 %326  ;;  %v343_v24 = vpop.xlane.xlu0 %342 }
 0x192   :  { %v367_v25 = vmax.f32 %v363_v22, 0.0  ;;  %v352_v26 = vmul.f32 0.03125, %v327_v23  ;;  %v356_v29 = vmul.f32 0.03125, %v343_v24  ;;  %v571_v22 = vunpack.c.h.bf16 %v569_v15 }
 0x194   :  { %v375_v27 = vadd.f32 1e-05, %v367_v25  ;;  %v360_v28 = vmul.f32 %v352_v26, %v352_v26 }
 0x195   :  { %v330_v30 = vpop.xlane.xlu0 %329  ;;  %v346_v31 = vpop.xlane.xlu1 %345 }
 0x196   :  { %703 = vrsqrt.f32 %v375_v27  ;;  %v364_v32 = vsub.f32 %v356_v29, %v360_v28  ;;  %v353_v33 = vmul.f32 0.03125, %v330_v30  ;;  %v357_v34 = vmul.f32 0.03125, %v346_v31 }
 0x198   :  { %v368_v35 = vmax.f32 %v364_v32, 0.0  ;;  %v361_v36 = vmul.f32 %v353_v33, %v353_v33 }
 0x199   :  { %v333_v37 = vpop.xlane.xlu0 %332 }
 0x19a   :  { %v376_v38 = vadd.f32 1e-05, %v368_v35  ;;  %v365_v39 = vsub.f32 %v357_v34, %v361_v36  ;;  %v354_v40 = vmul.f32 0.03125, %v333_v37  ;;  %v575_v35 = vunpack.c.h.bf16 %v593_v20 }
 0x19c   :  { %705 = vrsqrt.f32 %v376_v38  ;;  %v369_v41 = vmax.f32 %v365_v39, 0.0  ;;  %v362_v44 = vmul.f32 %v354_v40, %v354_v40 }
 0x19d   :  { %v349_v42 = vpop.xlane.xlu0 %348 }
 0x19e   :  { %v377_v43 = vadd.f32 1e-05, %v369_v41  ;;  %v358_v45 = vmul.f32 0.03125, %v349_v42 }
 0x1a0   :  { %v704_v47 = vpop.eup %703  ;;  %707 = vrsqrt.f32 %v377_v43  ;;  %v366_v48 = vsub.f32 %v358_v45, %v362_v44 }
 0x1a1   :  { %v383_v49 = vmul.f32 %v704_v47, %v371_v46 }
 0x1a2   :  { %v370_v50 = vmax.f32 %v366_v48, 0.0 }
 0x1a3   :  { %401 = vperm.xlu1 %702, %v383_v49   ;;  %v391_v56 = vmul.f32 %v383_v49, %v351_v18 }
 0x1a4   :  { %v378_v51 = vadd.f32 1e-05, %v370_v50 }
 0x1a5   :  { %v395_v60 = vsub.f32 %v387_v57, %v391_v56 }
 0x1a6   :  { %v706_v54 = vpop.eup %705  ;;  %709 = vrsqrt.f32 %v378_v51 }
 0x1a7   :  { %v384_v55 = vmul.f32 %v706_v54, %v372_v52 }
 0x1a9   :  { %406 = vperm.xlu0 %701, %v384_v55   ;;  %v392_v63 = vmul.f32 %v384_v55, %v352_v26  ;;  %v574_v26 = vunpack.c.l.bf16 %v593_v20 }
 0x1aa   :  { %v708_v59 = vpop.eup %707 }
 0x1ab   :  { %v385_v62 = vmul.f32 %v708_v59, %v373_v58  ;;  %v396_v4 = vsub.f32 %v388_v0, %v392_v63 }
 0x1ad   :  { %425 = vperm.xlu0 %701, %v395_v60   ;;  %411 = vperm.xlu1 %702, %v385_v62   ;;  %v393_v2 = vmul.f32 %v385_v62, %v353_v33 }
 0x1af   :  { %v397_v6 = vsub.f32 %v389_v1, %v393_v2 }
 0x1b0   :  { %v710_v7 = vpop.eup %709 }
 0x1b1   :  { %430 = vperm.xlu1 %702, %v396_v4   ;;  %435 = vperm.xlu0 %701, %v397_v6   ;;  %v386_v8 = vmul.f32 %v710_v7, %v374_v3 }
 0x1b3   :  { %v394_v9 = vmul.f32 %v386_v8, %v354_v40 }
 0x1b5   :  { %416 = vperm.xlu1 %702, %v386_v8   ;;  %v398_v11 = vsub.f32 %v390_v10, %v394_v9 }
 0x1b9   :  { %440 = vperm.xlu1 %702, %v398_v11  }
 0x222   :  { %v402_v13 = vpop.permute.xlu1 %401 }
 0x223   :  { %v419_v16 = vmul.f32 %v402_v13, %v835_v53 }
 0x228   :  { %v407_v14 = vpop.permute.xlu0 %406 }
 0x229   :  { %v420_v23 = vmul.f32 %v407_v14, %v841_v61 }
 0x22c   :  { %v412_v18 = vpop.permute.xlu1 %411  ;;  %v426_v19 = vpop.permute.xlu0 %425 }
 0x22d   :  { %v443_v21 = vadd.f32 %v426_v19, %v419_v16  ;;  %v421_v24 = vmul.f32 %v412_v18, %v846_v5 }
 0x22f   :  { %v455_v25 = vadd.f32 %v570_v17, %v443_v21 }
 0x230   :  { %v431_v27 = vpop.permute.xlu1 %430  ;;  %v436_v28 = vpop.permute.xlu0 %435 }
 0x231   :  { %v492_v29 = vpack.c.bf16 %v455_v25, %v455_v25  ;;  %v444_v53 = vadd.f32 %v431_v27, %v420_v23  ;;  %v445_v30 = vadd.f32 %v436_v28, %v421_v24 }
 0x233   :  { %476 = vst.msk [vmem:[%s919_s6] sm:$0xf] %vm475_vm1, %v492_v29  ;;  %v456_v31 = vadd.f32 %v571_v22, %v444_v53  ;;  %v457_v32 = vadd.f32 %v574_v26, %v445_v30 }
 0x234   :  { %v417_v33 = vpop.permute.xlu1 %416 }
 0x235   :  { %v493_v34 = vpack.c.bf16 %v456_v31, %v456_v31  ;;  %v494_v61 = vpack.c.bf16 %v457_v32, %v457_v32  ;;  %v422_v5 = vmul.f32 %v417_v33, %v855_v12 }
 0x237   :  { %477 = vst.msk [vmem:[%s919_s6 + $0x4] sm:$0xf] %vm475_vm1, %v493_v34  ;;  %478 = vst.msk [vmem:[%s919_s6 + $0x8] sm:$0xf] %vm475_vm1, %v494_v61 }
 0x238   :  { %v441_v36 = vpop.permute.xlu1 %440 }
 0x239   :  { %v446_v37 = vadd.f32 %v441_v36, %v422_v5 }
 0x23b   :  { %v458_v38 = vadd.f32 %v575_v35, %v446_v37 }
 0x23d   :  { %v495_v39 = vpack.c.bf16 %v458_v38, %v458_v38 }
 0x23f   :  { %479 = vst.msk [vmem:[%s919_s6 + $0xc] sm:$0xf] %vm475_vm1, %v495_v39 }

// kernel: resnet_generator_forward.15
= control target key start
LH: loop header
LB: loop body
LE: loop exit
PB: predicated region body
PF: predicated region fallthrough
CT: control target
= control target key end

     0   :  { %v691_v3 = vmov 0   ;;  %vm136_vm0 = vcmask 261120   ;;  %vm464_vm1 = vcmask 257024   ;;  %s882_s0 = inlined_call_operand.vmem [shape: bf16[288,32], index: 0, kind: input, shape index: {}]   ;;  %s883_s1 = inlined_call_operand.vmem [shape: bf16[32,288], index: 1, kind: input, shape index: {}]   ;;  %s884_s2 = inlined_call_operand.vmem [shape: f32[32,1], index: 2, kind: input, shape index: {}]   ;;  %s885_s3 = inlined_call_operand.vmem [shape: f32[32,1], index: 3, kind: input, shape index: {}]   ;;  %s886_s4 = inlined_call_operand.vmem [shape: f32[32,1], index: 4, kind: input, shape index: {}]   ;;  %s887_s5 = inlined_call_operand.vmem [shape: bf16[32,32], index: 5, kind: output, shape index: {}]  }
   0x1   :  { %v564_v0 = vld [vmem:[%s882_s0 + $0x40] sm:$0xff]   ;;  %v565_v2 = vld [vmem:[%s882_s0 + $0x48] sm:$0xff]   ;;  %681 = vset.pattern.permute.xlu0 %v691_v3  ;;  %682 = vset.pattern.permute.xlu1 %v691_v3  ;;  %v566_v5 = vld [vmem:[%s882_s0 + $0x50] sm:$0xff]  }
   0x2   :  { %v486_v1 = vld [vmem:[%s882_s0] sm:$0xff]   ;;  %641 = vmatprep.subr.bf16.mxu0 %v564_v0  ;;  %v557_v4 = vld [vmem:[%s882_s0 + $0x8] sm:$0xff]   ;;  %v558_v11 = vld [vmem:[%s882_s0 + $0x10] sm:$0xff]  }
   0x3   :  { %643 = vmatpush3.bf16.msra.mxu0 %v486_v1  ;;  %v572_v6 = vld [vmem:[%s882_s0 + $0x80] sm:$0xff]   ;;  %v573_v9 = vld [vmem:[%s882_s0 + $0x88] sm:$0xff]   ;;  %v567_v12 = vld [vmem:[%s882_s0 + $0x58] sm:$0xff]  }
   0x4   :  { %645 = vmatprep.subr.bf16.mxu0 %v565_v2  ;;  %v92_v7 = vld [vmem:[%s883_s1] sm:$0xff]  ;;  %673 = vmatprep.subr.bf16.mxu1 %v572_v6  ;;  %v93_v10 = vld [vmem:[%s883_s1 + $0x8] ss:$12 sps:$4 sm:$0xff]   ;;  %v559_v19 = vld [vmem:[%s882_s0 + $0x18] sm:$0xff]  }
   0x5   :  { %v101_v8 = vunpack.c.h.bf16 %v92_v7  ;;  %675 = vmatpush3.bf16.msra.mxu1 %v572_v6  ;;  %v102_v13 = vunpack.c.l.bf16 %v93_v10  ;;  %v97_v14 = vld [vmem:[%s883_s1 + $0x20] ss:$12 sps:$4 sm:$0xff]   ;;  %v114_v16 = vld [vmem:[%s884_s2 + $0x10] sm:$0xff]  ;;  %v105_v17 = vunpack.c.h.bf16 %v93_v10  ;;  %v115_v22 = vld [vmem:[%s884_s2 + $0x18] sm:$0xff]  ;;  %v100_v32 = vunpack.c.l.bf16 %v92_v7 }
   0x6   :  { %677 = vmatprep.subr.bf16.mxu1 %v573_v9  ;;  %v112_v15 = vld [vmem:[%s884_s2] sm:$0xff]  ;;  %v113_v18 = vld [vmem:[%s884_s2 + $0x8] sm:$0xff]  ;;  %128 = vperm.xlu1 %682, %v114_v16   ;;  %v108_v20 = vunpack.c.l.bf16 %v97_v14  ;;  %v111_v23 = vunpack.c.h.bf16 %v97_v14  ;;  %v570_v27 = vld [vmem:[%s882_s0 + $0x70] sm:$0xff]  }
   0x7   :  { %647 = vmatpush3.bf16.msra.mxu0 %v557_v4  ;;  %213 = vmatprep.mubr.f32.mxu0 %v101_v8  ;;  %v568_v21 = vld [vmem:[%s882_s0 + $0x60] sm:$0xff]   ;;  %v569_v25 = vld [vmem:[%s882_s0 + $0x68] sm:$0xff]   ;;  %v562_v28 = vld [vmem:[%s882_s0 + $0x30] sm:$0xff]  }
   0x8   :  { %649 = vmatprep.subr.bf16.mxu0 %v566_v5  ;;  %634 = vmatprep.mubr.msk.f32.mxu1 %vm136_vm0, %v102_v13  ;;  %v560_v24 = vld [vmem:[%s882_s0 + $0x20] sm:$0xff]   ;;  %v561_v26 = vld [vmem:[%s882_s0 + $0x28] sm:$0xff]   ;;  %v571_v29 = vld [vmem:[%s882_s0 + $0x78] sm:$0xff]  }
   0x9   :  { %118 = vperm.xlu0 %681, %v112_v15   ;;  %679 = vmatpush3.bf16.msra.mxu1 %v573_v9  ;;  %v563_v30 = vld [vmem:[%s882_s0 + $0x38] sm:$0xff]   ;;  %v94_v31 = vld [vmem:[%s883_s1 + $0xc] sm:$0xff]  ;;  %v98_v37 = vld [vmem:[%s883_s1 + $0x24] sm:$0xff] }
   0xa   :  { %133 = vperm.xlu1 %682, %v115_v22   ;;  %v104_v33 = vunpack.c.h.bf16 %v94_v31  ;;  %v96_v34 = vld [vmem:[%s883_s1 + $0x18] sm:$0xff]  ;;  %v103_v35 = vunpack.c.l.bf16 %v94_v31  ;;  %v110_v39 = vunpack.c.h.bf16 %v98_v37  ;;  %v109_v40 = vunpack.c.l.bf16 %v98_v37 }
   0xb   :  { %651 = vmatpush3.bf16.msra.mxu0 %v558_v11  ;;  %v107_v36 = vunpack.c.h.bf16 %v96_v34  ;;  %v106_v38 = vunpack.c.l.bf16 %v96_v34 }
   0xc   :  { %653 = vmatprep.subr.bf16.mxu0 %v567_v12  ;;  %635 = vmatmul.mubr.msk.f32.vlgmr.msra.gmra.mrb[0].mxu1 %vm136_vm0, %v105_v17 }
   0xd   :  { %123 = vperm.xlu0 %681, %v113_v18   ;;  %637 = vmatprep.mubr.msk.f32.mxu1 %vm136_vm0, %v108_v20 }
   0xf   :  { %655 = vmatpush3.bf16.msra.mxu0 %v559_v19 }
  0x10   :  { %657 = vmatprep.subr.bf16.mxu0 %v568_v21  ;;  %638 = vmatmul.mubr.msk.f32.gmra.mrb[2].mxu1 %vm136_vm0, %v111_v23 }
  0x13   :  { %659 = vmatpush3.bf16.msra.mxu0 %v560_v24 }
  0x14   :  { %661 = vmatprep.subr.bf16.mxu0 %v569_v25 }
  0x17   :  { %663 = vmatpush3.bf16.msra.mxu0 %v561_v26 }
  0x18   :  { %665 = vmatprep.subr.bf16.mxu0 %v570_v27 }
  0x1b   :  { %667 = vmatpush3.bf16.msra.mxu0 %v562_v28 }
  0x1c   :  { %669 = vmatprep.subr.bf16.mxu0 %v571_v29 }
  0x1f   :  { %671 = vmatpush3.bf16.msra.mxu0 %v563_v30 }
  0x22   :  { %214 = vmatmul.mubr.f32.vlgmr.msra.gmra.mrb[0].mxu0 %v100_v32 }
  0x23   :  { %218 = vmatprep.mubr.f32.mxu0 %v104_v33 }
  0x26   :  { %219 = vmatmul.mubr.f32.gmra.mrb[2].mxu0 %v103_v35 }
  0x27   :  { %223 = vmatprep.mubr.f32.mxu0 %v107_v36 }
  0x2a   :  { %224 = vmatmul.mubr.f32.gmra.mrb[4].mxu0 %v106_v38 }
  0x2b   :  { %228 = vmatprep.mubr.f32.mxu0 %v110_v39 }
  0x2e   :  { %229 = vmatmul.mubr.f32.gmra.mrb[6].mxu0 %v109_v40 }
  0x85   :  { %v129_v59 = vpop.permute.xlu1 %128 }
  0x88   :  { %v119_v46 = vpop.permute.xlu0 %118 }
  0x89   :  { %v134_v8 = vpop.permute.xlu1 %133 }
  0x8c   :  { %v124_v54 = vpop.permute.xlu0 %123 }
  0xdf   :  { %v636_v41 = vpop.f32.mrb[0].mxu1 }
  0xe0   :  { %v300_v42 = vpop.f32.mrb[1].mxu1 }
  0xe3   :  { %v639_v43 = vpop.f32.mrb[2].mxu1 }
  0xe4   :  { %v310_v44 = vpop.f32.mrb[3].mxu1 }
  0xf5   :  { %v606_v45 = vpop.f32.mrb[0].mxu0 }
  0xf6   :  { %v607_v47 = vpop.f32.mrb[1].mxu0 }
  0xf7   :  { %v608_v48 = vadd.f32 %v607_v47, %v606_v45 }
  0xf9   :  { %v609_v49 = vpop.f32.mrb[2].mxu0  ;;  %v216_v50 = vadd.f32 %v608_v48, %v119_v46  ;;  %v368_v46 = vld [vmem:[%s885_s3] sm:$0xff] }
  0xfa   :  { %v610_v51 = vpop.f32.mrb[3].mxu0 }
  0xfb   :  { %v611_v52 = vadd.f32 %v610_v51, %v609_v49  ;;  %v810_v53 = vadd.f32 %v300_v42, %v216_v50 }
  0xfd   :  { %v221_v55 = vadd.f32 %v611_v52, %v124_v54  ;;  %v612_v56 = vpop.f32.mrb[4].mxu0  ;;  %v319_v57 = vsel %vm136_vm0, %v810_v53, 0.0  ;;  %v331_v58 = vmul.f32 %v810_v53, %v810_v53  ;;  %v369_v52 = vld [vmem:[%s885_s3 + $0x8] sm:$0xff] }
  0xfe   :  { %320 = vadd.xlane.f32.xlu0 %v319_v57  ;;  %v613_v60 = vpop.f32.mrb[5].mxu0  ;;  %v384_v57 = vld [vmem:[%s886_s4] sm:$0xff] }
  0xff   :  { %v816_v61 = vadd.f32 %v636_v41, %v221_v55  ;;  %v614_v62 = vadd.f32 %v613_v60, %v612_v56  ;;  %v335_v63 = vsel %vm136_vm0, %v331_v58, 0.0  ;;  %v370_v58 = vld [vmem:[%s885_s3 + $0x10] sm:$0xff] }
 0x100   :  { %336 = vadd.xlane.f32.xlu1 %v335_v63 }
 0x101   :  { %v615_v0 = vpop.f32.mrb[6].mxu0  ;;  %v226_v1 = vadd.f32 %v614_v62, %v129_v59  ;;  %v332_v2 = vmul.f32 %v816_v61, %v816_v61  ;;  %v322_v6 = vsel %vm136_vm0, %v816_v61, 0.0 }
 0x102   :  { %v616_v3 = vpop.f32.mrb[7].mxu0 }
 0x103   :  { %v617_v4 = vadd.f32 %v616_v3, %v615_v0  ;;  %v821_v5 = vadd.f32 %v310_v44, %v226_v1  ;;  %v338_v7 = vsel %vm136_vm0, %v332_v2, 0.0  ;;  %v385_v0 = vld [vmem:[%s886_s4 + $0x8] sm:$0xff]  ;;  %v386_v1 = vld [vmem:[%s886_s4 + $0x10] sm:$0xff]  ;;  %v371_v3 = vld [vmem:[%s885_s3 + $0x18] sm:$0xff] }
 0x104   :  { %323 = vadd.xlane.f32.xlu1 %v322_v6  ;;  %339 = vadd.xlane.f32.xlu0 %v338_v7 }
 0x105   :  { %v231_v9 = vadd.f32 %v617_v4, %v134_v8  ;;  %v325_v10 = vsel %vm136_vm0, %v821_v5, 0.0  ;;  %v333_v11 = vmul.f32 %v821_v5, %v821_v5 }
 0x107   :  { %v830_v12 = vadd.f32 %v639_v43, %v231_v9  ;;  %v341_v13 = vsel %vm136_vm0, %v333_v11, 0.0 }
 0x108   :  { %326 = vadd.xlane.f32.xlu0 %v325_v10  ;;  %342 = vadd.xlane.f32.xlu1 %v341_v13  ;;  %v387_v10 = vld [vmem:[%s886_s4 + $0x18] sm:$0xff] }
 0x109   :  { %v328_v14 = vsel %vm136_vm0, %v830_v12, 0.0  ;;  %v334_v15 = vmul.f32 %v830_v12, %v830_v12 }
 0x10b   :  { %v344_v16 = vsel %vm136_vm0, %v334_v15, 0.0 }
 0x10c   :  { %329 = vadd.xlane.f32.xlu0 %v328_v14 }
 0x110   :  { %345 = vadd.xlane.f32.xlu0 %v344_v16 }
 0x18b   :  { %v321_v17 = vpop.xlane.xlu0 %320 }
 0x18c   :  { %v348_v18 = vmul.f32 0.03125, %v321_v17 }
 0x18d   :  { %v337_v19 = vpop.xlane.xlu1 %336 }
 0x18e   :  { %v356_v20 = vmul.f32 %v348_v18, %v348_v18  ;;  %v352_v21 = vmul.f32 0.03125, %v337_v19 }
 0x190   :  { %v360_v22 = vsub.f32 %v352_v21, %v356_v20 }
 0x191   :  { %v324_v23 = vpop.xlane.xlu1 %323  ;;  %v340_v24 = vpop.xlane.xlu0 %339 }
 0x192   :  { %v364_v25 = vmax.f32 %v360_v22, 0.0  ;;  %v349_v26 = vmul.f32 0.03125, %v324_v23  ;;  %v353_v29 = vmul.f32 0.03125, %v340_v24 }
 0x194   :  { %v372_v27 = vadd.f32 1e-05, %v364_v25  ;;  %v357_v28 = vmul.f32 %v349_v26, %v349_v26 }
 0x195   :  { %v327_v30 = vpop.xlane.xlu0 %326  ;;  %v343_v31 = vpop.xlane.xlu1 %342 }
 0x196   :  { %683 = vrsqrt.f32 %v372_v27  ;;  %v361_v32 = vsub.f32 %v353_v29, %v357_v28  ;;  %v350_v33 = vmul.f32 0.03125, %v327_v30  ;;  %v354_v34 = vmul.f32 0.03125, %v343_v31 }
 0x198   :  { %v365_v35 = vmax.f32 %v361_v32, 0.0  ;;  %v358_v36 = vmul.f32 %v350_v33, %v350_v33 }
 0x199   :  { %v330_v37 = vpop.xlane.xlu0 %329 }
 0x19a   :  { %v373_v38 = vadd.f32 1e-05, %v365_v35  ;;  %v362_v39 = vsub.f32 %v354_v34, %v358_v36  ;;  %v351_v40 = vmul.f32 0.03125, %v330_v37 }
 0x19c   :  { %685 = vrsqrt.f32 %v373_v38  ;;  %v366_v41 = vmax.f32 %v362_v39, 0.0  ;;  %v359_v44 = vmul.f32 %v351_v40, %v351_v40 }
 0x19d   :  { %v346_v42 = vpop.xlane.xlu0 %345 }
 0x19e   :  { %v374_v43 = vadd.f32 1e-05, %v366_v41  ;;  %v355_v45 = vmul.f32 0.03125, %v346_v42 }
 0x1a0   :  { %v684_v47 = vpop.eup %683  ;;  %687 = vrsqrt.f32 %v374_v43  ;;  %v363_v48 = vsub.f32 %v355_v45, %v359_v44 }
 0x1a1   :  { %v380_v49 = vmul.f32 %v684_v47, %v368_v46 }
 0x1a2   :  { %v367_v50 = vmax.f32 %v363_v48, 0.0 }
 0x1a3   :  { %398 = vperm.xlu1 %682, %v380_v49   ;;  %v388_v56 = vmul.f32 %v380_v49, %v348_v18 }
 0x1a4   :  { %v375_v51 = vadd.f32 1e-05, %v367_v50 }
 0x1a5   :  { %v392_v60 = vsub.f32 %v384_v57, %v388_v56 }
 0x1a6   :  { %v686_v54 = vpop.eup %685  ;;  %689 = vrsqrt.f32 %v375_v51 }
 0x1a7   :  { %v381_v55 = vmul.f32 %v686_v54, %v369_v52 }
 0x1a9   :  { %403 = vperm.xlu0 %681, %v381_v55   ;;  %v389_v63 = vmul.f32 %v381_v55, %v349_v26 }
 0x1aa   :  { %v688_v59 = vpop.eup %687 }
 0x1ab   :  { %v382_v62 = vmul.f32 %v688_v59, %v370_v58  ;;  %v393_v4 = vsub.f32 %v385_v0, %v389_v63 }
 0x1ad   :  { %422 = vperm.xlu0 %681, %v392_v60   ;;  %408 = vperm.xlu1 %682, %v382_v62   ;;  %v390_v2 = vmul.f32 %v382_v62, %v350_v33 }
 0x1af   :  { %v394_v6 = vsub.f32 %v386_v1, %v390_v2 }
 0x1b0   :  { %v690_v7 = vpop.eup %689 }
 0x1b1   :  { %427 = vperm.xlu1 %682, %v393_v4   ;;  %432 = vperm.xlu0 %681, %v394_v6   ;;  %v383_v8 = vmul.f32 %v690_v7, %v371_v3 }
 0x1b3   :  { %v391_v9 = vmul.f32 %v383_v8, %v351_v40 }
 0x1b5   :  { %413 = vperm.xlu1 %682, %v383_v8   ;;  %v395_v11 = vsub.f32 %v387_v10, %v391_v9 }
 0x1b9   :  { %437 = vperm.xlu1 %682, %v395_v11  }
 0x222   :  { %v399_v13 = vpop.permute.xlu1 %398 }
 0x223   :  { %v416_v15 = vmul.f32 %v399_v13, %v810_v53 }
 0x228   :  { %v404_v14 = vpop.permute.xlu0 %403 }
 0x229   :  { %v417_v19 = vmul.f32 %v404_v14, %v816_v61 }
 0x22c   :  { %v409_v16 = vpop.permute.xlu1 %408  ;;  %v423_v17 = vpop.permute.xlu0 %422 }
 0x22d   :  { %v440_v18 = vadd.f32 %v423_v17, %v416_v15  ;;  %v418_v20 = vmul.f32 %v409_v16, %v821_v5 }
 0x22f   :  { %v444_v21 = vmax.f32 %v440_v18, 0.0 }
 0x230   :  { %v428_v22 = vpop.permute.xlu1 %427  ;;  %v433_v23 = vpop.permute.xlu0 %432 }
 0x231   :  { %v481_v24 = vpack.c.bf16 %v444_v21, %v444_v21  ;;  %v441_v25 = vadd.f32 %v428_v22, %v417_v19  ;;  %v442_v26 = vadd.f32 %v433_v23, %v418_v20 }
 0x233   :  { %465 = vst.msk [vmem:[%s887_s5] sm:$0xf] %vm464_vm1, %v481_v24  ;;  %v445_v53 = vmax.f32 %v441_v25, 0.0  ;;  %v446_v27 = vmax.f32 %v442_v26, 0.0 }
 0x234   :  { %v414_v28 = vpop.permute.xlu1 %413 }
 0x235   :  { %v482_v29 = vpack.c.bf16 %v445_v53, %v445_v53  ;;  %v483_v30 = vpack.c.bf16 %v446_v27, %v446_v27  ;;  %v419_v61 = vmul.f32 %v414_v28, %v830_v12 }
 0x237   :  { %466 = vst.msk [vmem:[%s887_s5 + $0x4] sm:$0xf] %vm464_vm1, %v482_v29  ;;  %467 = vst.msk [vmem:[%s887_s5 + $0x8] sm:$0xf] %vm464_vm1, %v483_v30 }
 0x238   :  { %v438_v5 = vpop.permute.xlu1 %437 }
 0x239   :  { %v443_v31 = vadd.f32 %v438_v5, %v419_v61 }
 0x23b   :  { %v447_v32 = vmax.f32 %v443_v31, 0.0 }
 0x23d   :  { %v484_v33 = vpack.c.bf16 %v447_v32, %v447_v32 }
 0x23f   :  { %468 = vst.msk [vmem:[%s887_s5 + $0xc] sm:$0xf] %vm464_vm1, %v484_v33 }

// kernel: resnet_generator_forward.19
= control target key start
LH: loop header
LB: loop body
LE: loop exit
PB: predicated region body
PF: predicated region fallthrough
CT: control target
= control target key end

     0   :  { %v605_v2 = vmov 0   ;;  %vm221_vm0 = vcmask 261120   ;;  %vm395_vm1 = vcmask 257024   ;;  %s804_s0 = inlined_call_operand.vmem [shape: bf16[128,32], index: 0, kind: input, shape index: {}]   ;;  %s805_s1 = inlined_call_operand.vmem [shape: bf16[64,128], index: 1, kind: input, shape index: {}]   ;;  %s806_s2 = inlined_call_operand.vmem [shape: f32[64,1], index: 2, kind: input, shape index: {}]   ;;  %s807_s3 = inlined_call_operand.vmem [shape: f32[16,1], index: 3, kind: input, shape index: {}]   ;;  %s808_s4 = inlined_call_operand.vmem [shape: f32[16,1], index: 4, kind: input, shape index: {}]   ;;  %s809_s5 = inlined_call_operand.vmem [shape: bf16[64,32], index: 5, kind: output, shape index: {}]  }
   0x1   :  { %v425_v0 = vld [vmem:[%s804_s0] sm:$0xff]   ;;  %v472_v1 = vld [vmem:[%s804_s0 + $0x8] sm:$0xff]   ;;  %600 = vset.pattern.permute.xlu1 %v605_v2  ;;  %599 = vset.pattern.permute.xlu0 %v605_v2  ;;  %v480_v5 = vld [vmem:[%s805_s1 + $0x10] sm:$0xff]  }
   0x2   :  { %551 = vmatprep.subr.bf16.mxu0 %v425_v0  ;;  %582 = vmatprep.subr.bf16.mxu1 %v425_v0  ;;  %v457_v3 = vld [vmem:[%s805_s1] sm:$0xff]   ;;  %v473_v6 = vld [vmem:[%s804_s0 + $0x10] sm:$0xff]   ;;  %v466_v7 = vunpack.c.l.bf16 %v480_v5  ;;  %v71_v10 = vld [vmem:[%s806_s2 + $0x18] sm:$0xff]  ;;  %v467_v24 = vunpack.c.h.bf16 %v480_v5 }
   0x3   :  { %553 = vmatpush3.bf16.msra.mxu0 %v425_v0  ;;  %590 = vmatpush3.bf16.msra.mxu1 %v425_v0  ;;  %v458_v4 = vunpack.c.l.bf16 %v457_v3  ;;  %v70_v8 = vld [vmem:[%s806_s2 + $0x10] sm:$0xff]  ;;  %v68_v9 = vld [vmem:[%s806_s2] sm:$0xff]  ;;  %v474_v11 = vld [vmem:[%s804_s0 + $0x18] sm:$0xff]   ;;  %v459_v23 = vunpack.c.h.bf16 %v457_v3 }
   0x4   :  { %555 = vmatprep.subr.bf16.mxu0 %v472_v1  ;;  %583 = vmatprep.subr.bf16.mxu1 %v472_v1  ;;  %v69_v12 = vld [vmem:[%s806_s2 + $0x8] sm:$0xff]  ;;  %v475_v14 = vld [vmem:[%s804_s0 + $0x20] sm:$0xff]   ;;  %v75_v16 = vld [vmem:[%s806_s2 + $0x38] sm:$0xff] }
   0x5   :  { %538 = vmatprep.mubr.f32.mxu0 %v458_v4  ;;  %88 = vperm.xlu1 %600, %v70_v8   ;;  %v73_v13 = vld [vmem:[%s806_s2 + $0x28] sm:$0xff]  ;;  %v72_v15 = vld [vmem:[%s806_s2 + $0x20] sm:$0xff]  ;;  %v74_v18 = vld [vmem:[%s806_s2 + $0x30] sm:$0xff] }
   0x6   :  { %544 = vmatprep.mubr.f32.mxu1 %v466_v7  ;;  %78 = vperm.xlu0 %599, %v68_v9   ;;  %v476_v17 = vld [vmem:[%s804_s0 + $0x28] sm:$0xff]   ;;  %v477_v19 = vld [vmem:[%s804_s0 + $0x30] sm:$0xff]   ;;  %v478_v20 = vld [vmem:[%s804_s0 + $0x38] sm:$0xff]  }
   0x7   :  { %557 = vmatpush3.bf16.msra.mxu0 %v472_v1  ;;  %591 = vmatpush3.bf16.msra.mxu1 %v472_v1  ;;  %v479_v21 = vld [vmem:[%s805_s1 + $0x8] sm:$0xff]   ;;  %v481_v22 = vld [vmem:[%s805_s1 + $0x18] sm:$0xff]  }
   0x8   :  { %559 = vmatprep.subr.bf16.mxu0 %v473_v6  ;;  %584 = vmatprep.subr.bf16.mxu1 %v473_v6  ;;  %v462_v25 = vunpack.c.l.bf16 %v479_v21  ;;  %v470_v26 = vunpack.c.l.bf16 %v481_v22  ;;  %v463_v27 = vunpack.c.h.bf16 %v479_v21  ;;  %v471_v28 = vunpack.c.h.bf16 %v481_v22 }
   0x9   :  { %93 = vperm.xlu1 %600, %v71_v10  }
   0xa   :  { %83 = vperm.xlu0 %599, %v69_v12  }
   0xb   :  { %561 = vmatpush3.bf16.msra.mxu0 %v473_v6  ;;  %592 = vmatpush3.bf16.msra.mxu1 %v473_v6 }
   0xc   :  { %563 = vmatprep.subr.bf16.mxu0 %v474_v11  ;;  %585 = vmatprep.subr.bf16.mxu1 %v474_v11 }
   0xd   :  { %103 = vperm.xlu1 %600, %v73_v13  }
   0xe   :  { %98 = vperm.xlu0 %599, %v72_v15  }
   0xf   :  { %565 = vmatpush3.bf16.msra.mxu0 %v474_v11  ;;  %593 = vmatpush3.bf16.msra.mxu1 %v474_v11 }
  0x10   :  { %567 = vmatprep.subr.bf16.mxu0 %v475_v14  ;;  %586 = vmatprep.subr.bf16.mxu1 %v475_v14 }
  0x11   :  { %113 = vperm.xlu1 %600, %v75_v16  }
  0x12   :  { %108 = vperm.xlu0 %599, %v74_v18  }
  0x13   :  { %569 = vmatpush3.bf16.msra.mxu0 %v475_v14  ;;  %594 = vmatpush3.bf16.msra.mxu1 %v475_v14 }
  0x14   :  { %571 = vmatprep.subr.bf16.mxu0 %v476_v17  ;;  %587 = vmatprep.subr.bf16.mxu1 %v476_v17 }
  0x17   :  { %573 = vmatpush3.bf16.msra.mxu0 %v476_v17  ;;  %595 = vmatpush3.bf16.msra.mxu1 %v476_v17 }
  0x18   :  { %575 = vmatprep.subr.bf16.mxu0 %v477_v19  ;;  %588 = vmatprep.subr.bf16.mxu1 %v477_v19 }
  0x1b   :  { %577 = vmatpush3.bf16.msra.mxu0 %v477_v19  ;;  %596 = vmatpush3.bf16.msra.mxu1 %v477_v19 }
  0x1c   :  { %579 = vmatprep.subr.bf16.mxu0 %v478_v20  ;;  %589 = vmatprep.subr.bf16.mxu1 %v478_v20 }
  0x1f   :  { %581 = vmatpush3.bf16.msra.mxu0 %v478_v20  ;;  %597 = vmatpush3.bf16.msra.mxu1 %v478_v20 }
  0x22   :  { %539 = vmatmul.mubr.f32.vlgmr.msra.gmra.mrb[0].mxu0 %v459_v23  ;;  %545 = vmatmul.mubr.f32.vlgmr.msra.gmra.mrb[0].mxu1 %v467_v24 }
  0x23   :  { %541 = vmatprep.mubr.f32.mxu0 %v462_v25  ;;  %547 = vmatprep.mubr.f32.mxu1 %v470_v26 }
  0x26   :  { %542 = vmatmul.mubr.f32.gmra.mrb[2].mxu0 %v463_v27  ;;  %548 = vmatmul.mubr.f32.gmra.mrb[2].mxu1 %v471_v28 }
  0x84   :  { %v89_v29 = vpop.permute.xlu1 %88 }
  0x85   :  { %v79_v30 = vpop.permute.xlu0 %78 }
  0x88   :  { %v94_v31 = vpop.permute.xlu1 %93 }
  0x89   :  { %v84_v32 = vpop.permute.xlu0 %83 }
  0x8c   :  { %v104_v33 = vpop.permute.xlu1 %103 }
  0x8d   :  { %v99_v40 = vpop.permute.xlu0 %98 }
  0x90   :  { %v114_v63 = vpop.permute.xlu1 %113 }
  0x91   :  { %v109_v57 = vpop.permute.xlu0 %108 }
  0xf5   :  { %v540_v34 = vpop.f32.mrb[0].mxu0  ;;  %v546_v35 = vpop.f32.mrb[0].mxu1 }
  0xf6   :  { %v696_v36 = vadd.f32 %v540_v34, %v84_v32  ;;  %v698_v37 = vadd.f32 %v546_v35, %v104_v33  ;;  %v202_v38 = vpop.f32.mrb[1].mxu1  ;;  %v182_v39 = vpop.f32.mrb[1].mxu0 }
  0xf7   :  { %v700_v41 = vadd.f32 %v202_v38, %v99_v40  ;;  %v702_v42 = vadd.f32 %v182_v39, %v79_v30 }
  0xf8   :  { %v237_v43 = vsel %vm221_vm0, %v698_v37, 0.0  ;;  %v225_v44 = vsel %vm221_vm0, %v696_v36, 0.0  ;;  %v247_v52 = vmul.f32 %v696_v36, %v696_v36  ;;  %v251_v56 = vmul.f32 %v698_v37, %v698_v37 }
  0xf9   :  { %238 = vadd.xlane.f32.xlu0 %v237_v43  ;;  %v549_v45 = vpop.f32.mrb[2].mxu1  ;;  %226 = vadd.xlane.f32.xlu1 %v225_v44  ;;  %v543_v46 = vpop.f32.mrb[2].mxu0  ;;  %v234_v49 = vsel %vm221_vm0, %v700_v41, 0.0  ;;  %v222_v50 = vsel %vm221_vm0, %v702_v42, 0.0  ;;  %v246_v51 = vmul.f32 %v702_v42, %v702_v42  ;;  %v250_v55 = vmul.f32 %v700_v41, %v700_v41 }
  0xfa   :  { %v192_v47 = vpop.f32.mrb[3].mxu0  ;;  %v212_v48 = vpop.f32.mrb[3].mxu1  ;;  %v257_v54 = vsel %vm221_vm0, %v247_v52, 0.0  ;;  %v722_v58 = vadd.f32 %v543_v46, %v94_v31  ;;  %v269_v62 = vsel %vm221_vm0, %v251_v56, 0.0  ;;  %v730_v0 = vadd.f32 %v549_v45, %v114_v63 }
  0xfb   :  { %v254_v53 = vsel %vm221_vm0, %v246_v51, 0.0  ;;  %v724_v59 = vadd.f32 %v192_v47, %v89_v29  ;;  %v726_v60 = vadd.f32 %v212_v48, %v109_v57  ;;  %v266_v61 = vsel %vm221_vm0, %v250_v55, 0.0  ;;  %v305_v57 = vld [vmem:[%s807_s3] sm:$0xff] }
  0xfc   :  { %v231_v2 = vsel %vm221_vm0, %v722_v58, 0.0  ;;  %v243_v5 = vsel %vm221_vm0, %v730_v0, 0.0  ;;  %v249_v9 = vmul.f32 %v722_v58, %v722_v58  ;;  %v253_v11 = vmul.f32 %v730_v0, %v730_v0 }
  0xfd   :  { %235 = vadd.xlane.f32.xlu1 %v234_v49  ;;  %223 = vadd.xlane.f32.xlu0 %v222_v50  ;;  %v240_v1 = vsel %vm221_vm0, %v726_v60, 0.0  ;;  %v248_v3 = vmul.f32 %v724_v59, %v724_v59  ;;  %v252_v6 = vmul.f32 %v726_v60, %v726_v60  ;;  %v228_v8 = vsel %vm221_vm0, %v724_v59, 0.0 }
  0xfe   :  { %v263_v10 = vsel %vm221_vm0, %v249_v9, 0.0  ;;  %v275_v12 = vsel %vm221_vm0, %v253_v11, 0.0 }
  0xff   :  { %v260_v4 = vsel %vm221_vm0, %v248_v3, 0.0  ;;  %v272_v7 = vsel %vm221_vm0, %v252_v6, 0.0 }
 0x101   :  { %255 = vadd.xlane.f32.xlu1 %v254_v53  ;;  %258 = vadd.xlane.f32.xlu0 %v257_v54 }
 0x105   :  { %267 = vadd.xlane.f32.xlu1 %v266_v61  ;;  %270 = vadd.xlane.f32.xlu0 %v269_v62  ;;  %v306_v62 = vld [vmem:[%s807_s3 + $0x8] sm:$0xff] }
 0x109   :  { %241 = vadd.xlane.f32.xlu1 %v240_v1  ;;  %232 = vadd.xlane.f32.xlu0 %v231_v2  ;;  %v313_v2 = vld [vmem:[%s808_s4] sm:$0xff] }
 0x10d   :  { %261 = vadd.xlane.f32.xlu1 %v260_v4  ;;  %244 = vadd.xlane.f32.xlu0 %v243_v5 }
 0x111   :  { %273 = vadd.xlane.f32.xlu1 %v272_v7  ;;  %229 = vadd.xlane.f32.xlu0 %v228_v8  ;;  %v314_v7 = vld [vmem:[%s808_s4 + $0x8] sm:$0xff] }
 0x115   :  { %264 = vadd.xlane.f32.xlu0 %v263_v10 }
 0x119   :  { %276 = vadd.xlane.f32.xlu0 %v275_v12 }
 0x186   :  { %v239_v13 = vpop.xlane.xlu0 %238  ;;  %v227_v14 = vpop.xlane.xlu1 %226 }
 0x18a   :  { %v236_v15 = vpop.xlane.xlu1 %235  ;;  %v224_v16 = vpop.xlane.xlu0 %223 }
 0x18e   :  { %v256_v17 = vpop.xlane.xlu1 %255  ;;  %v259_v18 = vpop.xlane.xlu0 %258 }
 0x192   :  { %v268_v19 = vpop.xlane.xlu1 %267  ;;  %v271_v20 = vpop.xlane.xlu0 %270 }
 0x196   :  { %v242_v21 = vpop.xlane.xlu1 %241  ;;  %v233_v22 = vpop.xlane.xlu0 %232 }
 0x197   :  { %v281_v23 = vadd.f32 %v233_v22, %v227_v14 }
 0x199   :  { %v283_v27 = vadd.f32 %v281_v23, %v239_v13 }
 0x19a   :  { %v262_v24 = vpop.xlane.xlu1 %261  ;;  %v245_v25 = vpop.xlane.xlu0 %244 }
 0x19b   :  { %v288_v26 = vadd.f32 %v262_v24, %v256_v17  ;;  %v285_v32 = vadd.f32 %v283_v27, %v245_v25 }
 0x19d   :  { %v290_v29 = vadd.f32 %v288_v26, %v268_v19  ;;  %v296_v40 = vmul.f32 0.0078125, %v285_v32 }
 0x19e   :  { %v230_v28 = vpop.xlane.xlu0 %229  ;;  %v274_v31 = vpop.xlane.xlu1 %273 }
 0x19f   :  { %v280_v30 = vadd.f32 %v230_v28, %v224_v16  ;;  %v292_v35 = vadd.f32 %v290_v29, %v274_v31  ;;  %v300_v49 = vmul.f32 %v296_v40, %v296_v40 }
 0x1a1   :  { %v282_v33 = vadd.f32 %v280_v30, %v236_v15  ;;  %v297_v46 = vmul.f32 0.0078125, %v292_v35 }
 0x1a2   :  { %v265_v34 = vpop.xlane.xlu0 %264 }
 0x1a3   :  { %v284_v38 = vadd.f32 %v282_v33, %v242_v21  ;;  %v289_v39 = vadd.f32 %v265_v34, %v259_v18 }
 0x1a5   :  { %v295_v43 = vmul.f32 0.0078125, %v284_v38  ;;  %v291_v44 = vadd.f32 %v289_v39, %v271_v20 }
 0x1a6   :  { %v277_v45 = vpop.xlane.xlu0 %276 }
 0x1a7   :  { %v299_v47 = vmul.f32 %v295_v43, %v295_v43  ;;  %v293_v48 = vadd.f32 %v291_v44, %v277_v45 }
 0x1a9   :  { %v301_v50 = vsub.f32 %v297_v46, %v299_v47  ;;  %v298_v51 = vmul.f32 0.0078125, %v293_v48 }
 0x1ab   :  { %v303_v52 = vmax.f32 %v301_v50, 0.0  ;;  %v302_v53 = vsub.f32 %v298_v51, %v300_v49 }
 0x1ad   :  { %v307_v54 = vadd.f32 1e-05, %v303_v52  ;;  %v304_v55 = vmax.f32 %v302_v53, 0.0 }
 0x1af   :  { %601 = vrsqrt.f32 %v307_v54  ;;  %v308_v56 = vadd.f32 1e-05, %v304_v55 }
 0x1b1   :  { %603 = vrsqrt.f32 %v308_v56 }
 0x1b9   :  { %v602_v61 = vpop.eup %601 }
 0x1ba   :  { %v311_v63 = vmul.f32 %v602_v61, %v305_v57 }
 0x1bb   :  { %v604_v1 = vpop.eup %603 }
 0x1bc   :  { %321 = vperm.xlu1 %600, %v311_v63   ;;  %v312_v3 = vmul.f32 %v604_v1, %v306_v62  ;;  %v315_v4 = vmul.f32 %v311_v63, %v295_v43 }
 0x1be   :  { %326 = vperm.xlu0 %599, %v312_v3   ;;  %v317_v5 = vsub.f32 %v313_v2, %v315_v4  ;;  %v316_v6 = vmul.f32 %v312_v3, %v296_v40 }
 0x1c0   :  { %339 = vperm.xlu1 %600, %v317_v5   ;;  %v318_v8 = vsub.f32 %v314_v7, %v316_v6 }
 0x1c4   :  { %344 = vperm.xlu1 %600, %v318_v8  }
 0x23b   :  { %v322_v9 = vpop.permute.xlu1 %321 }
 0x23c   :  { %v329_v10 = vmul.f32 %v322_v9, %v702_v42  ;;  %v331_v11 = vmul.f32 %v322_v9, %v724_v59  ;;  %v333_v12 = vmul.f32 %v322_v9, %v700_v41  ;;  %v335_v13 = vmul.f32 %v322_v9, %v726_v60 }
 0x23d   :  { %v327_v15 = vpop.permute.xlu0 %326 }
 0x23e   :  { %v330_v24 = vmul.f32 %v327_v15, %v696_v36  ;;  %v332_v42 = vmul.f32 %v327_v15, %v722_v58  ;;  %v334_v59 = vmul.f32 %v327_v15, %v698_v37  ;;  %v336_v41 = vmul.f32 %v327_v15, %v730_v0 }
 0x23f   :  { %v340_v14 = vpop.permute.xlu1 %339 }
 0x240   :  { %v347_v16 = vadd.f32 %v340_v14, %v329_v10  ;;  %v349_v17 = vadd.f32 %v340_v14, %v331_v11  ;;  %v351_v18 = vadd.f32 %v340_v14, %v333_v12  ;;  %v353_v19 = vadd.f32 %v340_v14, %v335_v13 }
 0x242   :  { %v355_v20 = vmax.f32 %v347_v16, 0.0  ;;  %v357_v21 = vmax.f32 %v349_v17, 0.0  ;;  %v359_v22 = vmax.f32 %v351_v18, 0.0  ;;  %v361_v23 = vmax.f32 %v353_v19, 0.0 }
 0x243   :  { %v345_v60 = vpop.permute.xlu1 %344 }
 0x244   :  { %v416_v25 = vpack.c.bf16 %v355_v20, %v355_v20  ;;  %v418_v26 = vpack.c.bf16 %v357_v21, %v357_v21  ;;  %v420_v27 = vpack.c.bf16 %v359_v22, %v359_v22  ;;  %v422_v28 = vpack.c.bf16 %v361_v23, %v361_v23 }
 0x245   :  { %v348_v29 = vadd.f32 %v345_v60, %v330_v24  ;;  %v350_v30 = vadd.f32 %v345_v60, %v332_v42  ;;  %v352_v31 = vadd.f32 %v345_v60, %v334_v59  ;;  %v354_v32 = vadd.f32 %v345_v60, %v336_v41 }
 0x246   :  { %396 = vst.msk [vmem:[%s809_s5] sm:$0xf] %vm395_vm1, %v416_v25  ;;  %398 = vst.msk [vmem:[%s809_s5 + $0x8] sm:$0xf] %vm395_vm1, %v418_v26 }
 0x247   :  { %400 = vst.msk [vmem:[%s809_s5 + $0x10] sm:$0xf] %vm395_vm1, %v420_v27  ;;  %402 = vst.msk [vmem:[%s809_s5 + $0x18] sm:$0xf] %vm395_vm1, %v422_v28  ;;  %v356_v36 = vmax.f32 %v348_v29, 0.0  ;;  %v358_v37 = vmax.f32 %v350_v30, 0.0 }
 0x248   :  { %v360_v58 = vmax.f32 %v352_v31, 0.0  ;;  %v362_v0 = vmax.f32 %v354_v32, 0.0 }
 0x249   :  { %v417_v33 = vpack.c.bf16 %v356_v36, %v356_v36  ;;  %v419_v34 = vpack.c.bf16 %v358_v37, %v358_v37 }
 0x24a   :  { %v421_v35 = vpack.c.bf16 %v360_v58, %v360_v58  ;;  %v423_v38 = vpack.c.bf16 %v362_v0, %v362_v0 }
 0x24b   :  { %397 = vst.msk [vmem:[%s809_s5 + $0x4] sm:$0xf] %vm395_vm1, %v417_v33  ;;  %399 = vst.msk [vmem:[%s809_s5 + $0xc] sm:$0xf] %vm395_vm1, %v419_v34 }
 0x24c   :  { %401 = vst.msk [vmem:[%s809_s5 + $0x14] sm:$0xf] %vm395_vm1, %v421_v35  ;;  %403 = vst.msk [vmem:[%s809_s5 + $0x1c] sm:$0xf] %vm395_vm1, %v423_v38 }

// kernel: resnet_generator_forward.20
= control target key start
LH: loop header
LB: loop body
LE: loop exit
PB: predicated region body
PF: predicated region fallthrough
CT: control target
= control target key end

     0   :  { %v367_v2 = vmov 0   ;;  %vm68_vm0 = vcmask 523264   ;;  %s444_s0 = inlined_call_operand.vmem [shape: bf16[64,128], index: 0, kind: input, shape index: {}]   ;;  %s445_s1 = inlined_call_operand.vmem [shape: bf16[32,64], index: 1, kind: input, shape index: {}]   ;;  %s446_s2 = inlined_call_operand.vmem [shape: f32[32,1], index: 2, kind: input, shape index: {}]   ;;  %s447_s3 = inlined_call_operand.vmem [shape: f32[8,1], index: 3, kind: input, shape index: {}]   ;;  %s448_s4 = inlined_call_operand.vmem [shape: f32[8,1], index: 4, kind: input, shape index: {}]   ;;  %s449_s5 = inlined_call_operand.vmem [shape: bf16[32,128], index: 5, kind: output, shape index: {}]  }
   0x1   :  { %v266_v0 = vld [vmem:[%s444_s0] sm:$0xff]   ;;  %v299_v1 = vld [vmem:[%s444_s0 + $0x8] sm:$0xff]   ;;  %364 = vset.pattern.permute.xlu1 %v367_v2  ;;  %363 = vset.pattern.permute.xlu0 %v367_v2  ;;  %v46_v7 = vld [vmem:[%s446_s2 + $0x10] sm:$0xff] }
   0x2   :  { %339 = vmatprep.subr.bf16.mxu0 %v266_v0  ;;  %354 = vmatprep.subr.bf16.mxu1 %v266_v0  ;;  %v282_v3 = vld [vmem:[%s445_s1] sm:$0xff]   ;;  %v302_v4 = vld [vmem:[%s445_s1 + $0x8] sm:$0xff]   ;;  %v300_v9 = vld [vmem:[%s444_s0 + $0x10] sm:$0xff]  }
   0x3   :  { %341 = vmatpush3.bf16.msra.mxu0 %v266_v0  ;;  %358 = vmatpush3.bf16.msra.mxu1 %v266_v0  ;;  %v283_v5 = vunpack.c.l.bf16 %v282_v3  ;;  %v287_v6 = vunpack.c.l.bf16 %v302_v4  ;;  %v44_v8 = vld [vmem:[%s446_s2] sm:$0xff]  ;;  %v47_v10 = vld [vmem:[%s446_s2 + $0x18] sm:$0xff]  ;;  %v45_v11 = vld [vmem:[%s446_s2 + $0x8] sm:$0xff]  ;;  %v284_v13 = vunpack.c.h.bf16 %v282_v3  ;;  %v288_v14 = vunpack.c.h.bf16 %v302_v4 }
   0x4   :  { %343 = vmatprep.subr.bf16.mxu0 %v299_v1  ;;  %355 = vmatprep.subr.bf16.mxu1 %v299_v1  ;;  %v301_v12 = vld [vmem:[%s444_s0 + $0x18] sm:$0xff]   ;;  %v200_v51 = vld [vmem:[%s447_s3] sm:$0xff] }
   0x5   :  { %332 = vmatprep.mubr.msk.f32.mxu0 %vm68_vm0, %v283_v5  ;;  %335 = vmatprep.mubr.msk.f32.mxu1 %vm68_vm0, %v287_v6  ;;  %v204_v54 = vld [vmem:[%s448_s4] sm:$0xff] }
   0x6   :  { %60 = vperm.xlu1 %364, %v46_v7   ;;  %50 = vperm.xlu0 %363, %v44_v8  }
   0x7   :  { %345 = vmatpush3.bf16.msra.mxu0 %v299_v1  ;;  %359 = vmatpush3.bf16.msra.mxu1 %v299_v1 }
   0x8   :  { %347 = vmatprep.subr.bf16.mxu0 %v300_v9  ;;  %356 = vmatprep.subr.bf16.mxu1 %v300_v9 }
   0xa   :  { %65 = vperm.xlu1 %364, %v47_v10   ;;  %55 = vperm.xlu0 %363, %v45_v11  }
   0xb   :  { %349 = vmatpush3.bf16.msra.mxu0 %v300_v9  ;;  %360 = vmatpush3.bf16.msra.mxu1 %v300_v9 }
   0xc   :  { %351 = vmatprep.subr.bf16.mxu0 %v301_v12  ;;  %357 = vmatprep.subr.bf16.mxu1 %v301_v12 }
   0xf   :  { %353 = vmatpush3.bf16.msra.mxu0 %v301_v12  ;;  %361 = vmatpush3.bf16.msra.mxu1 %v301_v12 }
  0x12   :  { %333 = vmatmul.mubr.msk.f32.vlgmr.msra.gmra.mrb[0].mxu0 %vm68_vm0, %v284_v13  ;;  %336 = vmatmul.mubr.msk.f32.vlgmr.msra.gmra.mrb[0].mxu1 %vm68_vm0, %v288_v14 }
  0x85   :  { %v51_v15 = vpop.permute.xlu0 %50  ;;  %v61_v16 = vpop.permute.xlu1 %60 }
  0x89   :  { %v56_v17 = vpop.permute.xlu0 %55  ;;  %v66_v18 = vpop.permute.xlu1 %65 }
  0xe5   :  { %v334_v19 = vpop.f32.mrb[0].mxu0  ;;  %v337_v20 = vpop.f32.mrb[0].mxu1 }
  0xe6   :  { %v153_v21 = vadd.f32 %v334_v19, %v56_v17  ;;  %v163_v22 = vadd.f32 %v337_v20, %v66_v18  ;;  %v157_v23 = vpop.f32.mrb[1].mxu1  ;;  %v147_v24 = vpop.f32.mrb[1].mxu0 }
  0xe7   :  { %v158_v26 = vadd.f32 %v157_v23, %v61_v16  ;;  %v148_v27 = vadd.f32 %v147_v24, %v51_v15 }
  0xe8   :  { %172 = vadd.xlane.f32.xlu0 %v163_v22  ;;  %168 = vadd.xlane.f32.xlu1 %v153_v21  ;;  %v175_v25 = vmul.f32 %v153_v21, %v153_v21  ;;  %v177_v30 = vmul.f32 %v163_v22, %v163_v22 }
  0xe9   :  { %v176_v28 = vmul.f32 %v158_v26, %v158_v26  ;;  %v174_v29 = vmul.f32 %v148_v27, %v148_v27 }
  0xec   :  { %180 = vadd.xlane.f32.xlu1 %v175_v25  ;;  %166 = vadd.xlane.f32.xlu0 %v148_v27 }
  0xf0   :  { %182 = vadd.xlane.f32.xlu1 %v176_v28  ;;  %170 = vadd.xlane.f32.xlu0 %v158_v26 }
  0xf4   :  { %178 = vadd.xlane.f32.xlu0 %v174_v29 }
  0xf8   :  { %184 = vadd.xlane.f32.xlu0 %v177_v30 }
 0x175   :  { %v173_v31 = vpop.xlane.xlu0 %172  ;;  %v169_v32 = vpop.xlane.xlu1 %168 }
 0x179   :  { %v167_v33 = vpop.xlane.xlu0 %166  ;;  %v181_v35 = vpop.xlane.xlu1 %180 }
 0x17a   :  { %v187_v34 = vadd.f32 %v169_v32, %v167_v33 }
 0x17d   :  { %v171_v36 = vpop.xlane.xlu0 %170  ;;  %v183_v41 = vpop.xlane.xlu1 %182 }
 0x17e   :  { %v188_v37 = vadd.f32 %v187_v34, %v171_v36 }
 0x180   :  { %v189_v38 = vadd.f32 %v188_v37, %v173_v31 }
 0x181   :  { %v179_v39 = vpop.xlane.xlu0 %178 }
 0x182   :  { %v191_v40 = vadd.f32 %v181_v35, %v179_v39  ;;  %v195_v42 = vmul.f32 0.001953125, %v189_v38 }
 0x184   :  { %v192_v43 = vadd.f32 %v191_v40, %v183_v41  ;;  %v197_v46 = vmul.f32 %v195_v42, %v195_v42 }
 0x185   :  { %v185_v44 = vpop.xlane.xlu0 %184 }
 0x186   :  { %v193_v45 = vadd.f32 %v192_v43, %v185_v44 }
 0x188   :  { %v196_v47 = vmul.f32 0.001953125, %v193_v45 }
 0x18a   :  { %v198_v48 = vsub.f32 %v196_v47, %v197_v46 }
 0x18c   :  { %v199_v49 = vmax.f32 %v198_v48, 0.0 }
 0x18e   :  { %v201_v50 = vadd.f32 1e-05, %v199_v49 }
 0x190   :  { %365 = vrsqrt.f32 %v201_v50 }
 0x19a   :  { %v366_v52 = vpop.eup %365 }
 0x19b   :  { %v203_v53 = vmul.f32 %v366_v52, %v200_v51 }
 0x19d   :  { %209 = vperm.xlu1 %364, %v203_v53   ;;  %v205_v55 = vmul.f32 %v203_v53, %v195_v42 }
 0x19f   :  { %v206_v56 = vsub.f32 %v204_v54, %v205_v55 }
 0x1a1   :  { %218 = vperm.xlu0 %363, %v206_v56  }
 0x21c   :  { %v210_v57 = vpop.permute.xlu1 %209 }
 0x21d   :  { %v212_v58 = vmul.f32 %v210_v57, %v148_v27  ;;  %v213_v59 = vmul.f32 %v210_v57, %v153_v21  ;;  %v214_v60 = vmul.f32 %v210_v57, %v158_v26  ;;  %v215_v61 = vmul.f32 %v210_v57, %v163_v22 }
 0x220   :  { %v219_v62 = vpop.permute.xlu0 %218 }
 0x221   :  { %v221_v63 = vadd.f32 %v219_v62, %v212_v58  ;;  %v222_v0 = vadd.f32 %v219_v62, %v213_v59  ;;  %v223_v1 = vadd.f32 %v219_v62, %v214_v60  ;;  %v224_v2 = vadd.f32 %v219_v62, %v215_v61 }
 0x223   :  { %v225_v3 = vmax.f32 %v221_v63, 0.0  ;;  %v226_v4 = vmax.f32 %v222_v0, 0.0  ;;  %v227_v5 = vmax.f32 %v223_v1, 0.0  ;;  %v228_v6 = vmax.f32 %v224_v2, 0.0 }
 0x225   :  { %v292_v7 = vpack.c.bf16 %v226_v4, %v225_v3  ;;  %v297_v8 = vpack.c.bf16 %v228_v6, %v227_v5 }
 0x227   :  { %293 = vst [vmem:[%s449_s5] sm:$0xff] %v292_v7   ;;  %303 = vst [vmem:[%s449_s5 + $0x8] sm:$0xff] %v297_v8  }

// kernel: resnet_generator_forward.21
= control target key start
LH: loop header
LB: loop body
LE: loop exit
PB: predicated region body
PF: predicated region fallthrough
CT: control target
= control target key end

     0   :  { %s1085_s12 = smov 0   ;;  %s1087_s13 = smov 0   ;;  %s1306_s0 = inlined_call_operand.vmem [shape: bf16[392,512], index: 0, kind: input, shape index: {}]   ;;  %s1307_s1 = inlined_call_operand.vmem [shape: bf16[3,392], index: 1, kind: input, shape index: {}]   ;;  %s1308_s2 = inlined_call_operand.vmem [shape: f32[3,1], index: 2, kind: input, shape index: {}]   ;;  %s1309_s3 = inlined_call_operand.vmem [shape: f32[3,512], index: 3, kind: output, shape index: {}]  }
   0x1   :  { %s1089_s14 = smov 0  }
   0x2 LB: > { %s775_s15 = sadd.s32 4294967295, %s1062_s14   ;;  %s1102_s16 = sadd.s32 1, %s1062_s14   ;;  %s1062_s14 = sphi %s1089_s14, %s1312_s14   ;;  %s1058_s13 = sphi %s1087_s13, %s1311_s13   ;;  %s1054_s12 = sphi %s1085_s12, %s1310_s12  }
   0x3   : > { %s17_s17 = ssub.s32 %s1062_s14, %s1102_s16  ;;  %s20_s18 = sadd.s32 1, %s1058_s13 }
   0x4   : > { %p18_p0 = scmp.eq.s32.totalorder %s17_s17, 0  ;;  %p27_p1 = scmp.ne.s32.totalorder %s1058_s13, %s1054_s12 }
   0x5   : > { %p28_p2 = scmp.eq.s32.totalorder %s1062_s14, 0  ;;  %p778_p4 = scmp.ge.s32.totalorder %s1062_s14, 2 }
   0x6   : > { %s1111_s19 = scalar_select %p18_p0, %s1058_s13, %s20_s18  }
   0x7   : > { %p29_p3 = por %p28_p2, %p27_p1  ;;  %127 = sbr.rel (%p778_p4) target bundleno = 43 (0x2b), region = 24 }
   0xe   : > { %130 = sbr.rel (!%p29_p3) target bundleno = 43 (0x2b), region = 28  ;;  %s132_s20 = sand.u32 (%p29_p3), 1, %s1058_s13  }
   0xf   : > { %s787_s21 = sshll.u32 (%p29_p3), %s1062_s14, 3  ;;  %s936_s22 = smul.u32 (%p29_p3), 392, %s132_s20 }
  0x10   : > { %s1119_s25 = scalar_lea.vmem (%p29_p3), %s1306_s0, %s787_s21 }
  0x11   : > { %v261_v0 = vld [vmem:[%s1119_s25] sm:$0xff] (%p29_p3)  ;;  %v263_v1 = vld [vmem:[%s1119_s25 + $0x10] sm:$0xff] (%p29_p3)  ;;  %s1127_s26 = scalar_lea.vmem (%p29_p3), [#allocation2], %s936_s22 }
  0x12   : > { %v265_v2 = vld [vmem:[%s1119_s25 + $0x20] sm:$0xff] (%p29_p3)  ;;  %v267_v3 = vld [vmem:[%s1119_s25 + $0x30] sm:$0xff] (%p29_p3)  ;;  %262 = vst [vmem:[%s1127_s26] sm:$0xff] (%p29_p3), %v261_v0  ;;  %264 = vst [vmem:[%s1127_s26 + $0x8] sm:$0xff] (%p29_p3), %v263_v1 }
  0x13   : > { %v269_v4 = vld [vmem:[%s1119_s25 + $0x40] sm:$0xff] (%p29_p3)  ;;  %v271_v5 = vld [vmem:[%s1119_s25 + $0x50] sm:$0xff] (%p29_p3)  ;;  %266 = vst [vmem:[%s1127_s26 + $0x10] sm:$0xff] (%p29_p3), %v265_v2  ;;  %268 = vst [vmem:[%s1127_s26 + $0x18] sm:$0xff] (%p29_p3), %v267_v3 }
  0x14   : > { %270 = vst [vmem:[%s1127_s26 + $0x20] sm:$0xff] (%p29_p3), %v269_v4  ;;  %272 = vst [vmem:[%s1127_s26 + $0x28] sm:$0xff] (%p29_p3), %v271_v5  ;;  %v273_v6 = vld [vmem:[%s1119_s25 + $0x60] sm:$0xff] (%p29_p3)  ;;  %v275_v7 = vld [vmem:[%s1119_s25 + $0x70] sm:$0xff] (%p29_p3) }
  0x15   : > { %v277_v8 = vld [vmem:[%s1119_s25 + $0x80] sm:$0xff]  ;;  %274 = vst [vmem:[%s1127_s26 + $0x30] sm:$0xff] %v273_v6  ;;  %276 = vst [vmem:[%s1127_s26 + $0x38] sm:$0xff] %v275_v7  ;;  %v279_v9 = vld [vmem:[%s1119_s25 + $0x90] sm:$0xff] }
  0x16   : > { %278 = vst [vmem:[%s1127_s26 + $0x40] sm:$0xff] %v277_v8  ;;  %v281_v10 = vld [vmem:[%s1119_s25 + $0xa0] sm:$0xff]  ;;  %v283_v11 = vld [vmem:[%s1119_s25 + $0xb0] sm:$0xff]  ;;  %280 = vst [vmem:[%s1127_s26 + $0x48] sm:$0xff] %v279_v9 }
  0x17   : > { %282 = vst [vmem:[%s1127_s26 + $0x50] sm:$0xff] %v281_v10  ;;  %284 = vst [vmem:[%s1127_s26 + $0x58] sm:$0xff] %v283_v11  ;;  %v285_v12 = vld [vmem:[%s1119_s25 + $0xc0] sm:$0xff]  ;;  %v287_v13 = vld [vmem:[%s1119_s25 + $0xd0] sm:$0xff] }
  0x18   : > { %v289_v14 = vld [vmem:[%s1119_s25 + $0xe0] sm:$0xff]  ;;  %286 = vst [vmem:[%s1127_s26 + $0x60] sm:$0xff] %v285_v12  ;;  %288 = vst [vmem:[%s1127_s26 + $0x68] sm:$0xff] %v287_v13  ;;  %v291_v15 = vld [vmem:[%s1119_s25 + $0xf0] sm:$0xff] }
  0x19   : > { %290 = vst [vmem:[%s1127_s26 + $0x70] sm:$0xff] %v289_v14  ;;  %v293_v16 = vld [vmem:[%s1119_s25 + $0x100] sm:$0xff]  ;;  %v295_v17 = vld [vmem:[%s1119_s25 + $0x110] sm:$0xff]  ;;  %292 = vst [vmem:[%s1127_s26 + $0x78] sm:$0xff] %v291_v15 }
  0x1a   : > { %294 = vst [vmem:[%s1127_s26 + $0x80] sm:$0xff] %v293_v16  ;;  %296 = vst [vmem:[%s1127_s26 + $0x88] sm:$0xff] %v295_v17  ;;  %v297_v18 = vld [vmem:[%s1119_s25 + $0x120] sm:$0xff]  ;;  %v299_v19 = vld [vmem:[%s1119_s25 + $0x130] sm:$0xff] }
  0x1b   : > { %v301_v20 = vld [vmem:[%s1119_s25 + $0x140] sm:$0xff]  ;;  %298 = vst [vmem:[%s1127_s26 + $0x90] sm:$0xff] %v297_v18  ;;  %300 = vst [vmem:[%s1127_s26 + $0x98] sm:$0xff] %v299_v19  ;;  %v303_v21 = vld [vmem:[%s1119_s25 + $0x150] sm:$0xff] }
  0x1c   : > { %302 = vst [vmem:[%s1127_s26 + $0xa0] sm:$0xff] %v301_v20  ;;  %v305_v22 = vld [vmem:[%s1119_s25 + $0x160] sm:$0xff]  ;;  %v307_v23 = vld [vmem:[%s1119_s25 + $0x170] sm:$0xff]  ;;  %304 = vst [vmem:[%s1127_s26 + $0xa8] sm:$0xff] %v303_v21 }
  0x1d   : > { %306 = vst [vmem:[%s1127_s26 + $0xb0] sm:$0xff] %v305_v22  ;;  %308 = vst [vmem:[%s1127_s26 + $0xb8] sm:$0xff] %v307_v23  ;;  %v309_v24 = vld [vmem:[%s1119_s25 + $0x180] sm:$0xff]  ;;  %v311_v25 = vld [vmem:[%s1119_s25 + $0x190] sm:$0xff] }
  0x1e   : > { %v313_v26 = vld [vmem:[%s1119_s25 + $0x1a0] sm:$0xff]  ;;  %310 = vst [vmem:[%s1127_s26 + $0xc0] sm:$0xff] %v309_v24  ;;  %312 = vst [vmem:[%s1127_s26 + $0xc8] sm:$0xff] %v311_v25  ;;  %v315_v27 = vld [vmem:[%s1119_s25 + $0x1b0] sm:$0xff] }
  0x1f   : > { %314 = vst [vmem:[%s1127_s26 + $0xd0] sm:$0xff] %v313_v26  ;;  %v317_v28 = vld [vmem:[%s1119_s25 + $0x1c0] sm:$0xff]  ;;  %v319_v29 = vld [vmem:[%s1119_s25 + $0x1d0] sm:$0xff]  ;;  %316 = vst [vmem:[%s1127_s26 + $0xd8] sm:$0xff] %v315_v27 }
  0x20   : > { %318 = vst [vmem:[%s1127_s26 + $0xe0] sm:$0xff] %v317_v28  ;;  %320 = vst [vmem:[%s1127_s26 + $0xe8] sm:$0xff] %v319_v29  ;;  %v321_v30 = vld [vmem:[%s1119_s25 + $0x1e0] sm:$0xff]  ;;  %v323_v31 = vld [vmem:[%s1119_s25 + $0x1f0] sm:$0xff] }
  0x21   : > { %v325_v32 = vld [vmem:[%s1119_s25 + $0x200] sm:$0xff]  ;;  %322 = vst [vmem:[%s1127_s26 + $0xf0] sm:$0xff] %v321_v30  ;;  %324 = vst [vmem:[%s1127_s26 + $0xf8] sm:$0xff] %v323_v31  ;;  %v327_v33 = vld [vmem:[%s1119_s25 + $0x210] sm:$0xff] }
  0x22   : > { %326 = vst [vmem:[%s1127_s26 + $0x100] sm:$0xff] %v325_v32  ;;  %v329_v34 = vld [vmem:[%s1119_s25 + $0x220] sm:$0xff]  ;;  %v331_v35 = vld [vmem:[%s1119_s25 + $0x230] sm:$0xff]  ;;  %328 = vst [vmem:[%s1127_s26 + $0x108] sm:$0xff] %v327_v33 }
  0x23   : > { %330 = vst [vmem:[%s1127_s26 + $0x110] sm:$0xff] %v329_v34  ;;  %332 = vst [vmem:[%s1127_s26 + $0x118] sm:$0xff] %v331_v35  ;;  %v333_v36 = vld [vmem:[%s1119_s25 + $0x240] sm:$0xff]  ;;  %v335_v37 = vld [vmem:[%s1119_s25 + $0x250] sm:$0xff] }
  0x24   : > { %v337_v38 = vld [vmem:[%s1119_s25 + $0x260] sm:$0xff]  ;;  %334 = vst [vmem:[%s1127_s26 + $0x120] sm:$0xff] %v333_v36  ;;  %336 = vst [vmem:[%s1127_s26 + $0x128] sm:$0xff] %v335_v37  ;;  %v339_v39 = vld [vmem:[%s1119_s25 + $0x270] sm:$0xff] }
  0x25   : > { %338 = vst [vmem:[%s1127_s26 + $0x130] sm:$0xff] %v337_v38  ;;  %v341_v40 = vld [vmem:[%s1119_s25 + $0x280] sm:$0xff]  ;;  %v343_v41 = vld [vmem:[%s1119_s25 + $0x290] sm:$0xff]  ;;  %340 = vst [vmem:[%s1127_s26 + $0x138] sm:$0xff] %v339_v39 }
  0x26   : > { %342 = vst [vmem:[%s1127_s26 + $0x140] sm:$0xff] %v341_v40  ;;  %344 = vst [vmem:[%s1127_s26 + $0x148] sm:$0xff] %v343_v41  ;;  %v345_v42 = vld [vmem:[%s1119_s25 + $0x2a0] sm:$0xff]  ;;  %v347_v43 = vld [vmem:[%s1119_s25 + $0x2b0] sm:$0xff] }
  0x27   : > { %v349_v44 = vld [vmem:[%s1119_s25 + $0x2c0] sm:$0xff]  ;;  %346 = vst [vmem:[%s1127_s26 + $0x150] sm:$0xff] %v345_v42  ;;  %348 = vst [vmem:[%s1127_s26 + $0x158] sm:$0xff] %v347_v43  ;;  %v351_v45 = vld [vmem:[%s1119_s25 + $0x2d0] sm:$0xff] }
  0x28   : > { %350 = vst [vmem:[%s1127_s26 + $0x160] sm:$0xff] %v349_v44  ;;  %v353_v46 = vld [vmem:[%s1119_s25 + $0x2e0] sm:$0xff]  ;;  %v355_v47 = vld [vmem:[%s1119_s25 + $0x2f0] sm:$0xff]  ;;  %352 = vst [vmem:[%s1127_s26 + $0x168] sm:$0xff] %v351_v45 }
  0x29   : > { %354 = vst [vmem:[%s1127_s26 + $0x170] sm:$0xff] %v353_v46  ;;  %356 = vst [vmem:[%s1127_s26 + $0x178] sm:$0xff] %v355_v47  ;;  %v357_v48 = vld [vmem:[%s1119_s25 + $0x300] sm:$0xff] }
  0x2a   : > { %358 = vst [vmem:[%s1127_s26 + $0x180] sm:$0xff] %v357_v48 }
  0x2b PF: > { %p781_p5 = scmp.ge.s32.totalorder %s1062_s14, 1  ;;  %p363_p6 = scmp.lt.s32.totalorder %s1062_s14, 3 }
  0x2d   : > { %p364_p7 = pnand %p781_p5, %p363_p6 }
  0x2e   : > { %s370_s27 = sand.u32 (!%p364_p7), 1, %s1054_s12   ;;  %v547_v49 = vld [vmem:[%s1307_s1] sm:$0xff] (!%p364_p7)  ;;  %v1064_v53 = vmov (!%p364_p7), 0   ;;  %vm561_vm0 = vcmask (!%p364_p7), 64512   ;;  %s782_s7 = sshll.u32 (!%p364_p7), %s775_s15, 1 }
  0x2f   : > { %367 = sbr.rel (%p364_p7) target bundleno = 347 (0x15b), region = 66  ;;  %v550_v50 = vld [vmem:[%s1308_s2] sm:$0x7] (!%p364_p7)  ;;  %v1230_v51 = vunpack.c.l.bf16 (!%p364_p7), %v547_v49  ;;  %v1232_v52 = vunpack.c.h.bf16 (!%p364_p7), %v547_v49  ;;  %963 = vset.pattern.permute.xlu0 (!%p364_p7), %v1064_v53  ;;  %p395_p8 = scmp.lt.s32.totalorder (!%p364_p7), %s782_s7, 3 }
  0x30   : > { %s937_s5 = smul.u32 (!%p364_p7), 392, %s370_s27  ;;  %553 = vperm.xlu0 (!%p364_p7), %963, %v550_v50  }
  0x31   : > { %v558_v54 = vcombine.high (!%p364_p7), %v1230_v51, %v1230_v51  ;;  %v559_v55 = vcombine.high (!%p364_p7), %v1232_v52, %v1232_v52 }
  0x32   : > { %s1238_s6 = scalar_lea.vmem (!%p364_p7), [#allocation2], %s937_s5 }
  0x33   : > { %v964_v56 = vld [vmem:[%s1238_s6 + $0x4] ss:$8 sps:$4 sm:$0xff] (!%p364_p7)   ;;  %v966_v57 = vld [vmem:[%s1238_s6] ss:$8 sps:$4 sm:$0xff] (!%p364_p7)   ;;  %628 = vmatprep.mubr.f32.mxu1 (!%p364_p7), %v558_v54  ;;  %784 = vmatprep.mubr.msk.f32.mxu0 (!%p364_p7), %vm561_vm0, %v559_v55  ;;  %v967_v58 = vld [vmem:[%s1238_s6 + $0x14] ss:$8 sps:$4 sm:$0xff] (!%p364_p7)  }
  0x34   : > { %789 = vmatprep.subr.bf16.mxu1 (!%p364_p7), %v964_v56  ;;  %v969_v59 = vld [vmem:[%s1238_s6 + $0x10] ss:$8 sps:$4 sm:$0xff] (!%p364_p7)   ;;  %v970_v60 = vld [vmem:[%s1238_s6 + $0x24] ss:$8 sps:$4 sm:$0xff] (!%p364_p7)   ;;  %v972_v61 = vld [vmem:[%s1238_s6 + $0x20] ss:$8 sps:$4 sm:$0xff] (!%p364_p7)  }
  0x35   : > { %791 = vmatpush1.bf16.msra.mxu1 (!%p364_p7), %v966_v57  ;;  %v973_v62 = vld [vmem:[%s1238_s6 + $0x34] ss:$8 sps:$4 sm:$0xff] (!%p364_p7)   ;;  %v975_v63 = vld [vmem:[%s1238_s6 + $0x30] ss:$8 sps:$4 sm:$0xff] (!%p364_p7)   ;;  %v988_v0 = vld [vmem:[%s1238_s6 + $0x104] ss:$8 sps:$4 sm:$0xff] (!%p364_p7)  }
  0x36   : > { %793 = vmatprep.subr.bf16.mxu1 %v967_v58  ;;  %v976_v1 = vld [vmem:[%s1238_s6 + $0x44] ss:$8 sps:$4 sm:$0xff]   ;;  %v992_v2 = vld [vmem:[%s1238_s6 + $0x100] ss:$8 sps:$4 sm:$0xff]   ;;  %853 = vmatprep.subr.bf16.mxu0 %v988_v0  ;;  %v994_v3 = vld [vmem:[%s1238_s6 + $0x114] ss:$8 sps:$4 sm:$0xff]  }
  0x37   : > { %855 = vmatpush1.bf16.msra.mxu0 %v992_v2  ;;  %v978_v4 = vld [vmem:[%s1238_s6 + $0x40] ss:$8 sps:$4 sm:$0xff]   ;;  %v979_v5 = vld [vmem:[%s1238_s6 + $0x54] ss:$8 sps:$4 sm:$0xff]   ;;  %v998_v6 = vld [vmem:[%s1238_s6 + $0x110] ss:$8 sps:$4 sm:$0xff]  }
  0x38   : > { %857 = vmatprep.subr.bf16.mxu0 %v994_v3  ;;  %v1000_v7 = vld [vmem:[%s1238_s6 + $0x124] ss:$8 sps:$4 sm:$0xff]   ;;  %v981_v8 = vld [vmem:[%s1238_s6 + $0x50] ss:$8 sps:$4 sm:$0xff]   ;;  %v1004_v9 = vld [vmem:[%s1238_s6 + $0x120] ss:$8 sps:$4 sm:$0xff]  }
  0x39   : > { %795 = vmatpush1.bf16.msra.mxu1 %v969_v59  ;;  %v1006_v10 = vld [vmem:[%s1238_s6 + $0x134] ss:$8 sps:$4 sm:$0xff]   ;;  %v982_v11 = vld [vmem:[%s1238_s6 + $0x64] ss:$8 sps:$4 sm:$0xff]   ;;  %v1010_v12 = vld [vmem:[%s1238_s6 + $0x130] ss:$8 sps:$4 sm:$0xff]  }
  0x3a   : > { %797 = vmatprep.subr.bf16.mxu1 %v970_v60  ;;  %v984_v13 = vld [vmem:[%s1238_s6 + $0x60] ss:$8 sps:$4 sm:$0xff]   ;;  %v1012_v14 = vld [vmem:[%s1238_s6 + $0x144] ss:$8 sps:$4 sm:$0xff]   ;;  %v985_v15 = vld [vmem:[%s1238_s6 + $0x74] ss:$8 sps:$4 sm:$0xff]  }
  0x3b   : > { %859 = vmatpush1.bf16.msra.mxu0 %v998_v6  ;;  %v987_v16 = vld [vmem:[%s1238_s6 + $0x70] ss:$8 sps:$4 sm:$0xff]   ;;  %v1016_v17 = vld [vmem:[%s1238_s6 + $0x140] ss:$8 sps:$4 sm:$0xff]   ;;  %v1018_v18 = vld [vmem:[%s1238_s6 + $0x154] ss:$8 sps:$4 sm:$0xff]  }
  0x3c   : > { %861 = vmatprep.subr.bf16.mxu0 %v1000_v7  ;;  %v990_v19 = vld [vmem:[%s1238_s6 + $0x84] ss:$8 sps:$4 sm:$0xff]   ;;  %v1022_v20 = vld [vmem:[%s1238_s6 + $0x150] ss:$8 sps:$4 sm:$0xff]   ;;  %v993_v21 = vld [vmem:[%s1238_s6 + $0x80] ss:$8 sps:$4 sm:$0xff]  }
  0x3d   : > { %799 = vmatpush1.bf16.msra.mxu1 %v972_v61  ;;  %v1024_v22 = vld [vmem:[%s1238_s6 + $0x164] ss:$8 sps:$4 sm:$0xff]   ;;  %v996_v23 = vld [vmem:[%s1238_s6 + $0x94] ss:$8 sps:$4 sm:$0xff]   ;;  %v1028_v24 = vld [vmem:[%s1238_s6 + $0x160] ss:$8 sps:$4 sm:$0xff]  }
  0x3e   : > { %801 = vmatprep.subr.bf16.mxu1 %v973_v62  ;;  %v999_v25 = vld [vmem:[%s1238_s6 + $0x90] ss:$8 sps:$4 sm:$0xff]   ;;  %v1030_v26 = vld [vmem:[%s1238_s6 + $0x174] ss:$8 sps:$4 sm:$0xff]   ;;  %v1002_v27 = vld [vmem:[%s1238_s6 + $0xa4] ss:$8 sps:$4 sm:$0xff]  }
  0x3f   : > { %863 = vmatpush1.bf16.msra.mxu0 %v1004_v9  ;;  %v448_v28 = vld [vmem:[%s1238_s6 + $0x180] sm:$0xff]  ;;  %v1034_v29 = vld [vmem:[%s1238_s6 + $0x170] ss:$8 sps:$4 sm:$0xff]   ;;  %v1008_v32 = vld [vmem:[%s1238_s6 + $0xb4] ss:$8 sps:$4 sm:$0xff]   ;;  %s1314_s7 = smov (!%p395_p8, %s782_s7), 3 }
  0x40   : > { %865 = vmatprep.subr.bf16.mxu0 %v1006_v10  ;;  %v1005_v30 = vld [vmem:[%s1238_s6 + $0xa0] ss:$8 sps:$4 sm:$0xff]   ;;  %v546_v31 = vunpack.c.h.bf16 %v448_v28  ;;  %v545_v33 = vunpack.c.l.bf16 %v448_v28  ;;  %v1011_v34 = vld [vmem:[%s1238_s6 + $0xb0] ss:$8 sps:$4 sm:$0xff]   ;;  %v1014_v35 = vld [vmem:[%s1238_s6 + $0xc4] ss:$8 sps:$4 sm:$0xff]  }
  0x41   : > { %803 = vmatpush1.bf16.msra.mxu1 %v975_v63  ;;  %v1017_v36 = vld [vmem:[%s1238_s6 + $0xc0] ss:$8 sps:$4 sm:$0xff]   ;;  %v1020_v37 = vld [vmem:[%s1238_s6 + $0xd4] ss:$8 sps:$4 sm:$0xff]   ;;  %v1023_v38 = vld [vmem:[%s1238_s6 + $0xd0] ss:$8 sps:$4 sm:$0xff]  }
  0x42   : > { %805 = vmatprep.subr.bf16.mxu1 %v976_v1  ;;  %v1026_v39 = vld [vmem:[%s1238_s6 + $0xe4] ss:$8 sps:$4 sm:$0xff]   ;;  %v1029_v40 = vld [vmem:[%s1238_s6 + $0xe0] ss:$8 sps:$4 sm:$0xff]   ;;  %v1032_v41 = vld [vmem:[%s1238_s6 + $0xf4] ss:$8 sps:$4 sm:$0xff]  }
  0x43   : > { %867 = vmatpush1.bf16.msra.mxu0 %v1010_v12  ;;  %v1035_v42 = vld [vmem:[%s1238_s6 + $0xf0] ss:$8 sps:$4 sm:$0xff]   ;;  %s783_s8 = sshll.u32 %s1314_s7, 2 }
  0x44   : > { %869 = vmatprep.subr.bf16.mxu0 %v1012_v14  ;;  %s398_s11 = scalar_lea.vmem %s1309_s3, %s783_s8 }
  0x45   : > { %807 = vmatpush1.bf16.msra.mxu1 %v978_v4 }
  0x46   : > { %809 = vmatprep.subr.bf16.mxu1 %v979_v5 }
  0x47   : > { %871 = vmatpush1.bf16.msra.mxu0 %v1016_v17 }
  0x48   : > { %873 = vmatprep.subr.bf16.mxu0 %v1018_v18 }
  0x49   : > { %811 = vmatpush1.bf16.msra.mxu1 %v981_v8 }
  0x4a   : > { %813 = vmatprep.subr.bf16.mxu1 %v982_v11 }
  0x4b   : > { %875 = vmatpush1.bf16.msra.mxu0 %v1022_v20 }
  0x4c   : > { %877 = vmatprep.subr.bf16.mxu0 %v1024_v22 }
  0x4d   : > { %815 = vmatpush1.bf16.msra.mxu1 %v984_v13 }
  0x4e   : > { %817 = vmatprep.subr.bf16.mxu1 %v985_v15 }
  0x4f   : > { %879 = vmatpush1.bf16.msra.mxu0 %v1028_v24 }
  0x50   : > { %881 = vmatprep.subr.bf16.mxu0 %v1030_v26 }
  0x51   : > { %819 = vmatpush1.bf16.msra.mxu1 %v987_v16 }
  0x52   : > { %821 = vmatprep.subr.bf16.mxu1 %v990_v19 }
  0x53   : > { %883 = vmatpush1.bf16.msra.mxu0 %v1034_v29 }
  0x54   : > { %667 = vmatprep.subr.mxu0 %v546_v31 }
  0x55   : > { %823 = vmatpush1.bf16.msra.mxu1 %v993_v21 }
  0x56   : > { %825 = vmatprep.subr.bf16.mxu1 %v996_v23 }
  0x57   : > { %668 = vmatpush1.msra.mxu0 %v545_v33 }
  0x58   : > { %700 = vmatmul.mubr.f32.vlgmr.msra.gmra.mrb[0].mxu0 %v1232_v52 }
  0x59   : > { %827 = vmatpush1.bf16.msra.mxu1 %v999_v25 }
  0x5a   : > { %829 = vmatprep.subr.bf16.mxu1 %v1002_v27 }
  0x5d   : > { %831 = vmatpush1.bf16.msra.mxu1 %v1005_v30 }
  0x5e   : > { %833 = vmatprep.subr.bf16.mxu1 %v1008_v32 }
  0x61   : > { %835 = vmatpush1.bf16.msra.mxu1 %v1011_v34 }
  0x62   : > { %837 = vmatprep.subr.bf16.mxu1 %v1014_v35 }
  0x65   : > { %839 = vmatpush1.bf16.msra.mxu1 %v1017_v36 }
  0x66   : > { %841 = vmatprep.subr.bf16.mxu1 %v1020_v37 }
  0x69   : > { %843 = vmatpush1.bf16.msra.mxu1 %v1023_v38 }
  0x6a   : > { %845 = vmatprep.subr.bf16.mxu1 %v1026_v39 }
  0x6d   : > { %847 = vmatpush1.bf16.msra.mxu1 %v1029_v40 }
  0x6e   : > { %849 = vmatprep.subr.bf16.mxu1 %v1032_v41 }
  0x71   : > { %851 = vmatpush1.bf16.msra.mxu1 %v1035_v42 }
  0x74   : > { %629 = vmatmul.mubr.f32.vlgmr.msra.gmra.mrb[0].mxu1 %v1230_v51 }
  0xaf   : > { %v554_v45 = vpop.permute.xlu0 %553 }
 0x12b   : > { %v701_v43 = vpop.f32.mrb[0].mxu0 }
 0x12c   : > { %v703_v44 = vpop.f32.mrb[1].mxu0 }
 0x147   : > { %v630_v46 = vpop.f32.mrb[0].mxu1 }
 0x148   : > { %v631_v47 = vadd.f32 %v630_v46, %v554_v45  ;;  %v632_v48 = vpop.f32.mrb[1].mxu1 }
 0x149   : > { %v633_v49 = vadd.f32 %v632_v48, %v554_v45 }
 0x14a   : > { %v702_v50 = vadd.f32 %v701_v43, %v631_v47 }
 0x14b   : > { %v704_v52 = vadd.f32 %v703_v44, %v633_v49 }
 0x14c   : > { %1036 = vtanh.f32 %v702_v50 }
 0x14d   : > { %1038 = vtanh.f32 %v704_v52 }
 0x156   : > { %v1037_v53 = vpop.eup %1036 }
 0x157   : > { %v1039_v54 = vpop.eup %1038 }
 0x158   : > { %v710_v51 = vcombine.low %v1037_v53, %v1039_v54 }
 0x15a   : > { %712 = vst [vmem:[%s398_s11] sm:$0x77] %v710_v51 }
 0x15b PF: > { %p10_p9 = scmp.ge.s32.totalorder %s1102_s16, 4   ;;  %s1310_s12 = smov %s1058_s13 }
 0x15c   : > { %s1311_s13 = smov %s1111_s19  ;;  %s1312_s14 = smov %s1102_s16 }
 0x15d   :  { %12 = sbr.rel (!%p10_p9) target bundleno = 2 (0x2), region = 105 }

</bundles_post_ra>
